<compile_context>
chip_gen: v7x
topology: tpu7x:2x2x1
jax: 0.10.0
libtpu: 0.0.40
codegen_flags: <defaults>
</compile_context>

<pallas_src>
import numpy as np
import jax
import jax.numpy as jnp
from jax.experimental import pallas as pl
from jax.experimental.pallas import tpu as pltpu


# ------------------------------- fused kernel ------------------------------
# Layouts:
#   x        : (3, 1024)  f32, flattened 32x32 image, lane-dense spatial.
#   wall1    : (40, 20)   f32, row = 8*kw + co (rows 6,7 of each group zero),
#                              col = 4*kh + cin (col 3 of each group zero).
#   wall2    : (80, 40)   f32, row = 16*kw + co, col = 8*kh + cin (6,7 zero).
#   gsmall   : (27, 14)   f32 0/1, gsmall[2w, w] = 1   (pool1 subsample).
#   g2       : (121, 25)  f32 0/1, g2[28h+2w, 5h+w] = 1 (pool2 subsample).
#   fc*w     : transposed torch weights, bf16.
# Full-width trick: conv output column p = W*ho + wo; row-wrap columns are
# computed but never consumed by the pools.

def len_fused_kernel(x_ref, wall1_ref, b1_ref, wall2_ref, b2_ref,
                     gs_ref, g2_ref, fc1w_ref, fc1b_ref, fc2w_ref, fc2b_ref,
                     fc3w_ref, fc3b_ref, y_ref, o_ref,
                     s1, s2, sp, p1s, feat):
    f32 = jnp.float32
    bf16 = jnp.bfloat16

    # ---- conv1 (3 -> 6, 5x5) as ONE matmul --------------------------------
    # s1[4*kh + cin, q] = x[cin, 32*kh + q]  (pad rows zero)
    s1[...] = jnp.zeros_like(s1)
    for kh in range(5):
        s1[4 * kh:4 * kh + 3, :] = x_ref[:, 32 * kh:32 * kh + 896]
    r1 = jnp.dot(wall1_ref[...], s1[...], preferred_element_type=f32)  # (40,896)
    # c1[co, p] = b1 + sum_kw r1[8*kw + co, p + kw]   (p = 32*ho + wo)
    pa = r1[0:6, 0:892]
    pb = r1[8:14, 1:893]
    pc = r1[16:22, 2:894]
    pd = r1[24:30, 3:895]
    pe = r1[32:38, 4:896]
    c1 = jnp.maximum((pa + pb) + (pc + pd) + (pe + b1_ref[...]), 0.0)  # (6,892)

    # ---- pool1 (2x2 max): shifted max, then slice-stack + tiny 0/1 matmul --
    h1 = jnp.maximum(jnp.maximum(c1[:, 0:859], c1[:, 1:860]),
                     jnp.maximum(c1[:, 32:891], c1[:, 33:892]))        # (6,859)
    sp[...] = jnp.zeros_like(sp)
    for h in range(14):
        sp[8 * h:8 * h + 6, :] = h1[:, 64 * h:64 * h + 27]
    pr = jnp.dot(sp[...], gs_ref[...], preferred_element_type=f32)     # (112,14)
    for h in range(14):
        p1s[:, 14 * h:14 * h + 14] = pr[8 * h:8 * h + 6, :]            # (6,196)

    # ---- conv2 (6 -> 16, 5x5) as ONE matmul --------------------------------
    # s2[8*kh + cin, q] = p1[cin, 14*kh + q]  (pad rows zero)
    s2[...] = jnp.zeros_like(s2)
    for kh in range(5):
        s2[8 * kh:8 * kh + 6, :] = p1s[:, 14 * kh:14 * kh + 140]
    r2 = jnp.dot(wall2_ref[...], s2[...], preferred_element_type=f32)  # (80,140)
    qa = r2[0:16, 0:136]
    qb = r2[16:32, 1:137]
    qc = r2[32:48, 2:138]
    qd = r2[48:64, 3:139]
    qe = r2[64:80, 4:140]
    c2 = jnp.maximum((qa + qb) + (qc + qd) + (qe + b2_ref[...]), 0.0)  # (16,136)

    # ---- pool2 -> (16, 25) via tiny 0/1 gather matmul ----------------------
    h2 = jnp.maximum(jnp.maximum(c2[:, 0:121], c2[:, 1:122]),
                     jnp.maximum(c2[:, 14:135], c2[:, 15:136]))        # (16,121)
    p2 = jnp.dot(h2, g2_ref[...], preferred_element_type=f32)          # (16,25)

    # ---- feature vector in torch CHW flatten order + y concat --------------
    for c in range(16):
        feat[:, 25 * c:25 * c + 25] = p2[c:c + 1, :]
    feat[:, 400:484] = y_ref[...]                                      # (1,484)

    # ---- fc1 -> ReLU -> fc2 -> ReLU -> fc3 (bf16 operands, f32 accumulate) -
    h = jnp.dot(feat[...].astype(bf16), fc1w_ref[...],
                preferred_element_type=f32)
    h = jnp.maximum(h + fc1b_ref[...], 0.0)                            # (1,120)
    h = jnp.dot(h.astype(bf16), fc2w_ref[...], preferred_element_type=f32)
    h = jnp.maximum(h + fc2b_ref[...], 0.0)                            # (1,84)
    o_ref[...] = (jnp.dot(h.astype(bf16), fc3w_ref[...],
                          preferred_element_type=f32)
                  + fc3b_ref[...])                                     # (1,2)


# ------------------------------- parameters --------------------------------

def init_params(key):
    """Parameters in PyTorch layouts."""
    ks = jax.random.split(key, 10)
    u = lambda k, shape, s: jax.random.uniform(k, shape, jnp.float32, -s, s)
    return dict(
        conv1_w=u(ks[0], (6, 3, 5, 5), 0.1), conv1_b=u(ks[1], (6,), 0.1),
        conv2_w=u(ks[2], (16, 6, 5, 5), 0.1), conv2_b=u(ks[3], (16,), 0.1),
        fc1_w=u(ks[4], (120, 16 * 5 * 5 + 84), 0.05), fc1_b=u(ks[5], (120,), 0.05),
        fc2_w=u(ks[6], (84, 120), 0.05), fc2_b=u(ks[7], (84,), 0.05),
        fc3_w=u(ks[8], (2, 84), 0.05), fc3_b=u(ks[9], (2,), 0.05),
    )


def pack_params(p):
    """Torch-layout params -> layouts the fused kernel consumes (done once)."""
    f32, bf16 = jnp.float32, jnp.bfloat16
    # conv1 (6,3,5,5) -> (40,20): row = 8*kw+co (co padded 6->8),
    #                             col = 4*kh+cin (cin padded 3->4)
    t1 = jnp.transpose(p["conv1_w"], (3, 0, 2, 1))          # [kw, co, kh, cin]
    wall1 = jnp.pad(t1, ((0, 0), (0, 2), (0, 0), (0, 1))).reshape(40, 20)
    # conv2 (16,6,5,5) -> (80,40): row = 16*kw+co, col = 8*kh+cin (cin 6->8)
    t2 = jnp.transpose(p["conv2_w"], (3, 0, 2, 1))          # [kw, co, kh, cin]
    wall2 = jnp.pad(t2, ((0, 0), (0, 0), (0, 0), (0, 2))).reshape(80, 40)

    # pool subsample 0/1 matrices (tiny)
    gs = np.zeros((27, 14), np.float32)
    for w in range(14):
        gs[2 * w, w] = 1.0
    g2 = np.zeros((121, 25), np.float32)
    for h in range(5):
        for w in range(5):
            g2[28 * h + 2 * w, 5 * h + w] = 1.0

    return {
        "wall1": wall1.astype(f32), "b1": p["conv1_b"].reshape(6, 1),
        "wall2": wall2.astype(f32), "b2": p["conv2_b"].reshape(16, 1),
        "gsmall": jnp.asarray(gs), "g2": jnp.asarray(g2),
        "fc1w": p["fc1_w"].T.astype(bf16), "fc1b": p["fc1_b"].reshape(1, 120),
        "fc2w": p["fc2_w"].T.astype(bf16), "fc2b": p["fc2_b"].reshape(1, 84),
        "fc3w": p["fc3_w"].T.astype(bf16), "fc3b": p["fc3_b"].reshape(1, 2),
    }


# --------------------------------- forward ---------------------------------

def len_forward(kp, x_nchw, y):
    """x_nchw: (B, 3, 32, 32) f32; y: (1, 84) f32 -> (1, 2) f32."""
    # The torch forward only consumes batch element 0 after the flatten.
    x_flat = x_nchw[0].reshape(3, 32 * 32).astype(jnp.float32)
    cost = pl.CostEstimate(flops=2_700_000, transcendentals=0,
                           bytes_accessed=190_000)
    return pl.pallas_call(
        len_fused_kernel,
        out_shape=jax.ShapeDtypeStruct((1, 2), jnp.float32),
        scratch_shapes=[
            pltpu.VMEM((20, 896), jnp.float32),   # conv1 kh-stacked input
            pltpu.VMEM((40, 140), jnp.float32),   # conv2 kh-stacked input
            pltpu.VMEM((112, 27), jnp.float32),   # pool1 group stack
            pltpu.VMEM((6, 196), jnp.float32),    # pool1 output (conv2 input)
            pltpu.VMEM((1, 484), jnp.float32),    # fc1 feature vector
        ],
        cost_estimate=cost,
        compiler_params=pltpu.CompilerParams(vmem_limit_bytes=16 * 1024 * 1024),
    )(x_flat, kp["wall1"], kp["b1"], kp["wall2"], kp["b2"], kp["gsmall"],
      kp["g2"], kp["fc1w"], kp["fc1b"], kp["fc2w"], kp["fc2b"], kp["fc3w"],
      kp["fc3b"], y[0:1, :])


# ------------------------- pure-JAX reference (torch semantics) ------------

def reference_forward(p, x_nchw, y):
    hi = jax.lax.Precision.HIGHEST

    def conv(x_chw, w, b):
        out = jax.lax.conv_general_dilated(
            x_chw[None], w, window_strides=(1, 1), padding="VALID",
            dimension_numbers=("NCHW", "OIHW", "NCHW"), precision=hi)[0]
        return out + b[:, None, None]

    def pool(x_chw):
        c, h, w = x_chw.shape
        return x_chw.reshape(c, h // 2, 2, w // 2, 2).max(axis=(2, 4))

    h = pool(jax.nn.relu(conv(x_nchw[0], p["conv1_w"], p["conv1_b"])))  # (6,14,14)
    h = pool(jax.nn.relu(conv(h, p["conv2_w"], p["conv2_b"])))          # (16,5,5)
    feat = jnp.concatenate([h.reshape(-1), y[0]])                       # (484,)
    h = jax.nn.relu(jnp.dot(feat, p["fc1_w"].T, precision=hi) + p["fc1_b"])
    h = jax.nn.relu(jnp.dot(h, p["fc2_w"].T, precision=hi) + p["fc2_b"])
    out = jnp.dot(h, p["fc3_w"].T, precision=hi) + p["fc3_b"]
    return out[None, :]                                                 # (1, 2)


# ----------------------------------- main -----------------------------------

if __name__ == "__main__":
    key = jax.random.PRNGKey(0)
    kparam, kx, ky = jax.random.split(key, 3)

    params = init_params(kparam)
    kparams = pack_params(params)

    # Spatial size 32x32 is required by the architecture (two 5x5 valid convs
    # + two 2x2 pools -> 16*5*5 flattened features); batch=2 exercises the
    # "only batch element 0 is used" semantics of the torch forward.
    x = jax.random.normal(kx, (2, 3, 32, 32), jnp.float32)
    y = jax.random.normal(ky, (1, 84), jnp.float32)

    fwd = jax.jit(len_forward)
    out = jax.block_until_ready(fwd(kparams, x, y))
    assert out.shape == (1, 2) and out.dtype == jnp.float32

    ref = reference_forward(params, x, y)
    assert np.allclose(np.asarray(out), np.asarray(ref), rtol=2e-2, atol=2e-2), (out, ref)

    print("KERNEL_OK")
</pallas_src>

<mosaic_0001>
module attributes {stable_mosaic.version = 11 : i64} {
  func.func @len_fused_kernel(%arg0: memref<3x1024xf32, #tpu.memory_space<vmem>>, %arg1: memref<40x20xf32, #tpu.memory_space<vmem>>, %arg2: memref<6x1xf32, #tpu.memory_space<vmem>>, %arg3: memref<80x40xf32, #tpu.memory_space<vmem>>, %arg4: memref<16x1xf32, #tpu.memory_space<vmem>>, %arg5: memref<27x14xf32, #tpu.memory_space<vmem>>, %arg6: memref<121x25xf32, #tpu.memory_space<vmem>>, %arg7: memref<484x120xbf16, #tpu.memory_space<vmem>>, %arg8: memref<1x120xf32, #tpu.memory_space<vmem>>, %arg9: memref<120x84xbf16, #tpu.memory_space<vmem>>, %arg10: memref<1x84xf32, #tpu.memory_space<vmem>>, %arg11: memref<84x2xbf16, #tpu.memory_space<vmem>>, %arg12: memref<1x2xf32, #tpu.memory_space<vmem>>, %arg13: memref<1x84xf32, #tpu.memory_space<vmem>>, %arg14: memref<1x2xf32, #tpu.memory_space<vmem>>, %arg15: memref<20x896xf32, #tpu.memory_space<vmem>>, %arg16: memref<40x140xf32, #tpu.memory_space<vmem>>, %arg17: memref<112x27xf32, #tpu.memory_space<vmem>>, %arg18: memref<6x196xf32, #tpu.memory_space<vmem>>, %arg19: memref<1x484xf32, #tpu.memory_space<vmem>>) attributes {dimension_semantics = [], scalar_prefetch = 0 : i64, scratch_operands = 5 : i64, tpu.core_type = #tpu.core_type<tc>} {
    %cst = arith.constant 0.000000e+00 : f32
    %0 = vector.broadcast %cst : f32 to vector<20x896xf32>
    %c0 = arith.constant 0 : index
    %c0_0 = arith.constant 0 : index
    %1 = vector.load %arg15[%c0, %c0_0] : memref<20x896xf32, #tpu.memory_space<vmem>>, vector<20x896xf32>
    tpu.vector_store %arg15[%c0, %c0_0], %0 {strides = array<i32>} : memref<20x896xf32, #tpu.memory_space<vmem>>, vector<20x896xf32>,
    %c0_1 = arith.constant 0 : index
    %c0_2 = arith.constant 0 : index
    %2 = vector.load %arg0[%c0_1, %c0_2] : memref<3x1024xf32, #tpu.memory_space<vmem>>, vector<3x896xf32>
    %c0_3 = arith.constant 0 : index
    %c0_4 = arith.constant 0 : index
    %3 = vector.load %arg15[%c0_3, %c0_4] : memref<20x896xf32, #tpu.memory_space<vmem>>, vector<3x896xf32>
    tpu.vector_store %arg15[%c0_3, %c0_4], %2 {strides = array<i32>} : memref<20x896xf32, #tpu.memory_space<vmem>>, vector<3x896xf32>,
    %c0_5 = arith.constant 0 : index
    %c32 = arith.constant 32 : index
    %4 = vector.load %arg0[%c0_5, %c32] : memref<3x1024xf32, #tpu.memory_space<vmem>>, vector<3x896xf32>
    %c4 = arith.constant 4 : index
    %c0_6 = arith.constant 0 : index
    %5 = vector.load %arg15[%c4, %c0_6] : memref<20x896xf32, #tpu.memory_space<vmem>>, vector<3x896xf32>
    tpu.vector_store %arg15[%c4, %c0_6], %4 {strides = array<i32>} : memref<20x896xf32, #tpu.memory_space<vmem>>, vector<3x896xf32>,
    %c0_7 = arith.constant 0 : index
    %c64 = arith.constant 64 : index
    %6 = vector.load %arg0[%c0_7, %c64] : memref<3x1024xf32, #tpu.memory_space<vmem>>, vector<3x896xf32>
    %c8 = arith.constant 8 : index
    %c0_8 = arith.constant 0 : index
    %7 = vector.load %arg15[%c8, %c0_8] : memref<20x896xf32, #tpu.memory_space<vmem>>, vector<3x896xf32>
    tpu.vector_store %arg15[%c8, %c0_8], %6 {strides = array<i32>} : memref<20x896xf32, #tpu.memory_space<vmem>>, vector<3x896xf32>,
    %c0_9 = arith.constant 0 : index
    %c96 = arith.constant 96 : index
    %8 = vector.load %arg0[%c0_9, %c96] : memref<3x1024xf32, #tpu.memory_space<vmem>>, vector<3x896xf32>
    %c12 = arith.constant 12 : index
    %c0_10 = arith.constant 0 : index
    %9 = vector.load %arg15[%c12, %c0_10] : memref<20x896xf32, #tpu.memory_space<vmem>>, vector<3x896xf32>
    tpu.vector_store %arg15[%c12, %c0_10], %8 {strides = array<i32>} : memref<20x896xf32, #tpu.memory_space<vmem>>, vector<3x896xf32>,
    %c0_11 = arith.constant 0 : index
    %c128 = arith.constant 128 : index
    %10 = vector.load %arg0[%c0_11, %c128] : memref<3x1024xf32, #tpu.memory_space<vmem>>, vector<3x896xf32>
    %c16 = arith.constant 16 : index
    %c0_12 = arith.constant 0 : index
    %11 = vector.load %arg15[%c16, %c0_12] : memref<20x896xf32, #tpu.memory_space<vmem>>, vector<3x896xf32>
    tpu.vector_store %arg15[%c16, %c0_12], %10 {strides = array<i32>} : memref<20x896xf32, #tpu.memory_space<vmem>>, vector<3x896xf32>,
    %c0_13 = arith.constant 0 : index
    %c0_14 = arith.constant 0 : index
    %12 = vector.load %arg1[%c0_13, %c0_14] : memref<40x20xf32, #tpu.memory_space<vmem>>, vector<40x20xf32>
    %c0_15 = arith.constant 0 : index
    %c0_16 = arith.constant 0 : index
    %13 = vector.load %arg15[%c0_15, %c0_16] : memref<20x896xf32, #tpu.memory_space<vmem>>, vector<20x896xf32>
    %cst_17 = arith.constant dense<0.000000e+00> : vector<40x896xf32>
    %14 = tpu.matmul %12, %13, %cst_17 {dimension_numbers = #tpu.dot_dimension_numbers<[1], [0], [0], [1], [0, 0, 1, 1], [], []>} : vector<40x20xf32>, vector<20x896xf32>, vector<40x896xf32> -> vector<40x896xf32>
    %15 = vector.extract_strided_slice %14 {offsets = [0, 0], sizes = [6, 892], strides = [1, 1]} : vector<40x896xf32> to vector<6x892xf32>
    %16 = vector.extract_strided_slice %14 {offsets = [8, 1], sizes = [6, 892], strides = [1, 1]} : vector<40x896xf32> to vector<6x892xf32>
    %17 = vector.extract_strided_slice %14 {offsets = [16, 2], sizes = [6, 892], strides = [1, 1]} : vector<40x896xf32> to vector<6x892xf32>
    %18 = vector.extract_strided_slice %14 {offsets = [24, 3], sizes = [6, 892], strides = [1, 1]} : vector<40x896xf32> to vector<6x892xf32>
    %19 = vector.extract_strided_slice %14 {offsets = [32, 4], sizes = [6, 892], strides = [1, 1]} : vector<40x896xf32> to vector<6x892xf32>
    %20 = arith.addf %15, %16 : vector<6x892xf32>
    %21 = arith.addf %17, %18 : vector<6x892xf32>
    %22 = arith.addf %20, %21 : vector<6x892xf32>
    %c0_18 = arith.constant 0 : index
    %c0_19 = arith.constant 0 : index
    %23 = vector.load %arg2[%c0_18, %c0_19] : memref<6x1xf32, #tpu.memory_space<vmem>>, vector<6x1xf32>
    %24 = vector.broadcast %23 : vector<6x1xf32> to vector<6x892xf32>
    %25 = arith.addf %19, %24 : vector<6x892xf32>
    %26 = arith.addf %22, %25 : vector<6x892xf32>
    %cst_20 = arith.constant 0.000000e+00 : f32
    %27 = vector.broadcast %cst_20 : f32 to vector<6x892xf32>
    %28 = arith.maximumf %26, %27 : vector<6x892xf32>
    %29 = vector.extract_strided_slice %28 {offsets = [0, 0], sizes = [6, 859], strides = [1, 1]} : vector<6x892xf32> to vector<6x859xf32>
    %30 = vector.extract_strided_slice %28 {offsets = [0, 1], sizes = [6, 859], strides = [1, 1]} : vector<6x892xf32> to vector<6x859xf32>
    %31 = arith.maximumf %29, %30 : vector<6x859xf32>
    %32 = vector.extract_strided_slice %28 {offsets = [0, 32], sizes = [6, 859], strides = [1, 1]} : vector<6x892xf32> to vector<6x859xf32>
    %33 = vector.extract_strided_slice %28 {offsets = [0, 33], sizes = [6, 859], strides = [1, 1]} : vector<6x892xf32> to vector<6x859xf32>
    %34 = arith.maximumf %32, %33 : vector<6x859xf32>
    %35 = arith.maximumf %31, %34 : vector<6x859xf32>
    %cst_21 = arith.constant 0.000000e+00 : f32
    %36 = vector.broadcast %cst_21 : f32 to vector<112x27xf32>
    %c0_22 = arith.constant 0 : index
    %c0_23 = arith.constant 0 : index
    %37 = vector.load %arg17[%c0_22, %c0_23] : memref<112x27xf32, #tpu.memory_space<vmem>>, vector<112x27xf32>
    tpu.vector_store %arg17[%c0_22, %c0_23], %36 {strides = array<i32>} : memref<112x27xf32, #tpu.memory_space<vmem>>, vector<112x27xf32>,
    %38 = vector.extract_strided_slice %35 {offsets = [0, 0], sizes = [6, 27], strides = [1, 1]} : vector<6x859xf32> to vector<6x27xf32>
    %c0_24 = arith.constant 0 : index
    %c0_25 = arith.constant 0 : index
    %39 = vector.load %arg17[%c0_24, %c0_25] : memref<112x27xf32, #tpu.memory_space<vmem>>, vector<6x27xf32>
    tpu.vector_store %arg17[%c0_24, %c0_25], %38 {strides = array<i32>} : memref<112x27xf32, #tpu.memory_space<vmem>>, vector<6x27xf32>,
    %40 = vector.extract_strided_slice %35 {offsets = [0, 64], sizes = [6, 27], strides = [1, 1]} : vector<6x859xf32> to vector<6x27xf32>
    %c8_26 = arith.constant 8 : index
    %c0_27 = arith.constant 0 : index
    %41 = vector.load %arg17[%c8_26, %c0_27] : memref<112x27xf32, #tpu.memory_space<vmem>>, vector<6x27xf32>
    tpu.vector_store %arg17[%c8_26, %c0_27], %40 {strides = array<i32>} : memref<112x27xf32, #tpu.memory_space<vmem>>, vector<6x27xf32>,
    %42 = vector.extract_strided_slice %35 {offsets = [0, 128], sizes = [6, 27], strides = [1, 1]} : vector<6x859xf32> to vector<6x27xf32>
    %c16_28 = arith.constant 16 : index
    %c0_29 = arith.constant 0 : index
    %43 = vector.load %arg17[%c16_28, %c0_29] : memref<112x27xf32, #tpu.memory_space<vmem>>, vector<6x27xf32>
    tpu.vector_store %arg17[%c16_28, %c0_29], %42 {strides = array<i32>} : memref<112x27xf32, #tpu.memory_space<vmem>>, vector<6x27xf32>,
    %44 = vector.extract_strided_slice %35 {offsets = [0, 192], sizes = [6, 27], strides = [1, 1]} : vector<6x859xf32> to vector<6x27xf32>
    %c24 = arith.constant 24 : index
    %c0_30 = arith.constant 0 : index
    %45 = vector.load %arg17[%c24, %c0_30] : memref<112x27xf32, #tpu.memory_space<vmem>>, vector<6x27xf32>
    tpu.vector_store %arg17[%c24, %c0_30], %44 {strides = array<i32>} : memref<112x27xf32, #tpu.memory_space<vmem>>, vector<6x27xf32>,
    %46 = vector.extract_strided_slice %35 {offsets = [0, 256], sizes = [6, 27], strides = [1, 1]} : vector<6x859xf32> to vector<6x27xf32>
    %c32_31 = arith.constant 32 : index
    %c0_32 = arith.constant 0 : index
    %47 = vector.load %arg17[%c32_31, %c0_32] : memref<112x27xf32, #tpu.memory_space<vmem>>, vector<6x27xf32>
    tpu.vector_store %arg17[%c32_31, %c0_32], %46 {strides = array<i32>} : memref<112x27xf32, #tpu.memory_space<vmem>>, vector<6x27xf32>,
    %48 = vector.extract_strided_slice %35 {offsets = [0, 320], sizes = [6, 27], strides = [1, 1]} : vector<6x859xf32> to vector<6x27xf32>
    %c40 = arith.constant 40 : index
    %c0_33 = arith.constant 0 : index
    %49 = vector.load %arg17[%c40, %c0_33] : memref<112x27xf32, #tpu.memory_space<vmem>>, vector<6x27xf32>
    tpu.vector_store %arg17[%c40, %c0_33], %48 {strides = array<i32>} : memref<112x27xf32, #tpu.memory_space<vmem>>, vector<6x27xf32>,
    %50 = vector.extract_strided_slice %35 {offsets = [0, 384], sizes = [6, 27], strides = [1, 1]} : vector<6x859xf32> to vector<6x27xf32>
    %c48 = arith.constant 48 : index
    %c0_34 = arith.constant 0 : index
    %51 = vector.load %arg17[%c48, %c0_34] : memref<112x27xf32, #tpu.memory_space<vmem>>, vector<6x27xf32>
    tpu.vector_store %arg17[%c48, %c0_34], %50 {strides = array<i32>} : memref<112x27xf32, #tpu.memory_space<vmem>>, vector<6x27xf32>,
    %52 = vector.extract_strided_slice %35 {offsets = [0, 448], sizes = [6, 27], strides = [1, 1]} : vector<6x859xf32> to vector<6x27xf32>
    %c56 = arith.constant 56 : index
    %c0_35 = arith.constant 0 : index
    %53 = vector.load %arg17[%c56, %c0_35] : memref<112x27xf32, #tpu.memory_space<vmem>>, vector<6x27xf32>
    tpu.vector_store %arg17[%c56, %c0_35], %52 {strides = array<i32>} : memref<112x27xf32, #tpu.memory_space<vmem>>, vector<6x27xf32>,
    %54 = vector.extract_strided_slice %35 {offsets = [0, 512], sizes = [6, 27], strides = [1, 1]} : vector<6x859xf32> to vector<6x27xf32>
    %c64_36 = arith.constant 64 : index
    %c0_37 = arith.constant 0 : index
    %55 = vector.load %arg17[%c64_36, %c0_37] : memref<112x27xf32, #tpu.memory_space<vmem>>, vector<6x27xf32>
    tpu.vector_store %arg17[%c64_36, %c0_37], %54 {strides = array<i32>} : memref<112x27xf32, #tpu.memory_space<vmem>>, vector<6x27xf32>,
    %56 = vector.extract_strided_slice %35 {offsets = [0, 576], sizes = [6, 27], strides = [1, 1]} : vector<6x859xf32> to vector<6x27xf32>
    %c72 = arith.constant 72 : index
    %c0_38 = arith.constant 0 : index
    %57 = vector.load %arg17[%c72, %c0_38] : memref<112x27xf32, #tpu.memory_space<vmem>>, vector<6x27xf32>
    tpu.vector_store %arg17[%c72, %c0_38], %56 {strides = array<i32>} : memref<112x27xf32, #tpu.memory_space<vmem>>, vector<6x27xf32>,
    %58 = vector.extract_strided_slice %35 {offsets = [0, 640], sizes = [6, 27], strides = [1, 1]} : vector<6x859xf32> to vector<6x27xf32>
    %c80 = arith.constant 80 : index
    %c0_39 = arith.constant 0 : index
    %59 = vector.load %arg17[%c80, %c0_39] : memref<112x27xf32, #tpu.memory_space<vmem>>, vector<6x27xf32>
    tpu.vector_store %arg17[%c80, %c0_39], %58 {strides = array<i32>} : memref<112x27xf32, #tpu.memory_space<vmem>>, vector<6x27xf32>,
    %60 = vector.extract_strided_slice %35 {offsets = [0, 704], sizes = [6, 27], strides = [1, 1]} : vector<6x859xf32> to vector<6x27xf32>
    %c88 = arith.constant 88 : index
    %c0_40 = arith.constant 0 : index
    %61 = vector.load %arg17[%c88, %c0_40] : memref<112x27xf32, #tpu.memory_space<vmem>>, vector<6x27xf32>
    tpu.vector_store %arg17[%c88, %c0_40], %60 {strides = array<i32>} : memref<112x27xf32, #tpu.memory_space<vmem>>, vector<6x27xf32>,
    %62 = vector.extract_strided_slice %35 {offsets = [0, 768], sizes = [6, 27], strides = [1, 1]} : vector<6x859xf32> to vector<6x27xf32>
    %c96_41 = arith.constant 96 : index
    %c0_42 = arith.constant 0 : index
    %63 = vector.load %arg17[%c96_41, %c0_42] : memref<112x27xf32, #tpu.memory_space<vmem>>, vector<6x27xf32>
    tpu.vector_store %arg17[%c96_41, %c0_42], %62 {strides = array<i32>} : memref<112x27xf32, #tpu.memory_space<vmem>>, vector<6x27xf32>,
    %64 = vector.extract_strided_slice %35 {offsets = [0, 832], sizes = [6, 27], strides = [1, 1]} : vector<6x859xf32> to vector<6x27xf32>
    %c104 = arith.constant 104 : index
    %c0_43 = arith.constant 0 : index
    %65 = vector.load %arg17[%c104, %c0_43] : memref<112x27xf32, #tpu.memory_space<vmem>>, vector<6x27xf32>
    tpu.vector_store %arg17[%c104, %c0_43], %64 {strides = array<i32>} : memref<112x27xf32, #tpu.memory_space<vmem>>, vector<6x27xf32>,
    %c0_44 = arith.constant 0 : index
    %c0_45 = arith.constant 0 : index
    %66 = vector.load %arg17[%c0_44, %c0_45] : memref<112x27xf32, #tpu.memory_space<vmem>>, vector<112x27xf32>
    %c0_46 = arith.constant 0 : index
    %c0_47 = arith.constant 0 : index
    %67 = vector.load %arg5[%c0_46, %c0_47] : memref<27x14xf32, #tpu.memory_space<vmem>>, vector<27x14xf32>
    %cst_48 = arith.constant dense<0.000000e+00> : vector<112x14xf32>
    %68 = tpu.matmul %66, %67, %cst_48 {dimension_numbers = #tpu.dot_dimension_numbers<[1], [0], [0], [1], [0, 0, 1, 1], [], []>} : vector<112x27xf32>, vector<27x14xf32>, vector<112x14xf32> -> vector<112x14xf32>
    %69 = vector.extract_strided_slice %68 {offsets = [0, 0], sizes = [6, 14], strides = [1, 1]} : vector<112x14xf32> to vector<6x14xf32>
    %c0_49 = arith.constant 0 : index
    %c0_50 = arith.constant 0 : index
    %70 = vector.load %arg18[%c0_49, %c0_50] : memref<6x196xf32, #tpu.memory_space<vmem>>, vector<6x14xf32>
    tpu.vector_store %arg18[%c0_49, %c0_50], %69 {strides = array<i32>} : memref<6x196xf32, #tpu.memory_space<vmem>>, vector<6x14xf32>,
    %71 = vector.extract_strided_slice %68 {offsets = [8, 0], sizes = [6, 14], strides = [1, 1]} : vector<112x14xf32> to vector<6x14xf32>
    %c0_51 = arith.constant 0 : index
    %c14 = arith.constant 14 : index
    %72 = vector.load %arg18[%c0_51, %c14] : memref<6x196xf32, #tpu.memory_space<vmem>>, vector<6x14xf32>
    tpu.vector_store %arg18[%c0_51, %c14], %71 {strides = array<i32>} : memref<6x196xf32, #tpu.memory_space<vmem>>, vector<6x14xf32>,
    %73 = vector.extract_strided_slice %68 {offsets = [16, 0], sizes = [6, 14], strides = [1, 1]} : vector<112x14xf32> to vector<6x14xf32>
    %c0_52 = arith.constant 0 : index
    %c28 = arith.constant 28 : index
    %74 = vector.load %arg18[%c0_52, %c28] : memref<6x196xf32, #tpu.memory_space<vmem>>, vector<6x14xf32>
    tpu.vector_store %arg18[%c0_52, %c28], %73 {strides = array<i32>} : memref<6x196xf32, #tpu.memory_space<vmem>>, vector<6x14xf32>,
    %75 = vector.extract_strided_slice %68 {offsets = [24, 0], sizes = [6, 14], strides = [1, 1]} : vector<112x14xf32> to vector<6x14xf32>
    %c0_53 = arith.constant 0 : index
    %c42 = arith.constant 42 : index
    %76 = vector.load %arg18[%c0_53, %c42] : memref<6x196xf32, #tpu.memory_space<vmem>>, vector<6x14xf32>
    tpu.vector_store %arg18[%c0_53, %c42], %75 {strides = array<i32>} : memref<6x196xf32, #tpu.memory_space<vmem>>, vector<6x14xf32>,
    %77 = vector.extract_strided_slice %68 {offsets = [32, 0], sizes = [6, 14], strides = [1, 1]} : vector<112x14xf32> to vector<6x14xf32>
    %c0_54 = arith.constant 0 : index
    %c56_55 = arith.constant 56 : index
    %78 = vector.load %arg18[%c0_54, %c56_55] : memref<6x196xf32, #tpu.memory_space<vmem>>, vector<6x14xf32>
    tpu.vector_store %arg18[%c0_54, %c56_55], %77 {strides = array<i32>} : memref<6x196xf32, #tpu.memory_space<vmem>>, vector<6x14xf32>,
    %79 = vector.extract_strided_slice %68 {offsets = [40, 0], sizes = [6, 14], strides = [1, 1]} : vector<112x14xf32> to vector<6x14xf32>
    %c0_56 = arith.constant 0 : index
    %c70 = arith.constant 70 : index
    %80 = vector.load %arg18[%c0_56, %c70] : memref<6x196xf32, #tpu.memory_space<vmem>>, vector<6x14xf32>
    tpu.vector_store %arg18[%c0_56, %c70], %79 {strides = array<i32>} : memref<6x196xf32, #tpu.memory_space<vmem>>, vector<6x14xf32>,
    %81 = vector.extract_strided_slice %68 {offsets = [48, 0], sizes = [6, 14], strides = [1, 1]} : vector<112x14xf32> to vector<6x14xf32>
    %c0_57 = arith.constant 0 : index
    %c84 = arith.constant 84 : index
    %82 = vector.load %arg18[%c0_57, %c84] : memref<6x196xf32, #tpu.memory_space<vmem>>, vector<6x14xf32>
    tpu.vector_store %arg18[%c0_57, %c84], %81 {strides = array<i32>} : memref<6x196xf32, #tpu.memory_space<vmem>>, vector<6x14xf32>,
    %83 = vector.extract_strided_slice %68 {offsets = [56, 0], sizes = [6, 14], strides = [1, 1]} : vector<112x14xf32> to vector<6x14xf32>
    %c0_58 = arith.constant 0 : index
    %c98 = arith.constant 98 : index
    %84 = vector.load %arg18[%c0_58, %c98] : memref<6x196xf32, #tpu.memory_space<vmem>>, vector<6x14xf32>
    tpu.vector_store %arg18[%c0_58, %c98], %83 {strides = array<i32>} : memref<6x196xf32, #tpu.memory_space<vmem>>, vector<6x14xf32>,
    %85 = vector.extract_strided_slice %68 {offsets = [64, 0], sizes = [6, 14], strides = [1, 1]} : vector<112x14xf32> to vector<6x14xf32>
    %c0_59 = arith.constant 0 : index
    %c112 = arith.constant 112 : index
    %86 = vector.load %arg18[%c0_59, %c112] : memref<6x196xf32, #tpu.memory_space<vmem>>, vector<6x14xf32>
    tpu.vector_store %arg18[%c0_59, %c112], %85 {strides = array<i32>} : memref<6x196xf32, #tpu.memory_space<vmem>>, vector<6x14xf32>,
    %87 = vector.extract_strided_slice %68 {offsets = [72, 0], sizes = [6, 14], strides = [1, 1]} : vector<112x14xf32> to vector<6x14xf32>
    %c0_60 = arith.constant 0 : index
    %c126 = arith.constant 126 : index
    %88 = vector.load %arg18[%c0_60, %c126] : memref<6x196xf32, #tpu.memory_space<vmem>>, vector<6x14xf32>
    tpu.vector_store %arg18[%c0_60, %c126], %87 {strides = array<i32>} : memref<6x196xf32, #tpu.memory_space<vmem>>, vector<6x14xf32>,
    %89 = vector.extract_strided_slice %68 {offsets = [80, 0], sizes = [6, 14], strides = [1, 1]} : vector<112x14xf32> to vector<6x14xf32>
    %c0_61 = arith.constant 0 : index
    %c140 = arith.constant 140 : index
    %90 = vector.load %arg18[%c0_61, %c140] : memref<6x196xf32, #tpu.memory_space<vmem>>, vector<6x14xf32>
    tpu.vector_store %arg18[%c0_61, %c140], %89 {strides = array<i32>} : memref<6x196xf32, #tpu.memory_space<vmem>>, vector<6x14xf32>,
    %91 = vector.extract_strided_slice %68 {offsets = [88, 0], sizes = [6, 14], strides = [1, 1]} : vector<112x14xf32> to vector<6x14xf32>
    %c0_62 = arith.constant 0 : index
    %c154 = arith.constant 154 : index
    %92 = vector.load %arg18[%c0_62, %c154] : memref<6x196xf32, #tpu.memory_space<vmem>>, vector<6x14xf32>
    tpu.vector_store %arg18[%c0_62, %c154], %91 {strides = array<i32>} : memref<6x196xf32, #tpu.memory_space<vmem>>, vector<6x14xf32>,
    %93 = vector.extract_strided_slice %68 {offsets = [96, 0], sizes = [6, 14], strides = [1, 1]} : vector<112x14xf32> to vector<6x14xf32>
    %c0_63 = arith.constant 0 : index
    %c168 = arith.constant 168 : index
    %94 = vector.load %arg18[%c0_63, %c168] : memref<6x196xf32, #tpu.memory_space<vmem>>, vector<6x14xf32>
    tpu.vector_store %arg18[%c0_63, %c168], %93 {strides = array<i32>} : memref<6x196xf32, #tpu.memory_space<vmem>>, vector<6x14xf32>,
    %95 = vector.extract_strided_slice %68 {offsets = [104, 0], sizes = [6, 14], strides = [1, 1]} : vector<112x14xf32> to vector<6x14xf32>
    %c0_64 = arith.constant 0 : index
    %c182 = arith.constant 182 : index
    %96 = vector.load %arg18[%c0_64, %c182] : memref<6x196xf32, #tpu.memory_space<vmem>>, vector<6x14xf32>
    tpu.vector_store %arg18[%c0_64, %c182], %95 {strides = array<i32>} : memref<6x196xf32, #tpu.memory_space<vmem>>, vector<6x14xf32>,
    %cst_65 = arith.constant 0.000000e+00 : f32
    %97 = vector.broadcast %cst_65 : f32 to vector<40x140xf32>
    %c0_66 = arith.constant 0 : index
    %c0_67 = arith.constant 0 : index
    %98 = vector.load %arg16[%c0_66, %c0_67] : memref<40x140xf32, #tpu.memory_space<vmem>>, vector<40x140xf32>
    tpu.vector_store %arg16[%c0_66, %c0_67], %97 {strides = array<i32>} : memref<40x140xf32, #tpu.memory_space<vmem>>, vector<40x140xf32>,
    %c0_68 = arith.constant 0 : index
    %c0_69 = arith.constant 0 : index
    %99 = vector.load %arg18[%c0_68, %c0_69] : memref<6x196xf32, #tpu.memory_space<vmem>>, vector<6x140xf32>
    %c0_70 = arith.constant 0 : index
    %c0_71 = arith.constant 0 : index
    %100 = vector.load %arg16[%c0_70, %c0_71] : memref<40x140xf32, #tpu.memory_space<vmem>>, vector<6x140xf32>
    tpu.vector_store %arg16[%c0_70, %c0_71], %99 {strides = array<i32>} : memref<40x140xf32, #tpu.memory_space<vmem>>, vector<6x140xf32>,
    %c0_72 = arith.constant 0 : index
    %c14_73 = arith.constant 14 : index
    %101 = vector.load %arg18[%c0_72, %c14_73] : memref<6x196xf32, #tpu.memory_space<vmem>>, vector<6x140xf32>
    %c8_74 = arith.constant 8 : index
    %c0_75 = arith.constant 0 : index
    %102 = vector.load %arg16[%c8_74, %c0_75] : memref<40x140xf32, #tpu.memory_space<vmem>>, vector<6x140xf32>
    tpu.vector_store %arg16[%c8_74, %c0_75], %101 {strides = array<i32>} : memref<40x140xf32, #tpu.memory_space<vmem>>, vector<6x140xf32>,
    %c0_76 = arith.constant 0 : index
    %c28_77 = arith.constant 28 : index
    %103 = vector.load %arg18[%c0_76, %c28_77] : memref<6x196xf32, #tpu.memory_space<vmem>>, vector<6x140xf32>
    %c16_78 = arith.constant 16 : index
    %c0_79 = arith.constant 0 : index
    %104 = vector.load %arg16[%c16_78, %c0_79] : memref<40x140xf32, #tpu.memory_space<vmem>>, vector<6x140xf32>
    tpu.vector_store %arg16[%c16_78, %c0_79], %103 {strides = array<i32>} : memref<40x140xf32, #tpu.memory_space<vmem>>, vector<6x140xf32>,
    %c0_80 = arith.constant 0 : index
    %c42_81 = arith.constant 42 : index
    %105 = vector.load %arg18[%c0_80, %c42_81] : memref<6x196xf32, #tpu.memory_space<vmem>>, vector<6x140xf32>
    %c24_82 = arith.constant 24 : index
    %c0_83 = arith.constant 0 : index
    %106 = vector.load %arg16[%c24_82, %c0_83] : memref<40x140xf32, #tpu.memory_space<vmem>>, vector<6x140xf32>
    tpu.vector_store %arg16[%c24_82, %c0_83], %105 {strides = array<i32>} : memref<40x140xf32, #tpu.memory_space<vmem>>, vector<6x140xf32>,
    %c0_84 = arith.constant 0 : index
    %c56_85 = arith.constant 56 : index
    %107 = vector.load %arg18[%c0_84, %c56_85] : memref<6x196xf32, #tpu.memory_space<vmem>>, vector<6x140xf32>
    %c32_86 = arith.constant 32 : index
    %c0_87 = arith.constant 0 : index
    %108 = vector.load %arg16[%c32_86, %c0_87] : memref<40x140xf32, #tpu.memory_space<vmem>>, vector<6x140xf32>
    tpu.vector_store %arg16[%c32_86, %c0_87], %107 {strides = array<i32>} : memref<40x140xf32, #tpu.memory_space<vmem>>, vector<6x140xf32>,
    %c0_88 = arith.constant 0 : index
    %c0_89 = arith.constant 0 : index
    %109 = vector.load %arg3[%c0_88, %c0_89] : memref<80x40xf32, #tpu.memory_space<vmem>>, vector<80x40xf32>
    %c0_90 = arith.constant 0 : index
    %c0_91 = arith.constant 0 : index
    %110 = vector.load %arg16[%c0_90, %c0_91] : memref<40x140xf32, #tpu.memory_space<vmem>>, vector<40x140xf32>
    %cst_92 = arith.constant dense<0.000000e+00> : vector<80x140xf32>
    %111 = tpu.matmul %109, %110, %cst_92 {dimension_numbers = #tpu.dot_dimension_numbers<[1], [0], [0], [1], [0, 0, 1, 1], [], []>} : vector<80x40xf32>, vector<40x140xf32>, vector<80x140xf32> -> vector<80x140xf32>
    %112 = vector.extract_strided_slice %111 {offsets = [0, 0], sizes = [16, 136], strides = [1, 1]} : vector<80x140xf32> to vector<16x136xf32>
    %113 = vector.extract_strided_slice %111 {offsets = [16, 1], sizes = [16, 136], strides = [1, 1]} : vector<80x140xf32> to vector<16x136xf32>
    %114 = vector.extract_strided_slice %111 {offsets = [32, 2], sizes = [16, 136], strides = [1, 1]} : vector<80x140xf32> to vector<16x136xf32>
    %115 = vector.extract_strided_slice %111 {offsets = [48, 3], sizes = [16, 136], strides = [1, 1]} : vector<80x140xf32> to vector<16x136xf32>
    %116 = vector.extract_strided_slice %111 {offsets = [64, 4], sizes = [16, 136], strides = [1, 1]} : vector<80x140xf32> to vector<16x136xf32>
    %117 = arith.addf %112, %113 : vector<16x136xf32>
    %118 = arith.addf %114, %115 : vector<16x136xf32>
    %119 = arith.addf %117, %118 : vector<16x136xf32>
    %c0_93 = arith.constant 0 : index
    %c0_94 = arith.constant 0 : index
    %120 = vector.load %arg4[%c0_93, %c0_94] : memref<16x1xf32, #tpu.memory_space<vmem>>, vector<16x1xf32>
    %121 = vector.broadcast %120 : vector<16x1xf32> to vector<16x136xf32>
    %122 = arith.addf %116, %121 : vector<16x136xf32>
    %123 = arith.addf %119, %122 : vector<16x136xf32>
    %cst_95 = arith.constant 0.000000e+00 : f32
    %124 = vector.broadcast %cst_95 : f32 to vector<16x136xf32>
    %125 = arith.maximumf %123, %124 : vector<16x136xf32>
    %126 = vector.extract_strided_slice %125 {offsets = [0, 0], sizes = [16, 121], strides = [1, 1]} : vector<16x136xf32> to vector<16x121xf32>
    %127 = vector.extract_strided_slice %125 {offsets = [0, 1], sizes = [16, 121], strides = [1, 1]} : vector<16x136xf32> to vector<16x121xf32>
    %128 = arith.maximumf %126, %127 : vector<16x121xf32>
    %129 = vector.extract_strided_slice %125 {offsets = [0, 14], sizes = [16, 121], strides = [1, 1]} : vector<16x136xf32> to vector<16x121xf32>
    %130 = vector.extract_strided_slice %125 {offsets = [0, 15], sizes = [16, 121], strides = [1, 1]} : vector<16x136xf32> to vector<16x121xf32>
    %131 = arith.maximumf %129, %130 : vector<16x121xf32>
    %132 = arith.maximumf %128, %131 : vector<16x121xf32>
    %c0_96 = arith.constant 0 : index
    %c0_97 = arith.constant 0 : index
    %133 = vector.load %arg6[%c0_96, %c0_97] : memref<121x25xf32, #tpu.memory_space<vmem>>, vector<121x25xf32>
    %cst_98 = arith.constant dense<0.000000e+00> : vector<16x25xf32>
    %134 = tpu.matmul %132, %133, %cst_98 {dimension_numbers = #tpu.dot_dimension_numbers<[1], [0], [0], [1], [0, 0, 1, 1], [], []>} : vector<16x121xf32>, vector<121x25xf32>, vector<16x25xf32> -> vector<16x25xf32>
    %135 = vector.extract_strided_slice %134 {offsets = [0, 0], sizes = [1, 25], strides = [1, 1]} : vector<16x25xf32> to vector<1x25xf32>
    %c0_99 = arith.constant 0 : index
    %c0_100 = arith.constant 0 : index
    %136 = vector.load %arg19[%c0_99, %c0_100] : memref<1x484xf32, #tpu.memory_space<vmem>>, vector<1x25xf32>
    tpu.vector_store %arg19[%c0_99, %c0_100], %135 {strides = array<i32>} : memref<1x484xf32, #tpu.memory_space<vmem>>, vector<1x25xf32>,
    %137 = vector.extract_strided_slice %134 {offsets = [1, 0], sizes = [1, 25], strides = [1, 1]} : vector<16x25xf32> to vector<1x25xf32>
    %c0_101 = arith.constant 0 : index
    %c25 = arith.constant 25 : index
    %138 = vector.load %arg19[%c0_101, %c25] : memref<1x484xf32, #tpu.memory_space<vmem>>, vector<1x25xf32>
    tpu.vector_store %arg19[%c0_101, %c25], %137 {strides = array<i32>} : memref<1x484xf32, #tpu.memory_space<vmem>>, vector<1x25xf32>,
    %139 = vector.extract_strided_slice %134 {offsets = [2, 0], sizes = [1, 25], strides = [1, 1]} : vector<16x25xf32> to vector<1x25xf32>
    %c0_102 = arith.constant 0 : index
    %c50 = arith.constant 50 : index
    %140 = vector.load %arg19[%c0_102, %c50] : memref<1x484xf32, #tpu.memory_space<vmem>>, vector<1x25xf32>
    tpu.vector_store %arg19[%c0_102, %c50], %139 {strides = array<i32>} : memref<1x484xf32, #tpu.memory_space<vmem>>, vector<1x25xf32>,
    %141 = vector.extract_strided_slice %134 {offsets = [3, 0], sizes = [1, 25], strides = [1, 1]} : vector<16x25xf32> to vector<1x25xf32>
    %c0_103 = arith.constant 0 : index
    %c75 = arith.constant 75 : index
    %142 = vector.load %arg19[%c0_103, %c75] : memref<1x484xf32, #tpu.memory_space<vmem>>, vector<1x25xf32>
    tpu.vector_store %arg19[%c0_103, %c75], %141 {strides = array<i32>} : memref<1x484xf32, #tpu.memory_space<vmem>>, vector<1x25xf32>,
    %143 = vector.extract_strided_slice %134 {offsets = [4, 0], sizes = [1, 25], strides = [1, 1]} : vector<16x25xf32> to vector<1x25xf32>
    %c0_104 = arith.constant 0 : index
    %c100 = arith.constant 100 : index
    %144 = vector.load %arg19[%c0_104, %c100] : memref<1x484xf32, #tpu.memory_space<vmem>>, vector<1x25xf32>
    tpu.vector_store %arg19[%c0_104, %c100], %143 {strides = array<i32>} : memref<1x484xf32, #tpu.memory_space<vmem>>, vector<1x25xf32>,
    %145 = vector.extract_strided_slice %134 {offsets = [5, 0], sizes = [1, 25], strides = [1, 1]} : vector<16x25xf32> to vector<1x25xf32>
    %c0_105 = arith.constant 0 : index
    %c125 = arith.constant 125 : index
    %146 = vector.load %arg19[%c0_105, %c125] : memref<1x484xf32, #tpu.memory_space<vmem>>, vector<1x25xf32>
    tpu.vector_store %arg19[%c0_105, %c125], %145 {strides = array<i32>} : memref<1x484xf32, #tpu.memory_space<vmem>>, vector<1x25xf32>,
    %147 = vector.extract_strided_slice %134 {offsets = [6, 0], sizes = [1, 25], strides = [1, 1]} : vector<16x25xf32> to vector<1x25xf32>
    %c0_106 = arith.constant 0 : index
    %c150 = arith.constant 150 : index
    %148 = vector.load %arg19[%c0_106, %c150] : memref<1x484xf32, #tpu.memory_space<vmem>>, vector<1x25xf32>
    tpu.vector_store %arg19[%c0_106, %c150], %147 {strides = array<i32>} : memref<1x484xf32, #tpu.memory_space<vmem>>, vector<1x25xf32>,
    %149 = vector.extract_strided_slice %134 {offsets = [7, 0], sizes = [1, 25], strides = [1, 1]} : vector<16x25xf32> to vector<1x25xf32>
    %c0_107 = arith.constant 0 : index
    %c175 = arith.constant 175 : index
    %150 = vector.load %arg19[%c0_107, %c175] : memref<1x484xf32, #tpu.memory_space<vmem>>, vector<1x25xf32>
    tpu.vector_store %arg19[%c0_107, %c175], %149 {strides = array<i32>} : memref<1x484xf32, #tpu.memory_space<vmem>>, vector<1x25xf32>,
    %151 = vector.extract_strided_slice %134 {offsets = [8, 0], sizes = [1, 25], strides = [1, 1]} : vector<16x25xf32> to vector<1x25xf32>
    %c0_108 = arith.constant 0 : index
    %c200 = arith.constant 200 : index
    %152 = vector.load %arg19[%c0_108, %c200] : memref<1x484xf32, #tpu.memory_space<vmem>>, vector<1x25xf32>
    tpu.vector_store %arg19[%c0_108, %c200], %151 {strides = array<i32>} : memref<1x484xf32, #tpu.memory_space<vmem>>, vector<1x25xf32>,
    %153 = vector.extract_strided_slice %134 {offsets = [9, 0], sizes = [1, 25], strides = [1, 1]} : vector<16x25xf32> to vector<1x25xf32>
    %c0_109 = arith.constant 0 : index
    %c225 = arith.constant 225 : index
    %154 = vector.load %arg19[%c0_109, %c225] : memref<1x484xf32, #tpu.memory_space<vmem>>, vector<1x25xf32>
    tpu.vector_store %arg19[%c0_109, %c225], %153 {strides = array<i32>} : memref<1x484xf32, #tpu.memory_space<vmem>>, vector<1x25xf32>,
    %155 = vector.extract_strided_slice %134 {offsets = [10, 0], sizes = [1, 25], strides = [1, 1]} : vector<16x25xf32> to vector<1x25xf32>
    %c0_110 = arith.constant 0 : index
    %c250 = arith.constant 250 : index
    %156 = vector.load %arg19[%c0_110, %c250] : memref<1x484xf32, #tpu.memory_space<vmem>>, vector<1x25xf32>
    tpu.vector_store %arg19[%c0_110, %c250], %155 {strides = array<i32>} : memref<1x484xf32, #tpu.memory_space<vmem>>, vector<1x25xf32>,
    %157 = vector.extract_strided_slice %134 {offsets = [11, 0], sizes = [1, 25], strides = [1, 1]} : vector<16x25xf32> to vector<1x25xf32>
    %c0_111 = arith.constant 0 : index
    %c275 = arith.constant 275 : index
    %158 = vector.load %arg19[%c0_111, %c275] : memref<1x484xf32, #tpu.memory_space<vmem>>, vector<1x25xf32>
    tpu.vector_store %arg19[%c0_111, %c275], %157 {strides = array<i32>} : memref<1x484xf32, #tpu.memory_space<vmem>>, vector<1x25xf32>,
    %159 = vector.extract_strided_slice %134 {offsets = [12, 0], sizes = [1, 25], strides = [1, 1]} : vector<16x25xf32> to vector<1x25xf32>
    %c0_112 = arith.constant 0 : index
    %c300 = arith.constant 300 : index
    %160 = vector.load %arg19[%c0_112, %c300] : memref<1x484xf32, #tpu.memory_space<vmem>>, vector<1x25xf32>
    tpu.vector_store %arg19[%c0_112, %c300], %159 {strides = array<i32>} : memref<1x484xf32, #tpu.memory_space<vmem>>, vector<1x25xf32>,
    %161 = vector.extract_strided_slice %134 {offsets = [13, 0], sizes = [1, 25], strides = [1, 1]} : vector<16x25xf32> to vector<1x25xf32>
    %c0_113 = arith.constant 0 : index
    %c325 = arith.constant 325 : index
    %162 = vector.load %arg19[%c0_113, %c325] : memref<1x484xf32, #tpu.memory_space<vmem>>, vector<1x25xf32>
    tpu.vector_store %arg19[%c0_113, %c325], %161 {strides = array<i32>} : memref<1x484xf32, #tpu.memory_space<vmem>>, vector<1x25xf32>,
    %163 = vector.extract_strided_slice %134 {offsets = [14, 0], sizes = [1, 25], strides = [1, 1]} : vector<16x25xf32> to vector<1x25xf32>
    %c0_114 = arith.constant 0 : index
    %c350 = arith.constant 350 : index
    %164 = vector.load %arg19[%c0_114, %c350] : memref<1x484xf32, #tpu.memory_space<vmem>>, vector<1x25xf32>
    tpu.vector_store %arg19[%c0_114, %c350], %163 {strides = array<i32>} : memref<1x484xf32, #tpu.memory_space<vmem>>, vector<1x25xf32>,
    %165 = vector.extract_strided_slice %134 {offsets = [15, 0], sizes = [1, 25], strides = [1, 1]} : vector<16x25xf32> to vector<1x25xf32>
    %c0_115 = arith.constant 0 : index
    %c375 = arith.constant 375 : index
    %166 = vector.load %arg19[%c0_115, %c375] : memref<1x484xf32, #tpu.memory_space<vmem>>, vector<1x25xf32>
    tpu.vector_store %arg19[%c0_115, %c375], %165 {strides = array<i32>} : memref<1x484xf32, #tpu.memory_space<vmem>>, vector<1x25xf32>,
    %c0_116 = arith.constant 0 : index
    %c0_117 = arith.constant 0 : index
    %167 = vector.load %arg13[%c0_116, %c0_117] : memref<1x84xf32, #tpu.memory_space<vmem>>, vector<1x84xf32>
    %c0_118 = arith.constant 0 : index
    %c400 = arith.constant 400 : index
    %168 = vector.load %arg19[%c0_118, %c400] : memref<1x484xf32, #tpu.memory_space<vmem>>, vector<1x84xf32>
    tpu.vector_store %arg19[%c0_118, %c400], %167 {strides = array<i32>} : memref<1x484xf32, #tpu.memory_space<vmem>>, vector<1x84xf32>,
    %c0_119 = arith.constant 0 : index
    %c0_120 = arith.constant 0 : index
    %169 = vector.load %arg19[%c0_119, %c0_120] : memref<1x484xf32, #tpu.memory_space<vmem>>, vector<1x484xf32>
    %170 = arith.truncf %169 : vector<1x484xf32> to vector<1x484xbf16>
    %c0_121 = arith.constant 0 : index
    %c0_122 = arith.constant 0 : index
    %171 = vector.load %arg7[%c0_121, %c0_122] : memref<484x120xbf16, #tpu.memory_space<vmem>>, vector<484x120xbf16>
    %cst_123 = arith.constant dense<0.000000e+00> : vector<1x120xf32>
    %172 = tpu.matmul %170, %171, %cst_123 {dimension_numbers = #tpu.dot_dimension_numbers<[1], [0], [0], [1], [0, 0, 1, 1], [], []>} : vector<1x484xbf16>, vector<484x120xbf16>, vector<1x120xf32> -> vector<1x120xf32>
    %c0_124 = arith.constant 0 : index
    %c0_125 = arith.constant 0 : index
    %173 = vector.load %arg8[%c0_124, %c0_125] : memref<1x120xf32, #tpu.memory_space<vmem>>, vector<1x120xf32>
    %174 = arith.addf %172, %173 : vector<1x120xf32>
    %cst_126 = arith.constant 0.000000e+00 : f32
    %175 = vector.broadcast %cst_126 : f32 to vector<1x120xf32>
    %176 = arith.maximumf %174, %175 : vector<1x120xf32>
    %177 = arith.truncf %176 : vector<1x120xf32> to vector<1x120xbf16>
    %c0_127 = arith.constant 0 : index
    %c0_128 = arith.constant 0 : index
    %178 = vector.load %arg9[%c0_127, %c0_128] : memref<120x84xbf16, #tpu.memory_space<vmem>>, vector<120x84xbf16>
    %cst_129 = arith.constant dense<0.000000e+00> : vector<1x84xf32>
    %179 = tpu.matmul %177, %178, %cst_129 {dimension_numbers = #tpu.dot_dimension_numbers<[1], [0], [0], [1], [0, 0, 1, 1], [], []>} : vector<1x120xbf16>, vector<120x84xbf16>, vector<1x84xf32> -> vector<1x84xf32>
    %c0_130 = arith.constant 0 : index
    %c0_131 = arith.constant 0 : index
    %180 = vector.load %arg10[%c0_130, %c0_131] : memref<1x84xf32, #tpu.memory_space<vmem>>, vector<1x84xf32>
    %181 = arith.addf %179, %180 : vector<1x84xf32>
    %cst_132 = arith.constant 0.000000e+00 : f32
    %182 = vector.broadcast %cst_132 : f32 to vector<1x84xf32>
    %183 = arith.maximumf %181, %182 : vector<1x84xf32>
    %184 = arith.truncf %183 : vector<1x84xf32> to vector<1x84xbf16>
    %c0_133 = arith.constant 0 : index
    %c0_134 = arith.constant 0 : index
    %185 = vector.load %arg11[%c0_133, %c0_134] : memref<84x2xbf16, #tpu.memory_space<vmem>>, vector<84x2xbf16>
    %cst_135 = arith.constant dense<0.000000e+00> : vector<1x2xf32>
    %186 = tpu.matmul %184, %185, %cst_135 {dimension_numbers = #tpu.dot_dimension_numbers<[1], [0], [0], [1], [0, 0, 1, 1], [], []>} : vector<1x84xbf16>, vector<84x2xbf16>, vector<1x2xf32> -> vector<1x2xf32>
    %c0_136 = arith.constant 0 : index
    %c0_137 = arith.constant 0 : index
    %187 = vector.load %arg12[%c0_136, %c0_137] : memref<1x2xf32, #tpu.memory_space<vmem>>, vector<1x2xf32>
    %188 = arith.addf %186, %187 : vector<1x2xf32>
    %c0_138 = arith.constant 0 : index
    %c0_139 = arith.constant 0 : index
    %189 = vector.load %arg14[%c0_138, %c0_139] : memref<1x2xf32, #tpu.memory_space<vmem>>, vector<1x2xf32>
    tpu.vector_store %arg14[%c0_138, %c0_139], %188 {strides = array<i32>} : memref<1x2xf32, #tpu.memory_space<vmem>>, vector<1x2xf32>,
    return
  }
}

</mosaic_0001>

<bundles_post_ra>
// kernel: squeeze.1
= control target key start
LH: loop header
LB: loop body
LE: loop exit
PB: predicated region body
PF: predicated region fallthrough
CT: control target
= control target key end

     0   :  { %vm24_vm0 = vcmask 1041409   ;;  %s27_s10 = smov 12  ;;  %vm29_vm1 = vcmask 1043458   ;;  %vm33_vm2 = vcmask 1044484   ;;  %s36_s15 = smov 96  ;;  %vm38_vm3 = vcmask 1046533   ;;  %s734_s0 = inlined_call_operand.vmem [shape: f32[1,3,32,32], index: 0, kind: input, shape index: {}]   ;;  %s735_s1 = inlined_call_operand.vmem [shape: f32[3,1024], index: 1, kind: output, shape index: {}]  }
   0x1   :  { %v375_v0 = vld [vmem:[%s734_s0 + $0x3] sm:$0x1]   ;;  %v378_v4 = vld [vmem:[%s734_s0 + $0x23] sm:$0x10]   ;;  %v380_v6 = vld [vmem:[%s734_s0 + $0x24] sm:$0x80]  }
   0x2   :  { %v376_v1 = vld [vmem:[%s734_s0 + $0x22] sm:$0x2]   ;;  %vm42_vm4 = vcmask 1047559   ;;  %v393_v9 = vld [vmem:[%s734_s0 + $0x2] sm:$0x1]   ;;  %s127_s24 = smov 12 }
   0x3   :  { %v25_v2 = vsel %vm24_vm0, %v376_v1, %v375_v0  ;;  %v377_v3 = vld [vmem:[%s734_s0 + $0xbb] ss:$-60 sm:%s27_s10]   ;;  %v394_v10 = vld [vmem:[%s734_s0 + $0x21] sm:$0x2]   ;;  %v396_v13 = vld [vmem:[%s734_s0 + $0x22] sm:$0x10]  }
   0x4   :  { %v30_v5 = vsel %vm29_vm1, %v377_v3, %v25_v2  ;;  %v379_v8 = vld [vmem:[%s734_s0 + $0x173] ss:$-60 sm:%s36_s15]   ;;  %v125_v12 = vsel %vm24_vm0, %v394_v10, %v393_v9  ;;  %s136_s27 = smov 96  ;;  %v398_v14 = vld [vmem:[%s734_s0 + $0x23] sm:$0x80]   ;;  %s59_s5 = smov 12 }
   0x5   :  { %v34_v7 = vsel %vm33_vm2, %v378_v4, %v30_v5  ;;  %v395_v16 = vld [vmem:[%s734_s0 + $0xba] ss:$-60 sm:%s127_s24]   ;;  %s439_s6 = smov 96   ;;  %v381_v19 = vld [vmem:[%s734_s0 + $0x13] sm:$0x1]   ;;  %s68_s15 = smov 96 }
   0x6   :  { %v39_v11 = vsel %vm38_vm3, %v379_v8, %v34_v7  ;;  %v397_v17 = vld [vmem:[%s734_s0 + $0x172] ss:$-60 sm:%s136_s27]   ;;  %v130_v18 = vsel %vm29_vm1, %v395_v16, %v125_v12  ;;  %v382_v20 = vld [vmem:[%s734_s0 + $0x32] sm:$0x2]   ;;  %v384_v21 = vld [vmem:[%s734_s0 + $0x33] sm:$0x10]  }
   0x7   :  { %v43_v15 = vsel %vm42_vm4, %v380_v6, %v39_v11  ;;  %v134_v22 = vsel %vm33_vm2, %v396_v13, %v130_v18  ;;  %v57_v23 = vsel %vm24_vm0, %v382_v20, %v381_v19  ;;  %v383_v24 = vld [vmem:[%s734_s0 + $0xcb] ss:$-60 sm:%s59_s5]   ;;  %s86_s18 = smov 3  ;;  %vm90_vm5 = vcmask 1042434   ;;  %s93_s23 = smov 24 }
   0x8   :  { %44 = vrot.lane.b32.xlu0 %v43_v15, %s439_s6  ;;  %v386_v25 = vld [vmem:[%s734_s0 + $0x34] sm:$0x80]   ;;  %v139_v26 = vsel %vm38_vm3, %v397_v17, %v134_v22  ;;  %v62_v27 = vsel %vm29_vm1, %v383_v24, %v57_v23  ;;  %v388_v32 = vld [vmem:[%s734_s0 + $0x2d] sm:$0x4]   ;;  %vm95_vm6 = vcmask 1044483   ;;  %vm99_vm7 = vcmask 1045509  }
   0x9   :  { %v385_v28 = vld [vmem:[%s734_s0 + $0x183] ss:$-60 sm:%s68_s15]   ;;  %v143_v30 = vsel %vm42_vm4, %v398_v14, %v139_v26  ;;  %v66_v31 = vsel %vm33_vm2, %v384_v21, %v62_v27  ;;  %s440_s28 = smov 64   ;;  %vm103_vm8 = vcmask 1046534   ;;  %s159_s4 = smov 12  ;;  %vm3_vm9 = vcmask 261120  }
   0xa   :  { %v387_v29 = vld [vmem:[%s734_s0 + $0x4b] ss:$-60 sm:%s86_s18]   ;;  %144 = vrot.lane.b32.xlu1 %v143_v30, %s440_s28  ;;  %v71_v34 = vsel %vm38_vm3, %v385_v28, %v66_v31  ;;  %v399_v41 = vld [vmem:[%s734_s0 + $0x12] sm:$0x1]   ;;  %s168_s16 = smov 96  ;;  %s186_s17 = smov 3 }
   0xb   :  { %v389_v33 = vld [vmem:[%s734_s0 + $0x2b] ss:$12 sm:%s93_s23]   ;;  %v91_v35 = vsel %vm90_vm5, %v388_v32, %v387_v29  ;;  %v75_v38 = vsel %vm42_vm4, %v386_v25, %v71_v34  ;;  %v400_v42 = vld [vmem:[%s734_s0 + $0x31] sm:$0x2]   ;;  %v402_v46 = vld [vmem:[%s734_s0 + $0x32] sm:$0x10]  }
   0xc   :  { %v390_v36 = vld [vmem:[%s734_s0 + $0x1a] sm:$0x20]   ;;  %v96_v39 = vsel %vm95_vm6, %v389_v33, %v91_v35  ;;  %76 = vrot.lane.b32.xlu0 %v75_v38, %s439_s6  ;;  %v157_v44 = vsel %vm24_vm0, %v400_v42, %v399_v41  ;;  %v401_v45 = vld [vmem:[%s734_s0 + $0xca] ss:$-60 sm:%s159_s4]   ;;  %s193_s26 = smov 24  ;;  %s227_s30 = smov 12 }
   0xd   :  { %v391_v37 = vld [vmem:[%s734_s0 + $0x39] sm:$0x40]   ;;  %v100_v43 = vsel %vm99_vm7, %v390_v36, %v96_v39  ;;  %v162_v48 = vsel %vm29_vm1, %v401_v45, %v157_v44  ;;  %v403_v49 = vld [vmem:[%s734_s0 + $0x182] ss:$-60 sm:%s168_s16]   ;;  %s236_s5 = smov 96  ;;  %s268_s18 = smov 96 }
   0xe   :  { %v392_v40 = vld [vmem:[%s734_s0 + $0x58] sm:$0x80]   ;;  %v104_v47 = vsel %vm103_vm8, %v391_v37, %v100_v43  ;;  %v404_v50 = vld [vmem:[%s734_s0 + $0x33] sm:$0x80]   ;;  %v406_v51 = vld [vmem:[%s734_s0 + $0x2c] sm:$0x4]   ;;  %v166_v53 = vsel %vm33_vm2, %v402_v46, %v162_v48 }
   0xf   :  { %v108_v52 = vsel %vm42_vm4, %v392_v40, %v104_v47  ;;  %v405_v54 = vld [vmem:[%s734_s0 + $0x4a] ss:$-60 sm:%s186_s17]   ;;  %v171_v56 = vsel %vm38_vm3, %v403_v49, %v166_v53  ;;  %v411_v63 = vld [vmem:[%s734_s0 + $0x1] sm:$0x1]   ;;  %v414_v4 = vld [vmem:[%s734_s0 + $0x21] sm:$0x10]  }
  0x10   :  { %v408_v55 = vld [vmem:[%s734_s0 + $0x19] sm:$0x20]   ;;  %109 = vrot.lane.b32.xlu1 %v108_v52, %s439_s6  ;;  %v191_v57 = vsel %vm90_vm5, %v406_v51, %v405_v54  ;;  %v175_v60 = vsel %vm42_vm4, %v404_v50, %v171_v56  ;;  %v412_v0 = vld [vmem:[%s734_s0 + $0x20] sm:$0x2]   ;;  %s259_s17 = smov 12  ;;  %s293_s7 = smov 24 }
  0x11   :  { %v407_v58 = vld [vmem:[%s734_s0 + $0x2a] ss:$12 sm:%s193_s26]   ;;  %176 = vrot.lane.b32.xlu0 %v175_v60, %s440_s28  ;;  %v225_v2 = vsel %vm24_vm0, %v412_v0, %v411_v63  ;;  %v416_v8 = vld [vmem:[%s734_s0 + $0x22] sm:$0x80]   ;;  %s441_s14 = smov 32   ;;  %vm46_vm10 = vcmask 1048320  }
  0x12   :  { %v409_v59 = vld [vmem:[%s734_s0 + $0x38] sm:$0x40]   ;;  %v196_v61 = vsel %vm95_vm6, %v407_v58, %v191_v57  ;;  %v413_v3 = vld [vmem:[%s734_s0 + $0xb9] ss:$-60 sm:%s227_s30]   ;;  %v2_v31 = vld [vmem:[%s734_s0] ss:$4 sm:$0xff]  }
  0x13   :  { %v410_v62 = vld [vmem:[%s734_s0 + $0x57] sm:$0x80]   ;;  %v200_v1 = vsel %vm99_vm7, %v408_v55, %v196_v61  ;;  %v230_v6 = vsel %vm29_vm1, %v413_v3, %v225_v2  ;;  %v415_v7 = vld [vmem:[%s734_s0 + $0x171] ss:$-60 sm:%s236_s5]   ;;  %s286_s5 = smov 3  ;;  %vm146_vm11 = vcmask 785920  }
  0x14   :  { %v204_v5 = vsel %vm103_vm8, %v409_v59, %v200_v1  ;;  %v417_v9 = vld [vmem:[%s734_s0 + $0x11] sm:$0x1]   ;;  %v234_v11 = vsel %vm33_vm2, %v414_v4, %v230_v6  ;;  %v420_v14 = vld [vmem:[%s734_s0 + $0x31] sm:$0x10]   ;;  %v422_v18 = vld [vmem:[%s734_s0 + $0x32] sm:$0x80]  }
  0x15   :  { %v208_v10 = vsel %vm42_vm4, %v410_v62, %v204_v5  ;;  %v418_v12 = vld [vmem:[%s734_s0 + $0x30] sm:$0x2]   ;;  %v239_v15 = vsel %vm38_vm3, %v415_v7, %v234_v11  ;;  %v424_v22 = vld [vmem:[%s734_s0 + $0x2b] sm:$0x4]   ;;  %v426_v23 = vld [vmem:[%s734_s0 + $0x18] sm:$0x20]  }
  0x16   :  { %v419_v13 = vld [vmem:[%s734_s0 + $0xc9] ss:$-60 sm:%s259_s17]   ;;  %209 = vrot.lane.b32.xlu1 %v208_v10, %s440_s28  ;;  %v257_v16 = vsel %vm24_vm0, %v418_v12, %v417_v9  ;;  %v243_v19 = vsel %vm42_vm4, %v416_v8, %v239_v15  ;;  %v373_v32 = vld [vmem:[%s734_s0 + $0x20] ss:$4 sm:$0xff]   ;;  %vm246_vm12 = vcmask 523520  }
  0x17   :  { %v421_v17 = vld [vmem:[%s734_s0 + $0x181] ss:$-60 sm:%s268_s18]   ;;  %v262_v20 = vsel %vm29_vm1, %v419_v13, %v257_v16  ;;  %244 = vrot.lane.b32.xlu0 %v243_v19, %s441_s14  ;;  %4 = vst.msk [vmem:[#allocation0] ss:$8 sm:$0xf] %vm3_vm9, %v2_v31  }
  0x18   :  { %v423_v21 = vld [vmem:[%s734_s0 + $0x49] ss:$-60 sm:%s286_s5]   ;;  %v266_v24 = vsel %vm33_vm2, %v420_v14, %v262_v20  ;;  %10 = vst.msk [vmem:[#allocation0 + $0x1] ss:$8 sm:$0xf] %vm3_vm9, %v373_v32  }
  0x19   :  { %v291_v25 = vsel %vm90_vm5, %v424_v22, %v423_v21  ;;  %v425_v26 = vld [vmem:[%s734_s0 + $0x29] ss:$12 sm:%s293_s7]   ;;  %v271_v28 = vsel %vm38_vm3, %v421_v17, %v266_v24  ;;  %v374_v35 = vld [vmem:[%s734_s0 + $0x40] ss:$4 sm:$0xff]  }
  0x1a   :  { %v427_v27 = vld [vmem:[%s734_s0 + $0x37] sm:$0x40]   ;;  %v296_v29 = vsel %vm95_vm6, %v425_v26, %v291_v25  ;;  %v275_v33 = vsel %vm42_vm4, %v422_v18, %v271_v28  ;;  %5 = vst.msk [vmem:[#allocation0] ss:$8 sm:$0xf0] %vm3_vm9, %v2_v31  }
  0x1b   :  { %v428_v30 = vld [vmem:[%s734_s0 + $0x56] sm:$0x80]   ;;  %v300_v34 = vsel %vm99_vm7, %v426_v23, %v296_v29  ;;  %12 = vst.msk [vmem:[#allocation0 + $0x1] ss:$8 sm:$0xf0] %vm3_vm9, %v373_v32   ;;  %276 = vrot.lane.b32.xlu1 %v275_v33, %s441_s14 }
  0x1c   :  { %v304_v36 = vsel %vm103_vm8, %v427_v27, %v300_v34  ;;  %17 = vst.msk [vmem:[#allocation0 + $0x2] ss:$8 sm:$0xf] %vm3_vm9, %v374_v35   ;;  %19 = vst.msk [vmem:[#allocation0 + $0x2] ss:$8 sm:$0xf0] %vm3_vm9, %v374_v35  }
  0x1d   :  { %v308_v37 = vsel %vm42_vm4, %v428_v30, %v304_v36 }
  0x1e   :  { %309 = vrot.lane.b32.xlu0 %v308_v37, %s441_s14 }
  0x7a   :  { %v45_v38 = vpop.permute.xlu0 %44  }
  0x7b   :  { %47 = vst.msk [vmem:[#allocation0] sm:$0x7] %vm46_vm10, %v45_v38   ;;  %49 = vst.msk [vmem:[#allocation0 + $0x5] sm:$0x38] %vm46_vm10, %v45_v38  }
  0x7c   :  { %51 = vst.msk [vmem:[#allocation0 + $0xa] sm:$0xc0] %vm46_vm10, %v45_v38   ;;  %v145_v39 = vpop.permute.xlu1 %144  }
  0x7d   :  { %147 = vst.msk [vmem:[#allocation0] sm:$0x7] %vm146_vm11, %v145_v39   ;;  %149 = vst.msk [vmem:[#allocation0 + $0x5] sm:$0x38] %vm146_vm11, %v145_v39  }
  0x7e   :  { %151 = vst.msk [vmem:[#allocation0 + $0xa] sm:$0xc0] %vm146_vm11, %v145_v39   ;;  %v77_v40 = vpop.permute.xlu0 %76  }
  0x7f   :  { %80 = vst.msk [vmem:[#allocation0 + $0x20] sm:$0x7] %vm46_vm10, %v77_v40   ;;  %82 = vst.msk [vmem:[#allocation0 + $0x25] sm:$0x38] %vm46_vm10, %v77_v40  }
  0x80   :  { %84 = vst.msk [vmem:[#allocation0 + $0x2a] sm:$0xc0] %vm46_vm10, %v77_v40  }
  0x82   :  { %v110_v41 = vpop.permute.xlu1 %109  }
  0x83   :  { %113 = vst.msk [vmem:[#allocation0 + $0x12] ss:$6 sm:$0x3] %vm46_vm10, %v110_v41   ;;  %115 = vst.msk [vmem:[#allocation0 + $0x17] sm:$0xc] %vm46_vm10, %v110_v41   ;;  %v177_v42 = vpop.permute.xlu0 %176  }
  0x84   :  { %117 = vst.msk [vmem:[#allocation0 + $0x1a] ss:$6 sm:$0x30] %vm46_vm10, %v110_v41   ;;  %119 = vst.msk [vmem:[#allocation0 + $0x33] sm:$0xc0] %vm46_vm10, %v110_v41  }
  0x85   :  { %180 = vst.msk [vmem:[#allocation0 + $0x20] sm:$0x7] %vm146_vm11, %v177_v42   ;;  %182 = vst.msk [vmem:[#allocation0 + $0x25] sm:$0x38] %vm146_vm11, %v177_v42  }
  0x86   :  { %184 = vst.msk [vmem:[#allocation0 + $0x2a] sm:$0xc0] %vm146_vm11, %v177_v42  }
  0x88   :  { %v210_v43 = vpop.permute.xlu1 %209  }
  0x89   :  { %213 = vst.msk [vmem:[#allocation0 + $0x12] ss:$6 sm:$0x3] %vm146_vm11, %v210_v43   ;;  %215 = vst.msk [vmem:[#allocation0 + $0x17] sm:$0xc] %vm146_vm11, %v210_v43   ;;  %v245_v44 = vpop.permute.xlu0 %244  }
  0x8a   :  { %217 = vst.msk [vmem:[#allocation0 + $0x1a] ss:$6 sm:$0x30] %vm146_vm11, %v210_v43   ;;  %219 = vst.msk [vmem:[#allocation0 + $0x33] sm:$0xc0] %vm146_vm11, %v210_v43  }
  0x8b   :  { %247 = vst.msk [vmem:[#allocation0] sm:$0x7] %vm246_vm12, %v245_v44   ;;  %249 = vst.msk [vmem:[#allocation0 + $0x5] sm:$0x38] %vm246_vm12, %v245_v44  }
  0x8c   :  { %251 = vst.msk [vmem:[#allocation0 + $0xa] sm:$0xc0] %vm246_vm12, %v245_v44  }
  0x8d   :  { %v277_v45 = vpop.permute.xlu1 %276  }
  0x8e   :  { %280 = vst.msk [vmem:[#allocation0 + $0x20] sm:$0x7] %vm246_vm12, %v277_v45   ;;  %282 = vst.msk [vmem:[#allocation0 + $0x25] sm:$0x38] %vm246_vm12, %v277_v45  }
  0x8f   :  { %284 = vst.msk [vmem:[#allocation0 + $0x2a] sm:$0xc0] %vm246_vm12, %v277_v45  }
  0x90   :  { %v310_v46 = vpop.permute.xlu0 %309  }
  0x91   :  { %313 = vst.msk [vmem:[#allocation0 + $0x12] ss:$6 sm:$0x3] %vm246_vm12, %v310_v46   ;;  %315 = vst.msk [vmem:[#allocation0 + $0x17] sm:$0xc] %vm246_vm12, %v310_v46  }
  0x92   :  { %317 = vst.msk [vmem:[#allocation0 + $0x1a] ss:$6 sm:$0x30] %vm246_vm12, %v310_v46   ;;  %319 = vst.msk [vmem:[#allocation0 + $0x33] sm:$0xc0] %vm246_vm12, %v310_v46  }
  0x93   :  { %v323_v47 = vld [vmem:[#allocation0] sm:$0xf]  ;;  %v327_v48 = vld [vmem:[#allocation0 + $0x8] sm:$0xf] }
  0x94   :  { %325 = vst [vmem:[%s735_s1] sm:$0xf] %v323_v47  ;;  %429 = vst [vmem:[%s735_s1 + $0x4] sm:$0xf] %v327_v48 }
  0x95   :  { %v344_v49 = vld [vmem:[#allocation0 + $0x20] sm:$0xf]  ;;  %v350_v50 = vld [vmem:[#allocation0 + $0x28] sm:$0xf] }
  0x96   :  { %432 = vst [vmem:[%s735_s1 + $0x10] sm:$0xf] %v344_v49  ;;  %433 = vst [vmem:[%s735_s1 + $0x14] sm:$0xf] %v350_v50 }
  0x98   :  { %v338_v51 = vld [vmem:[#allocation0 + $0x18] sm:$0xf]  ;;  %v332_v53 = vld [vmem:[#allocation0 + $0x10] sm:$0xf] }
  0x99   :  { %v362_v52 = vld [vmem:[#allocation0 + $0x38] sm:$0xf]  ;;  %431 = vst [vmem:[%s735_s1 + $0xc] sm:$0xf] %v338_v51  ;;  %430 = vst [vmem:[%s735_s1 + $0x8] sm:$0xf] %v332_v53 }
  0x9a   :  { %435 = vst [vmem:[%s735_s1 + $0x1c] sm:$0xf] %v362_v52  ;;  %v356_v54 = vld [vmem:[#allocation0 + $0x30] sm:$0xf] }
  0x9b   :  { %434 = vst [vmem:[%s735_s1 + $0x18] sm:$0xf] %v356_v54 }

// kernel: len_forward.1
= control target key start
LH: loop header
LB: loop body
LE: loop exit
PB: predicated region body
PF: predicated region fallthrough
CT: control target
= control target key end

     0   :  { %s3119_s17 = smov 96   ;;  %s3120_s20 = smov 64   ;;  %v3121_v8 = vmov 0.0   ;;  %s4250_s0 = inlined_call_operand.vmem [shape: f32[3,1024], index: 0, kind: input, shape index: {}]   ;;  %s4251_s1 = inlined_call_operand.vmem [shape: f32[40,20], index: 1, kind: input, shape index: {}]   ;;  %s4252_s2 = inlined_call_operand.vmem [shape: f32[6,1], index: 2, kind: input, shape index: {}]   ;;  %s4253_s3 = inlined_call_operand.vmem [shape: f32[80,40], index: 3, kind: input, shape index: {}]   ;;  %s4254_s4 = inlined_call_operand.vmem [shape: f32[16,1], index: 4, kind: input, shape index: {}]   ;;  %s4255_s5 = inlined_call_operand.vmem [shape: f32[27,14], index: 5, kind: input, shape index: {}]   ;;  %s4256_s6 = inlined_call_operand.vmem [shape: f32[121,25], index: 6, kind: input, shape index: {}]   ;;  %s4257_s7 = inlined_call_operand.vmem [shape: bf16[484,120], index: 7, kind: input, shape index: {}]   ;;  %s4258_s8 = inlined_call_operand.vmem [shape: f32[1,120], index: 8, kind: input, shape index: {}]   ;;  %s4259_s9 = inlined_call_operand.vmem [shape: bf16[120,84], index: 9, kind: input, shape index: {}]   ;;  %s4260_s10 = inlined_call_operand.vmem [shape: f32[1,84], index: 10, kind: input, shape index: {}]   ;;  %s4261_s11 = inlined_call_operand.vmem [shape: bf16[84,2], index: 11, kind: input, shape index: {}]   ;;  %s4262_s12 = inlined_call_operand.vmem [shape: f32[1,2], index: 12, kind: input, shape index: {}]   ;;  %s4263_s13 = inlined_call_operand.vmem [shape: f32[1,84], index: 13, kind: input, shape index: {}]   ;;  %s4264_s14 = inlined_call_operand.hbm [shape: f32[1,2], index: 14, kind: output, shape index: {}]  }
   0x1   :  { %v90_v0 = vld [vmem:[%s4250_s0] sm:$0x77]  ;;  %v3247_v3 = vld [vmem:[%s4250_s0 + $0x8] sm:$0x77]  ;;  %50 = vst [vmem:[#allocation2 + $0x8] sm:$0xff] %v3121_v8  ;;  %49 = vst [vmem:[#allocation2] sm:$0xff] %v3121_v8  ;;  %388 = vmatprep.mubr.f32.mxu0 %v3121_v8  ;;  %483 = vmatprep.mubr.f32.mxu1 %v3121_v8 }
   0x2   :  { %v140_v1 = vld [vmem:[%s4250_s0] sm:$0x77]  ;;  %104 = vrot.lane.b32.xlu0 %v90_v0, %s3119_s17  ;;  %v99_v4 = vcombine.low %v3247_v3, %v3247_v3  ;;  %v3255_v5 = vld [vmem:[%s4250_s0 + $0x8] sm:$0x77]  ;;  %51 = vst [vmem:[#allocation2 + $0x10] sm:$0xff] %v3121_v8  ;;  %52 = vst [vmem:[#allocation2 + $0x18] sm:$0xff] %v3121_v8  ;;  %v98_v16 = vcombine.low %v90_v0, %v90_v0 }
   0x3   :  { %v148_v2 = vcombine.high %v140_v1, %v140_v1  ;;  %v190_v6 = vld [vmem:[%s4250_s0] sm:$0x77]  ;;  %v3263_v7 = vld [vmem:[%s4250_s0 + $0x8] sm:$0x77]  ;;  %53 = vst [vmem:[#allocation2 + $0x20] sm:$0xff] %v3121_v8  ;;  %54 = vst [vmem:[#allocation2 + $0x28] sm:$0xff] %v3121_v8  ;;  %v149_v21 = vcombine.high %v3255_v5, %v3255_v5 }
   0x4   :  { %55 = vst [vmem:[#allocation2 + $0x30] sm:$0xff] %v3121_v8  ;;  %56 = vst [vmem:[#allocation2 + $0x38] sm:$0xff] %v3121_v8  ;;  %v70_v9 = vld [vmem:[%s4250_s0] sm:$0x77]  ;;  %v71_v10 = vld [vmem:[%s4250_s0 + $0x8] sm:$0x77]  ;;  %v199_v12 = vcombine.low %v3263_v7, %v3263_v7  ;;  %v198_v18 = vcombine.low %v190_v6, %v190_v6 }
   0x5   :  { %154 = vrot.lane.b32.xlu1 %v148_v2, %s3120_s20  ;;  %57 = vst [vmem:[#allocation2 + $0x40] sm:$0xff] %v3121_v8  ;;  %58 = vst [vmem:[#allocation2 + $0x48] sm:$0xff] %v3121_v8  ;;  %v77_v11 = vcombine.high %v70_v9, %v70_v9  ;;  %v78_v13 = vcombine.high %v71_v10, %v71_v10  ;;  %v240_v14 = vld [vmem:[%s4250_s0 + $0x4] sm:$0x77]  ;;  %s3122_s18 = smov 32  }
   0x6   :  { %106 = vrot.lane.b32.xlu0 %v99_v4, %s3119_s17  ;;  %59 = vst [vmem:[#allocation2 + $0x50] sm:$0xff] %v3121_v8  ;;  %60 = vst [vmem:[#allocation2 + $0x58] sm:$0xff] %v3121_v8  ;;  %v247_v15 = vcombine.high %v240_v14, %v240_v14  ;;  %v92_v17 = vld [vmem:[%s4250_s0 + $0x10] sm:$0x77]  ;;  %v93_v27 = vld [vmem:[%s4250_s0 + $0x18] sm:$0x77] }
   0x7   :  { %61 = vst [vmem:[#allocation2 + $0x60] sm:$0xff] %v3121_v8  ;;  %62 = vst [vmem:[#allocation2 + $0x68] sm:$0xff] %v3121_v8  ;;  %v100_v19 = vcombine.low %v92_v17, %v92_v17  ;;  %v72_v20 = vld [vmem:[%s4250_s0 + $0x10] sm:$0x77]  ;;  %v101_v29 = vcombine.low %v93_v27, %v93_v27  ;;  %v73_v30 = vld [vmem:[%s4250_s0 + $0x18] sm:$0x7] }
   0x8   :  { %63 = vst [vmem:[#allocation2 + $0x70] sm:$0xf] %v3121_v8  ;;  %64 = vst [vmem:[#allocation2 + $0x78] sm:$0xf] %v3121_v8  ;;  %v79_v22 = vcombine.high %v72_v20, %v72_v20  ;;  %v142_v23 = vld [vmem:[%s4250_s0 + $0x10] sm:$0x77] }
   0x9   :  { %65 = vst [vmem:[#allocation2 + $0x80] sm:$0xf] %v3121_v8  ;;  %66 = vst [vmem:[#allocation2 + $0x88] sm:$0xf] %v3121_v8  ;;  %156 = vrot.lane.b32.xlu1 %v3255_v5, %s3120_s20  ;;  %v192_v24 = vld [vmem:[%s4250_s0 + $0x10] sm:$0x77]  ;;  %v150_v31 = vcombine.high %v142_v23, %v142_v23 }
   0xa   :  { %67 = vst [vmem:[#allocation2 + $0x90] sm:$0xf] %v3121_v8  ;;  %68 = vst [vmem:[#allocation2 + $0x98] sm:$0xf] %v3121_v8  ;;  %204 = vrot.lane.b32.xlu0 %v190_v6, %s3122_s18  ;;  %v241_v25 = vld [vmem:[%s4250_s0 + $0xc] sm:$0x77]  ;;  %v200_v28 = vcombine.low %v192_v24, %v192_v24 }
   0xb   :  { %69 = vst [vmem:[#allocation2 + $0xa0] sm:$0xf] %v3121_v8  ;;  %1307 = vst [vmem:[#allocation3] sm:$0xff] %v3121_v8  ;;  %v248_v26 = vcombine.high %v241_v25, %v241_v25  ;;  %v143_v32 = vld [vmem:[%s4250_s0 + $0x18] sm:$0x77] }
   0xc   :  { %1310 = vst [vmem:[#allocation3 + $0x10] sm:$0xff] %v3121_v8  ;;  %1312 = vst [vmem:[#allocation3 + $0x20] sm:$0xff] %v3121_v8  ;;  %v193_v33 = vld [vmem:[%s4250_s0 + $0x18] sm:$0x77] }
   0xd   :  { %1314 = vst [vmem:[#allocation3 + $0x30] sm:$0xff] %v3121_v8  ;;  %1316 = vst [vmem:[#allocation3 + $0x40] sm:$0xff] %v3121_v8  ;;  %206 = vrot.lane.b32.xlu1 %v199_v12, %s3122_s18  ;;  %v242_v34 = vld [vmem:[%s4250_s0 + $0x14] sm:$0x77]  ;;  %v201_v36 = vcombine.low %v193_v33, %v193_v33 }
   0xe   :  { %83 = vst [vmem:[#allocation2] sm:$0x7] %v70_v9  ;;  %85 = vst [vmem:[#allocation2 + $0x10] sm:$0x7] %v71_v10  ;;  %102 = vrot.lane.b32.xlu0 %v98_v16, %s3119_s17  ;;  %v249_v35 = vcombine.high %v242_v34, %v242_v34 }
   0xf   :  { %84 = vst [vmem:[#allocation2 + $0x8] sm:$0x7] %v77_v11  ;;  %253 = vst [vmem:[#allocation2 + $0x70] sm:$0x7] %v240_v14 }
  0x10   :  { %86 = vst [vmem:[#allocation2 + $0x18] sm:$0x7] %v78_v13  ;;  %254 = vst [vmem:[#allocation2 + $0x78] sm:$0x7] %v247_v15 }
  0x11   :  { %152 = vrot.lane.b32.xlu1 %v140_v1, %s3120_s20  ;;  %87 = vst [vmem:[#allocation2 + $0x20] sm:$0x7] %v72_v20  ;;  %88 = vst [vmem:[#allocation2 + $0x28] sm:$0x7] %v79_v22 }
  0x12   :  { %202 = vrot.lane.b32.xlu0 %v198_v18, %s3122_s18  ;;  %255 = vst [vmem:[#allocation2 + $0x80] sm:$0x7] %v241_v25  ;;  %256 = vst [vmem:[#allocation2 + $0x88] sm:$0x7] %v248_v26 }
  0x13   :  { %89 = vst [vmem:[#allocation2 + $0x30] sm:$0x7] %v73_v30  ;;  %257 = vst [vmem:[#allocation2 + $0x90] sm:$0x7] %v242_v34 }
  0x14   :  { %258 = vst [vmem:[#allocation2 + $0x98] sm:$0x7] %v249_v35 }
  0x15   :  { %108 = vrot.lane.b32.xlu1 %v3247_v3, %s3119_s17 }
  0x16   :  { %110 = vrot.lane.b32.xlu0 %v100_v19, %s3119_s17 }
  0x19   :  { %158 = vrot.lane.b32.xlu1 %v149_v21, %s3120_s20 }
  0x1a   :  { %160 = vrot.lane.b32.xlu0 %v142_v23, %s3120_s20 }
  0x1d   :  { %208 = vrot.lane.b32.xlu1 %v3263_v7, %s3122_s18 }
  0x1e   :  { %210 = vrot.lane.b32.xlu0 %v200_v28, %s3122_s18 }
  0x21   :  { %112 = vrot.lane.b32.xlu1 %v92_v17, %s3119_s17 }
  0x22   :  { %114 = vrot.lane.b32.xlu0 %v101_v29, %s3119_s17 }
  0x25   :  { %162 = vrot.lane.b32.xlu1 %v150_v31, %s3120_s20 }
  0x26   :  { %164 = vrot.lane.b32.xlu0 %v143_v32, %s3120_s20 }
  0x29   :  { %212 = vrot.lane.b32.xlu1 %v192_v24, %s3122_s18 }
  0x2a   :  { %19 = vsyncpa [#allocation8], 0  ;;  %v151_v37 = vcombine.high %v143_v32, %v143_v32  ;;  %214 = vrot.lane.b32.xlu0 %v201_v36, %s3122_s18  ;;  %v243_v38 = vld [vmem:[%s4250_s0 + $0x1c] sm:$0x7]  ;;  %v824_v39 = vld [vmem:[%s4252_s2] sm:$0x3f] }
  0x2b   :  { %259 = vst [vmem:[#allocation2 + $0xa0] sm:$0x7] %v243_v38  ;;  %v3123_v40 = vmov 0   ;;  %vm118_vm0 = vcmask 785408   ;;  %vm168_vm1 = vcmask 523264   ;;  %vm218_vm2 = vcmask 261120  }
  0x2c   :  { %3029 = vset.pattern.permute.xlu0 %v3123_v40  ;;  %3030 = vset.pattern.permute.xlu1 %v3123_v40  ;;  %v280_v7 = vld [vmem:[#allocation2 + $0x78] sm:$0xf]  ;;  %vm4266_vm3 = vcmask 1043456   ;;  %v279_v12 = vld [vmem:[#allocation2 + $0x70] sm:$0xf]  ;;  %v3385_v14 = vld [vmem:[%s4251_s1] sm:$0xff] }
  0x2d   :  { %116 = vrot.lane.b32.xlu1 %v93_v27, %s3119_s17  ;;  %vm286_vm4 = vcmask 162816   ;;  %v3396_v19 = vld [vmem:[%s4251_s1 + $0x8] sm:$0xff]  ;;  %v3406_v28 = vld [vmem:[%s4251_s1 + $0x10] sm:$0xff]  ;;  %v3417_v36 = vld [vmem:[%s4251_s1 + $0x18] sm:$0xff]  ;;  %vm4267_vm5 = vmmov 0   ;;  %s3127_s25 = smov 124  }
  0x2e   :  { %166 = vrot.lane.b32.xlu0 %v151_v37, %s3120_s20  ;;  %v282_v32 = vld [vmem:[#allocation2 + $0x88] sm:$0xf]  ;;  %v281_v37 = vld [vmem:[#allocation2 + $0x80] sm:$0xf]  ;;  %vm720_vm6 = vcmask 1039360   ;;  %s3128_s26 = smov 126  }
  0x2f   :  { %vm803_vm7 = vcmask 1031168   ;;  %vm858_vm8 = vcmask 1014784   ;;  %vm968_vm9 = vcmask 220160   ;;  %vm1086_vm10 = vcmask 1042432   ;;  %s3133_s16 = smov 70   ;;  %s3134_s19 = smov 56  }
  0x30   :  { %969 = vst.msk [vmem:[#allocation4] sm:$0xff] %vm968_vm9, %v3121_v8  ;;  %970 = vst.msk [vmem:[#allocation4 + $0x8] sm:$0xff] %vm968_vm9, %v3121_v8  ;;  %vm3129_vm11 = vmmov 1   ;;  %vm983_vm13 = vcmask 218112   ;;  %vm1225_vm14 = vcmask 111616   ;;  %s3135_s21 = smov 98  }
  0x31   :  { %216 = vrot.lane.b32.xlu1 %v193_v33, %s3122_s18  ;;  %971 = vst.msk [vmem:[#allocation4 + $0x10] sm:$0xff] %vm968_vm9, %v3121_v8  ;;  %972 = vst.msk [vmem:[#allocation4 + $0x18] sm:$0xff] %vm968_vm9, %v3121_v8  ;;  %s3136_s22 = smov 84   ;;  %s3137_s23 = smov 112   ;;  %vm1308_vm15 = vcmask 97280  }
  0x32   :  { %827 = vperm.xlu0 %3029, %v824_v39   ;;  %973 = vst.msk [vmem:[#allocation4 + $0x20] sm:$0xff] %vm968_vm9, %v3121_v8  ;;  %974 = vst.msk [vmem:[#allocation4 + $0x28] sm:$0xff] %vm968_vm9, %v3121_v8  ;;  %s3138_s24 = smov 26   ;;  %s3139_s27 = smov 12  }
  0x33   :  { %975 = vst.msk [vmem:[#allocation4 + $0x30] sm:$0xff] %vm968_vm9, %v3121_v8  ;;  %976 = vst.msk [vmem:[#allocation4 + $0x38] sm:$0xff] %vm968_vm9, %v3121_v8  ;;  %s3140_s28 = smov 54   ;;  %s3141_s29 = smov 40  }
  0x34   :  { %977 = vst.msk [vmem:[#allocation4 + $0x40] sm:$0xff] %vm968_vm9, %v3121_v8  ;;  %vm2939_vm12 = vmpackc.low %vm1086_vm10, %vm3129_vm11  ;;  %vm1281_vm10 = vcmask 95232   ;;  %s3142_s30 = smov 114   ;;  %s3143_s0 = smov 100  }
  0x35   :  { %s3144_s2 = smov 86   ;;  %s3145_s18 = smov 72  }
  0x74   :  { %v105_v41 = vpop.permute.xlu0 %104 }
  0x77   :  { %v155_v42 = vpop.permute.xlu1 %154 }
  0x78   :  { %v107_v43 = vpop.permute.xlu0 %106 }
  0x79   :  { %v120_v44 = vsel %vm118_vm0, %v105_v41, %v107_v43 }
  0x7a   :  { %134 = vst [vmem:[#allocation2 + $0x8] sm:$0x70] %v120_v44 }
  0x7b   :  { %v157_v45 = vpop.permute.xlu1 %156 }
  0x7c   :  { %v170_v46 = vsel %vm168_vm1, %v155_v42, %v157_v45  ;;  %v205_v47 = vpop.permute.xlu0 %204 }
  0x7d   :  { %184 = vst [vmem:[#allocation2 + $0x40] sm:$0x7] %v170_v46 }
  0x7f   :  { %v207_v48 = vpop.permute.xlu1 %206 }
  0x80   :  { %v220_v49 = vsel %vm218_vm2, %v205_v47, %v207_v48  ;;  %v103_v50 = vpop.permute.xlu0 %102 }
  0x81   :  { %234 = vst [vmem:[#allocation2 + $0x40] sm:$0x70] %v220_v49  ;;  %v119_v51 = vsel %vm118_vm0, %v103_v50, %v105_v41  ;;  %v266_v58 = vld [vmem:[#allocation2 + $0x8] sm:$0xff] }
  0x82   :  { %133 = vst [vmem:[#allocation2] sm:$0x70] %v119_v51 }
  0x83   :  { %v153_v52 = vpop.permute.xlu1 %152 }
  0x84   :  { %v169_v53 = vsel %vm168_vm1, %v153_v52, %v155_v42  ;;  %v203_v54 = vpop.permute.xlu0 %202  ;;  %v284_v52 = vld [vmem:[#allocation2 + $0x98] sm:$0xf] }
  0x85   :  { %183 = vst [vmem:[#allocation2 + $0x38] sm:$0x7] %v169_v53  ;;  %v219_v55 = vsel %vm218_vm2, %v203_v54, %v205_v47  ;;  %v283_v53 = vld [vmem:[#allocation2 + $0x90] sm:$0xf] }
  0x86   :  { %233 = vst [vmem:[#allocation2 + $0x38] sm:$0x70] %v219_v55 }
  0x87   :  { %v109_v56 = vpop.permute.xlu1 %108 }
  0x88   :  { %v121_v57 = vsel %vm118_vm0, %v107_v43, %v109_v56  ;;  %v273_v59 = vld [vmem:[#allocation2 + $0x40] sm:$0xff]  ;;  %v111_v60 = vpop.permute.xlu0 %110 }
  0x89   :  { %135 = vst [vmem:[#allocation2 + $0x10] sm:$0x70] %v121_v57  ;;  %v2919_v61 = vpack.c.bf16 %v273_v59, %v266_v58  ;;  %v122_v62 = vsel %vm118_vm0, %v109_v56, %v111_v60  ;;  %v265_v3 = vld [vmem:[#allocation2] sm:$0xff] }
  0x8a   :  { %136 = vst [vmem:[#allocation2 + $0x18] sm:$0x70] %v122_v62  ;;  %v264_v43 = vld [vmem:[%s4251_s1 + $0x20] sm:$0xff]  ;;  %s3126_s1 = smov 127  }
  0x8b   :  { %v159_v63 = vpop.permute.xlu1 %158  ;;  %2920 = vmatprep.subr.bf16.mxu0 %v2919_v61  ;;  %v285_v57 = vld [vmem:[#allocation2 + $0xa0] sm:$0xf] }
  0x8c   :  { %v171_v0 = vsel %vm168_vm1, %v157_v45, %v159_v63  ;;  %v161_v1 = vpop.permute.xlu0 %160  ;;  %v3124_v45 = vmov 0.0|0.0  }
  0x8d   :  { %185 = vst [vmem:[#allocation2 + $0x48] sm:$0x7] %v171_v0  ;;  %v172_v2 = vsel %vm168_vm1, %v159_v63, %v161_v1  ;;  %v272_v4 = vld [vmem:[#allocation2 + $0x38] sm:$0xff] }
  0x8e   :  { %186 = vst [vmem:[#allocation2 + $0x50] sm:$0x7] %v172_v2  ;;  %v2921_v6 = vpack.c.bf16 %v272_v4, %v265_v3 }
  0x8f   :  { %v209_v5 = vpop.permute.xlu1 %208 }
  0x90   :  { %v221_v9 = vsel %vm218_vm2, %v207_v48, %v209_v5  ;;  %v211_v10 = vpop.permute.xlu0 %210  ;;  %2922 = vmatpush1.bf16.msra.mxu0 %v2921_v6  ;;  %v267_v29 = vld [vmem:[#allocation2 + $0x10] sm:$0xff] }
  0x91   :  { %235 = vst [vmem:[#allocation2 + $0x48] sm:$0x70] %v221_v9  ;;  %v222_v11 = vsel %vm218_vm2, %v209_v5, %v211_v10  ;;  %2613 = vmatprep.subr.msk.mxu0 %vm4266_vm3, %v280_v7  ;;  %v268_v24 = vld [vmem:[#allocation2 + $0x18] sm:$0xff] }
  0x92   :  { %236 = vst [vmem:[#allocation2 + $0x50] sm:$0x70] %v222_v11 }
  0x93   :  { %v113_v13 = vpop.permute.xlu1 %112 }
  0x94   :  { %v123_v15 = vsel %vm118_vm0, %v111_v60, %v113_v13  ;;  %v115_v16 = vpop.permute.xlu0 %114  ;;  %2614 = vmatpush1.msk.msra.mxu0 %vm4266_vm3, %v279_v12 }
  0x95   :  { %137 = vst [vmem:[#allocation2 + $0x20] sm:$0x70] %v123_v15  ;;  %v124_v17 = vsel %vm118_vm0, %v113_v13, %v115_v16  ;;  %2615 = vmatmul.mubr.msk.f32.vlgmr.msra.gmra.mrb[0].mxu0 %vm286_vm4, %v3385_v14 }
  0x96   :  { %138 = vst [vmem:[#allocation2 + $0x28] sm:$0x70] %v124_v17  ;;  %394 = vmatprep.mubr.f32.mxu0 %v3121_v8 }
  0x97   :  { %v163_v18 = vpop.permute.xlu1 %162 }
  0x98   :  { %v173_v20 = vsel %vm168_vm1, %v161_v1, %v163_v18  ;;  %v165_v21 = vpop.permute.xlu0 %164  ;;  %v274_v22 = vld [vmem:[#allocation2 + $0x48] sm:$0xff] }
  0x99   :  { %187 = vst [vmem:[#allocation2 + $0x58] sm:$0x7] %v173_v20  ;;  %v174_v23 = vsel %vm168_vm1, %v163_v18, %v165_v21  ;;  %2616 = vmatmul.mubr.msk.f32.gmra.mrb[2].mxu0 %vm286_vm4, %v3396_v19  ;;  %v275_v25 = vld [vmem:[#allocation2 + $0x50] sm:$0xff]  ;;  %v2925_v31 = vpack.c.bf16 %v274_v22, %v267_v29 }
  0x9a   :  { %188 = vst [vmem:[#allocation2 + $0x60] sm:$0x7] %v174_v23  ;;  %400 = vmatprep.mubr.f32.mxu0 %v3121_v8  ;;  %v2923_v27 = vpack.c.bf16 %v275_v25, %v268_v24 }
  0x9b   :  { %v213_v26 = vpop.permute.xlu1 %212 }
  0x9c   :  { %v223_v30 = vsel %vm218_vm2, %v211_v10, %v213_v26  ;;  %v215_v33 = vpop.permute.xlu0 %214  ;;  %2924 = vmatprep.subr.bf16.mxu1 %v2923_v27  ;;  %v269_v50 = vld [vmem:[#allocation2 + $0x20] sm:$0xff] }
  0x9d   :  { %237 = vst [vmem:[#allocation2 + $0x58] sm:$0x70] %v223_v30  ;;  %v224_v34 = vsel %vm218_vm2, %v213_v26, %v215_v33  ;;  %2617 = vmatmul.mubr.msk.f32.gmra.mrb[4].mxu0 %vm286_vm4, %v3406_v28  ;;  %2926 = vmatpush1.bf16.msra.mxu1 %v2925_v31  ;;  %v270_v47 = vld [vmem:[#allocation2 + $0x28] sm:$0xff] }
  0x9e   :  { %238 = vst [vmem:[#allocation2 + $0x60] sm:$0x70] %v224_v34  ;;  %406 = vmatprep.mubr.f32.mxu0 %v3121_v8  ;;  %2620 = vmatprep.subr.msk.mxu1 %vm4266_vm3, %v282_v32 }
  0x9f   :  { %v117_v35 = vpop.permute.xlu1 %116 }
  0xa0   :  { %v125_v38 = vsel %vm118_vm0, %v115_v16, %v117_v35  ;;  %v167_v39 = vpop.permute.xlu0 %166 }
  0xa1   :  { %139 = vst [vmem:[#allocation2 + $0x30] sm:$0x70] %v125_v38  ;;  %v175_v41 = vsel %vm168_vm1, %v165_v21, %v167_v39  ;;  %2618 = vmatmul.mubr.msk.f32.gmra.mrb[6].mxu0 %vm286_vm4, %v3417_v36  ;;  %2621 = vmatpush1.msk.msra.mxu1 %vm4266_vm3, %v281_v37  ;;  %vm1237_vm1 = vcmask 341216  }
  0xa2   :  { %189 = vst [vmem:[#allocation2 + $0x68] sm:$0x7] %v175_v41  ;;  %2622 = vmatmul.mubr.msk.f32.vlgmr.msra.gmra.mrb[0].mxu1 %vm286_vm4, %v3385_v14  ;;  %412 = vmatprep.mubr.f32.mxu0 %v3121_v8 }
  0xa3   :  { %v217_v42 = vpop.permute.xlu1 %216  ;;  %489 = vmatprep.mubr.f32.mxu1 %v3121_v8  ;;  %2931 = vmatprep.subr.bf16.mxu1 %v3124_v45 }
  0xa4   :  { %v225_v44 = vsel %vm218_vm2, %v215_v33, %v217_v42  ;;  %v276_v46 = vld [vmem:[#allocation2 + $0x58] sm:$0xff]  ;;  %vm1243_vm2 = vcmask 456016  }
  0xa5   :  { %239 = vst [vmem:[#allocation2 + $0x68] sm:$0x70] %v225_v44  ;;  %v277_v48 = vld [vmem:[#allocation2 + $0x60] sm:$0xff]  ;;  %2619 = vmatmul.mubr.msk.f32.gmra.mrb[8].mxu0 %vm286_vm4, %v264_v43  ;;  %v2929_v51 = vpack.c.bf16 %v276_v46, %v269_v50 }
  0xa6   :  { %2623 = vmatmul.mubr.msk.f32.gmra.mrb[2].mxu1 %vm286_vm4, %v3396_v19  ;;  %v2927_v49 = vpack.c.bf16 %v277_v48, %v270_v47  ;;  %578 = vmatprep.mubr.f32.mxu0 %v3121_v8 }
  0xa7   :  { %495 = vmatprep.mubr.f32.mxu1 %v3121_v8 }
  0xa8   :  { %2928 = vmatprep.subr.bf16.mxu0 %v2927_v49  ;;  %v271_v54 = vld [vmem:[#allocation2 + $0x30] sm:$0xff] }
  0xa9   :  { %2930 = vmatpush1.bf16.msra.mxu0 %v2929_v51 }
  0xaa   :  { %2624 = vmatmul.mubr.msk.f32.gmra.mrb[4].mxu1 %vm286_vm4, %v3406_v28  ;;  %2627 = vmatprep.subr.msk.mxu0 %vm4266_vm3, %v284_v52 }
  0xab   :  { %501 = vmatprep.mubr.f32.mxu1 %v3121_v8 }
  0xac   :  { %v278_v55 = vld [vmem:[#allocation2 + $0x68] sm:$0xff] }
  0xad   :  { %v2932_v56 = vpack.c.bf16 %v278_v55, %v271_v54  ;;  %2628 = vmatpush1.msk.msra.mxu0 %vm4266_vm3, %v283_v53 }
  0xae   :  { %2625 = vmatmul.mubr.msk.f32.gmra.mrb[6].mxu1 %vm286_vm4, %v3417_v36  ;;  %2629 = vmatmul.mubr.msk.f32.vlgmr.msra.gmra.mrb[10].mxu0 %vm286_vm4, %v3385_v14 }
  0xaf   :  { %2933 = vmatpush3.bf16.msra.mxu1 %v2932_v56  ;;  %507 = vmatprep.mubr.f32.mxu1 %v3121_v8 }
  0xb0   :  { %584 = vmatprep.mubr.f32.mxu0 %v3121_v8  ;;  %2802 = vmatprep.subr.mxu1 %v3121_v8 }
  0xb1   :  { %v828_v34 = vpop.permute.xlu0 %827 }
  0xb2   :  { %2626 = vmatmul.mubr.msk.f32.gmra.mrb[8].mxu1 %vm286_vm4, %v264_v43  ;;  %2630 = vmatmul.mubr.msk.f32.gmra.mrb[12].mxu0 %vm286_vm4, %v3396_v19 }
  0xb3   :  { %590 = vmatprep.mubr.f32.mxu0 %v3121_v8  ;;  %2803 = vmatpush3.msk.msra.mxu1 %vm4266_vm3, %v285_v57 }
  0xb4   :  { %2804 = vmatprep.mubr.msk.f32.mxu1 %vm4267_vm5, %v3121_v8 }
  0xb6   :  { %2631 = vmatmul.mubr.msk.f32.gmra.mrb[14].mxu0 %vm286_vm4, %v3406_v28  ;;  %2805 = vmatmul.mubr.msk.f32.vlgmr.msra.gmra.mrb[10].mxu1 %vm286_vm4, %v3385_v14 }
  0xb7   :  { %596 = vmatprep.mubr.f32.mxu0 %v3121_v8  ;;  %2807 = vmatprep.mubr.msk.f32.mxu1 %vm4267_vm5, %v3121_v8 }
  0xba   :  { %2632 = vmatmul.mubr.msk.f32.gmra.mrb[16].mxu0 %vm286_vm4, %v3417_v36  ;;  %2808 = vmatmul.mubr.msk.f32.gmra.mrb[12].mxu1 %vm286_vm4, %v3396_v19 }
  0xbb   :  { %2810 = vmatprep.mubr.msk.f32.mxu1 %vm4267_vm5, %v3121_v8  ;;  %602 = vmatprep.mubr.f32.mxu0 %v3121_v8 }
  0xbe   :  { %2811 = vmatmul.mubr.msk.f32.gmra.mrb[14].mxu1 %vm286_vm4, %v3406_v28  ;;  %2633 = vmatmul.mubr.msk.f32.gmra.mrb[18].mxu0 %vm286_vm4, %v264_v43 }
  0xbf   :  { %2813 = vmatprep.mubr.msk.f32.mxu1 %vm4267_vm5, %v3121_v8 }
  0xc2   :  { %2814 = vmatmul.mubr.msk.f32.gmra.mrb[16].mxu1 %vm286_vm4, %v3417_v36 }
  0xc3   :  { %2816 = vmatprep.mubr.msk.f32.mxu1 %vm4267_vm5, %v3121_v8 }
  0xc6   :  { %2817 = vmatmul.mubr.msk.f32.gmra.mrb[18].mxu1 %vm286_vm4, %v264_v43  ;;  %vm1249_vm4 = vcmask 570816  }
  0xc7   :  { %1493 = vmatprep.mubr.f32.mxu1 %v3121_v8 }
 0x168   :  { %v3481_v58 = vpop.f32.mrb[0].mxu0 }
 0x169   :  { %v3483_v59 = vpop.f32.mrb[1].mxu0 }
 0x16c   :  { %v396_v60 = vpop.f32.mrb[2].mxu0 }
 0x16d   :  { %v398_v61 = vpop.f32.mrb[3].mxu0 }
 0x170   :  { %v3485_v62 = vpop.f32.mrb[4].mxu0 }
 0x171   :  { %v3487_v63 = vpop.f32.mrb[5].mxu0 }
 0x174   :  { %v408_v0 = vpop.f32.mrb[6].mxu0 }
 0x175   :  { %748 = vrot.lane.b32.xlu1 %v408_v0, %s3126_s1  ;;  %v410_v1 = vpop.f32.mrb[7].mxu0  ;;  %v3490_v2 = vpop.f32.mrb[0].mxu1 }
 0x176   :  { %v3492_v3 = vpop.f32.mrb[1].mxu1 }
 0x178   :  { %v414_v4 = vpop.f32.mrb[8].mxu0 }
 0x179   :  { %750 = vrot.lane.b32.xlu1 %v410_v1, %s3126_s1  ;;  %v491_v5 = vpop.f32.mrb[2].mxu1  ;;  %v416_v6 = vpop.f32.mrb[9].mxu0  ;;  %v830_v37 = vadd.f32 %v828_v34, %v414_v4 }
 0x17a   :  { %v493_v7 = vpop.f32.mrb[3].mxu1  ;;  %v831_v36 = vadd.f32 %v828_v34, %v416_v6 }
 0x17d   :  { %v497_v9 = vpop.f32.mrb[4].mxu1 }
 0x17e   :  { %v3495_v10 = vpop.f32.mrb[5].mxu1 }
 0x181   :  { %v503_v11 = vpop.f32.mrb[6].mxu1  ;;  %v3497_v12 = vpop.f32.mrb[10].mxu0 }
 0x182   :  { %752 = vrot.lane.b32.xlu0 %v503_v11, %s3126_s1  ;;  %v505_v13 = vpop.f32.mrb[7].mxu1  ;;  %v3500_v14 = vpop.f32.mrb[11].mxu0 }
 0x183   :  { %754 = vrot.lane.b32.xlu1 %v505_v13, %s3126_s1 }
 0x185   :  { %v509_v15 = vpop.f32.mrb[8].mxu1  ;;  %v586_v16 = vpop.f32.mrb[12].mxu0 }
 0x186   :  { %v511_v17 = vpop.f32.mrb[9].mxu1  ;;  %v588_v18 = vpop.f32.mrb[13].mxu0  ;;  %v832_v39 = vadd.f32 %v828_v34, %v509_v15 }
 0x187   :  { %v833_v38 = vadd.f32 %v828_v34, %v511_v17 }
 0x189   :  { %v592_v19 = vpop.f32.mrb[14].mxu0  ;;  %v3503_v20 = vpop.f32.mrb[10].mxu1 }
 0x18a   :  { %v594_v21 = vpop.f32.mrb[15].mxu0  ;;  %v2806_v22 = vpop.f32.mrb[11].mxu1 }
 0x18d   :  { %v598_v23 = vpop.f32.mrb[16].mxu0  ;;  %v680_v24 = vpop.f32.mrb[12].mxu1 }
 0x18e   :  { %756 = vrot.lane.b32.xlu0 %v598_v23, %s3126_s1  ;;  %v600_v25 = vpop.f32.mrb[17].mxu0  ;;  %v2809_v26 = vpop.f32.mrb[13].mxu1 }
 0x18f   :  { %758 = vrot.lane.b32.xlu1 %v600_v25, %s3126_s1 }
 0x191   :  { %v685_v27 = vpop.f32.mrb[14].mxu1  ;;  %v604_v28 = vpop.f32.mrb[18].mxu0 }
 0x192   :  { %v2812_v29 = vpop.f32.mrb[15].mxu1  ;;  %v606_v30 = vpop.f32.mrb[19].mxu0  ;;  %v834_v51 = vadd.f32 %v828_v34, %v604_v28 }
 0x193   :  { %706 = vrot.lane.b32.xlu1 %v396_v60, %s3126_s1 }
 0x195   :  { %v690_v31 = vpop.f32.mrb[16].mxu1 }
 0x196   :  { %760 = vrot.lane.b32.xlu0 %v690_v31, %s3126_s1  ;;  %v2815_v32 = vpop.f32.mrb[17].mxu1 }
 0x197   :  { %710 = vrot.lane.b32.xlu1 %v491_v5, %s3126_s1 }
 0x199   :  { %v695_v33 = vpop.f32.mrb[18].mxu1 }
 0x19a   :  { %708 = vrot.lane.b32.xlu0 %v398_v61, %s3126_s1  ;;  %v2818_v35 = vpop.f32.mrb[19].mxu1  ;;  %v836_v1 = vadd.f32 %v828_v34, %v695_v33 }
 0x19b   :  { %714 = vrot.lane.b32.xlu1 %v586_v16, %s3126_s1 }
 0x19e   :  { %712 = vrot.lane.b32.xlu0 %v493_v7, %s3126_s1 }
 0x19f   :  { %846 = vrot.lane.b32.xlu1 %v831_v36, %s3127_s25 }
 0x1a2   :  { %844 = vrot.lane.b32.xlu0 %v830_v37, %s3127_s25 }
 0x1a3   :  { %850 = vrot.lane.b32.xlu1 %v833_v38, %s3127_s25 }
 0x1a6   :  { %848 = vrot.lane.b32.xlu0 %v832_v39, %s3127_s25 }
 0x1e7   :  { %v749_v41 = vpop.permute.xlu1 %748 }
 0x1eb   :  { %v751_v42 = vpop.permute.xlu1 %750 }
 0x1ec   :  { %v762_v43 = vsel %vm720_vm6, %v749_v41, %v751_v42 }
 0x1ed   :  { %v775_v44 = vadd.f32 %v762_v43, %v3485_v62 }
 0x1ef   :  { %789 = vrot.lane.b32.xlu1 %v775_v44, %s3128_s26 }
 0x1f4   :  { %v753_v45 = vpop.permute.xlu0 %752 }
 0x1f5   :  { %v763_v46 = vsel %vm720_vm6, %v751_v42, %v753_v45  ;;  %v755_v47 = vpop.permute.xlu1 %754 }
 0x1f6   :  { %v764_v48 = vsel %vm720_vm6, %v753_v45, %v755_v47  ;;  %v776_v49 = vadd.f32 %v763_v46, %v3487_v63  ;;  %v835_v63 = vadd.f32 %v828_v34, %v606_v30 }
 0x1f7   :  { %v777_v50 = vadd.f32 %v764_v48, %v497_v9 }
 0x1f8   :  { %791 = vrot.lane.b32.xlu0 %v776_v49, %s3128_s26 }
 0x1f9   :  { %793 = vrot.lane.b32.xlu1 %v777_v50, %s3128_s26 }
 0x1fc   :  { %852 = vrot.lane.b32.xlu0 %v834_v51, %s3127_s25 }
 0x1fd   :  { %716 = vrot.lane.b32.xlu1 %v588_v18, %s3126_s1 }
 0x200   :  { %v757_v52 = vpop.permute.xlu0 %756 }
 0x201   :  { %v765_v53 = vsel %vm720_vm6, %v755_v47, %v757_v52  ;;  %v759_v54 = vpop.permute.xlu1 %758 }
 0x202   :  { %v778_v55 = vadd.f32 %v765_v53, %v3495_v10  ;;  %v766_v56 = vsel %vm720_vm6, %v757_v52, %v759_v54 }
 0x203   :  { %v779_v57 = vadd.f32 %v766_v56, %v592_v19 }
 0x204   :  { %795 = vrot.lane.b32.xlu0 %v778_v55, %s3128_s26 }
 0x205   :  { %v707_v4 = vpop.permute.xlu1 %706 }
 0x208   :  { %v761_v60 = vpop.permute.xlu0 %760  ;;  %797 = vrot.lane.b32.xlu0 %v779_v57, %s3128_s26 }
 0x209   :  { %v767_v61 = vsel %vm720_vm6, %v759_v54, %v761_v60  ;;  %v781_v0 = vadd.f32 %v761_v60, %v685_v27  ;;  %v711_v5 = vpop.permute.xlu1 %710 }
 0x20a   :  { %v780_v62 = vadd.f32 %v767_v61, %v594_v21 }
 0x20c   :  { %799 = vrot.lane.b32.xlu1 %v780_v62, %s3128_s26  ;;  %718 = vrot.lane.b32.xlu0 %v680_v24, %s3126_s1  ;;  %v709_v6 = vpop.permute.xlu0 %708 }
 0x20d   :  { %v715_v7 = vpop.permute.xlu1 %714  ;;  %v721_v16 = vsel %vm720_vm6, %v707_v4, %v709_v6  ;;  %v722_v18 = vsel %vm720_vm6, %v709_v6, %v711_v5 }
 0x20e   :  { %v734_v19 = vadd.f32 %v721_v16, %v3481_v58  ;;  %v735_v22 = vadd.f32 %v722_v18, %v3483_v59 }
 0x210   :  { %801 = vrot.lane.b32.xlu0 %v781_v0, %s3128_s26  ;;  %854 = vrot.lane.b32.xlu1 %v835_v63, %s3127_s25  ;;  %v713_v9 = vpop.permute.xlu0 %712 }
 0x211   :  { %v847_v10 = vpop.permute.xlu1 %846  ;;  %v723_v33 = vsel %vm720_vm6, %v711_v5, %v713_v9  ;;  %v724_v36 = vsel %vm720_vm6, %v713_v9, %v715_v7 }
 0x212   :  { %v736_v34 = vadd.f32 %v723_v33, %v3490_v2  ;;  %v737_v41 = vadd.f32 %v724_v36, %v3492_v3 }
 0x214   :  { %856 = vrot.lane.b32.xlu1 %v836_v1, %s3127_s25  ;;  %v845_v11 = vpop.permute.xlu0 %844 }
 0x215   :  { %v851_v13 = vpop.permute.xlu1 %850  ;;  %v859_v27 = vsel %vm858_vm8, %v845_v11, %v847_v10 }
 0x218   :  { %v849_v15 = vpop.permute.xlu0 %848 }
 0x219   :  { %v860_v29 = vsel %vm858_vm8, %v847_v10, %v849_v15  ;;  %v861_v39 = vsel %vm858_vm8, %v849_v15, %v851_v13 }
 0x261   :  { %v790_v17 = vpop.permute.xlu1 %789 }
 0x26a   :  { %v792_v21 = vpop.permute.xlu0 %791 }
 0x26b   :  { %v804_v23 = vsel %vm803_vm7, %v790_v17, %v792_v21  ;;  %v794_v24 = vpop.permute.xlu1 %793 }
 0x26c   :  { %v817_v25 = vadd.f32 %v804_v23, %v734_v19  ;;  %v805_v26 = vsel %vm803_vm7, %v792_v21, %v794_v24 }
 0x26d   :  { %v818_v28 = vadd.f32 %v805_v26, %v735_v22 }
 0x26e   :  { %v3546_v30 = vadd.f32 %v859_v27, %v817_v25  ;;  %v853_v59 = vpop.permute.xlu0 %852 }
 0x26f   :  { %v3548_v31 = vadd.f32 %v860_v29, %v818_v28  ;;  %v717_v42 = vpop.permute.xlu1 %716  ;;  %v862_v2 = vsel %vm858_vm8, %v851_v13, %v853_v59 }
 0x270   :  { %v879_v58 = vmax.f32 %v3546_v30, 0.0  ;;  %v725_v48 = vsel %vm720_vm6, %v715_v7, %v717_v42 }
 0x271   :  { %v880_v32 = vmax.f32 %v3548_v31, 0.0  ;;  %v738_v52 = vadd.f32 %v725_v48, %v3497_v12 }
 0x272   :  { %893 = vrot.lane.b32.xlu0 %v879_v58, %s3126_s1 }
 0x273   :  { %895 = vrot.lane.b32.xlu1 %v880_v32, %s3126_s1 }
 0x276   :  { %v796_v35 = vpop.permute.xlu0 %795 }
 0x277   :  { %v806_v37 = vsel %vm803_vm7, %v794_v24, %v796_v35 }
 0x278   :  { %v819_v38 = vadd.f32 %v806_v37, %v736_v34  ;;  %v1042_v34 = vld [vmem:[%s4255_s5 + $0x10] sm:$0xff] }
 0x27a   :  { %v798_v43 = vpop.permute.xlu0 %797  ;;  %v3564_v44 = vadd.f32 %v861_v39, %v819_v38 }
 0x27b   :  { %v807_v45 = vsel %vm803_vm7, %v796_v35, %v798_v43  ;;  %v1043_v35 = vld [vmem:[%s4255_s5 + $0x18] sm:$0x7] }
 0x27c   :  { %v820_v46 = vadd.f32 %v807_v45, %v737_v41  ;;  %v881_v47 = vmax.f32 %v3564_v44, 0.0  ;;  %v2938_v36 = vpack.c.bf16 %v1043_v35, %v1042_v34 }
 0x27e   :  { %v800_v49 = vpop.permute.xlu1 %799  ;;  %897 = vrot.lane.b32.xlu0 %v881_v47, %s3126_s1  ;;  %v719_v50 = vpop.permute.xlu0 %718  ;;  %v875_v51 = vadd.f32 %v862_v2, %v820_v46 }
 0x27f   :  { %v808_v3 = vsel %vm803_vm7, %v798_v43, %v800_v49  ;;  %v726_v54 = vsel %vm720_vm6, %v717_v42, %v719_v50  ;;  %v740_v60 = vadd.f32 %v719_v50, %v3503_v20 }
 0x280   :  { %v882_v53 = vmax.f32 %v875_v51, 0.0  ;;  %v821_v55 = vadd.f32 %v808_v3, %v738_v52  ;;  %v739_v63 = vadd.f32 %v726_v54, %v3500_v14  ;;  %v3601_v14 = vld [vmem:[#allocation3] sm:$0xff] }
 0x281   :  { %978 = vst.msk [vmem:[#allocation4 + $0x48] sm:$0xff] %vm968_vm9, %v3601_v14  ;;  %979 = vst.msk [vmem:[#allocation4 + $0x50] sm:$0xff] %vm968_vm9, %v3601_v14 }
 0x282   :  { %v802_v56 = vpop.permute.xlu0 %801  ;;  %899 = vrot.lane.b32.xlu1 %v882_v53, %s3126_s1  ;;  %v855_v57 = vpop.permute.xlu1 %854  ;;  %980 = vst.msk [vmem:[#allocation4 + $0x58] sm:$0xff] %vm968_vm9, %v3601_v14  ;;  %981 = vst.msk [vmem:[#allocation4 + $0x60] sm:$0xff] %vm968_vm9, %v3601_v14 }
 0x283   :  { %v809_v61 = vsel %vm803_vm7, %v800_v49, %v802_v56  ;;  %v863_v62 = vsel %vm858_vm8, %v853_v59, %v855_v57  ;;  %v823_v1 = vadd.f32 %v802_v56, %v740_v60  ;;  %982 = vst.msk [vmem:[#allocation4 + $0x68] sm:$0xff] %vm968_vm9, %v3601_v14  ;;  %v1041_v59 = vld [vmem:[%s4255_s5 + $0x8] sm:$0xff] }
 0x284   :  { %v876_v0 = vadd.f32 %v863_v62, %v821_v55  ;;  %v822_v4 = vadd.f32 %v809_v61, %v739_v63  ;;  %1309 = vst.msk [vmem:[#allocation3 + $0x8] sm:$0xff] %vm1308_vm15, %v3601_v14  ;;  %1311 = vst.msk [vmem:[#allocation3 + $0x18] sm:$0xff] %vm1308_vm15, %v3601_v14 }
 0x285   :  { %1313 = vst.msk [vmem:[#allocation3 + $0x28] sm:$0xff] %vm1308_vm15, %v3601_v14  ;;  %1315 = vst.msk [vmem:[#allocation3 + $0x38] sm:$0xff] %vm1308_vm15, %v3601_v14 }
 0x286   :  { %v883_v12 = vmax.f32 %v876_v0, 0.0  ;;  %v857_v5 = vpop.permute.xlu1 %856  ;;  %1317 = vst.msk [vmem:[#allocation3 + $0x48] sm:$0xff] %vm1308_vm15, %v3601_v14  ;;  %vm1279_vm15 = vcmask 1046512  }
 0x287   :  { %v864_v6 = vsel %vm858_vm8, %v855_v57, %v857_v5  ;;  %v878_v7 = vadd.f32 %v857_v5, %v823_v1 }
 0x288   :  { %v877_v9 = vadd.f32 %v864_v6, %v822_v4  ;;  %901 = vrot.lane.b32.xlu0 %v883_v12, %s3126_s1 }
 0x289   :  { %v885_v10 = vmax.f32 %v878_v7, 0.0 }
 0x28a   :  { %v884_v11 = vmax.f32 %v877_v9, 0.0 }
 0x28c   :  { %905 = vrot.lane.b32.xlu0 %v885_v10, %s3126_s1  ;;  %903 = vrot.lane.b32.xlu1 %v884_v11, %s3126_s1 }
 0x2e4   :  { %v894_v20 = vpop.permute.xlu0 %893 }
 0x2e5   :  { %v896_v13 = vpop.permute.xlu1 %895 }
 0x2e6   :  { %v907_v8 = vsel %vm720_vm6, %v894_v20, %v896_v13 }
 0x2e7   :  { %v920_v15 = vmax.f32 %v879_v58, %v907_v8 }
 0x2e9   :  { %934 = vrot.lane.b32.xlu1 %v920_v15, %s3119_s17 }
 0x2f0   :  { %v898_v16 = vpop.permute.xlu0 %897 }
 0x2f1   :  { %v908_v17 = vsel %vm720_vm6, %v896_v13, %v898_v16 }
 0x2f2   :  { %v921_v18 = vmax.f32 %v880_v32, %v908_v17  ;;  %v1040_v32 = vld [vmem:[%s4255_s5] sm:$0xff]  ;;  %s3130_s5 = smov 14  }
 0x2f3   :  { %v2934_v33 = vpack.c.bf16 %v1041_v59, %v1040_v32 }
 0x2f4   :  { %936 = vrot.lane.b32.xlu0 %v921_v18, %s3119_s17  ;;  %v900_v19 = vpop.permute.xlu1 %899 }
 0x2f5   :  { %v909_v21 = vsel %vm720_vm6, %v898_v16, %v900_v19  ;;  %2935 = vmatprep.subr.bf16.mxu0 %v2934_v33 }
 0x2f6   :  { %v922_v22 = vmax.f32 %v881_v47, %v909_v21  ;;  %2937 = vmatpush3.bf16.msra.mxu0 %v2934_v33 }
 0x2f7   :  { %2940 = vmatprep.subr.msk.bf16.mxu0 %vm2939_vm12, %v2938_v36 }
 0x2f8   :  { %938 = vrot.lane.b32.xlu1 %v922_v22, %s3119_s17 }
 0x2fa   :  { %v902_v23 = vpop.permute.xlu0 %901  ;;  %2943 = vmatpush3.bf16.msk.msra.mxu0 %vm2939_vm12, %v2938_v36  ;;  %vm1261_vm12 = vcmask 800416  }
 0x2fb   :  { %v910_v24 = vsel %vm720_vm6, %v900_v19, %v902_v23 }
 0x2fc   :  { %v923_v25 = vmax.f32 %v882_v53, %v910_v24 }
 0x2fe   :  { %v906_v26 = vpop.permute.xlu0 %905  ;;  %940 = vrot.lane.b32.xlu0 %v923_v25, %s3119_s17  ;;  %v904_v27 = vpop.permute.xlu1 %903 }
 0x2ff   :  { %v911_v28 = vsel %vm720_vm6, %v902_v23, %v904_v27  ;;  %v912_v29 = vsel %vm720_vm6, %v904_v27, %v906_v26  ;;  %v926_v58 = vmax.f32 %v885_v10, %v906_v26 }
 0x300   :  { %v924_v30 = vmax.f32 %v883_v12, %v911_v28  ;;  %v925_v31 = vmax.f32 %v884_v11, %v912_v29 }
 0x302   :  { %944 = vrot.lane.b32.xlu0 %v925_v31, %s3119_s17  ;;  %942 = vrot.lane.b32.xlu1 %v924_v30, %s3119_s17 }
 0x306   :  { %946 = vrot.lane.b32.xlu1 %v926_v58, %s3119_s17  ;;  %s3131_s17 = smov 42  }
 0x35b   :  { %v935_v37 = vpop.permute.xlu1 %934 }
 0x366   :  { %v937_v38 = vpop.permute.xlu0 %936 }
 0x367   :  { %v948_v39 = vsel %vm118_vm0, %v935_v37, %v937_v38 }
 0x368   :  { %v961_v41 = vmax.f32 %v920_v15, %v948_v39 }
 0x36a   :  { %984 = vst.msk [vmem:[#allocation4] sm:$0x3f] %vm983_vm13, %v961_v41  ;;  %986 = vrot.lane.b32.xlu0 %v961_v41, %s3120_s20  ;;  %v939_v42 = vpop.permute.xlu1 %938 }
 0x36b   :  { %v949_v43 = vsel %vm118_vm0, %v937_v38, %v939_v42 }
 0x36c   :  { %v962_v44 = vmax.f32 %v921_v18, %v949_v43 }
 0x36e   :  { %990 = vst.msk [vmem:[#allocation4 + $0x10] sm:$0x3f] %vm983_vm13, %v962_v44  ;;  %992 = vrot.lane.b32.xlu1 %v962_v44, %s3120_s20 }
 0x370   :  { %v941_v45 = vpop.permute.xlu0 %940 }
 0x371   :  { %v950_v46 = vsel %vm118_vm0, %v939_v42, %v941_v45  ;;  %v1026_v47 = vld [vmem:[#allocation4] sm:$0xff] }
 0x372   :  { %v963_v2 = vmax.f32 %v922_v22, %v950_v46  ;;  %2827 = vmatprep.mubr.msk.f32.mxu0 %vm968_vm9, %v1026_v47 }
 0x374   :  { %996 = vst.msk [vmem:[#allocation4 + $0x20] sm:$0x3f] %vm983_vm13, %v963_v2  ;;  %v945_v48 = vpop.permute.xlu0 %944  ;;  %998 = vrot.lane.b32.xlu0 %v963_v2, %s3120_s20  ;;  %v943_v49 = vpop.permute.xlu1 %942 }
 0x375   :  { %v951_v50 = vsel %vm118_vm0, %v941_v45, %v943_v49  ;;  %v952_v51 = vsel %vm118_vm0, %v943_v49, %v945_v48  ;;  %v1028_v62 = vld [vmem:[#allocation4 + $0x10] sm:$0xff] }
 0x376   :  { %v964_v3 = vmax.f32 %v923_v25, %v951_v50  ;;  %v965_v52 = vmax.f32 %v924_v30, %v952_v51  ;;  %v1620_v51 = vld [vmem:[%s4254_s4] sm:$0xff] }
 0x378   :  { %1002 = vst.msk [vmem:[#allocation4 + $0x30] sm:$0x3f] %vm983_vm13, %v964_v3  ;;  %1008 = vst.msk [vmem:[#allocation4 + $0x40] sm:$0x3f] %vm983_vm13, %v965_v52  ;;  %1010 = vrot.lane.b32.xlu0 %v965_v52, %s3120_s20  ;;  %1004 = vrot.lane.b32.xlu1 %v964_v3, %s3120_s20  ;;  %v947_v53 = vpop.permute.xlu1 %946 }
 0x379   :  { %v953_v54 = vsel %vm118_vm0, %v945_v48, %v947_v53  ;;  %v967_v55 = vmax.f32 %v926_v58, %v947_v53  ;;  %vm1231_vm0 = vcmask 226416   ;;  %v1621_v53 = vld [vmem:[%s4254_s4 + $0x8] sm:$0xff]  ;;  %s3147_s4 = smov 122  }
 0x37a   :  { %v966_v56 = vmax.f32 %v925_v31, %v953_v54 }
 0x37b   :  { %1020 = vst.msk [vmem:[#allocation4 + $0x60] sm:$0x3f] %vm983_vm13, %v967_v55  ;;  %v1030_v1 = vld [vmem:[#allocation4 + $0x20] sm:$0xff] }
 0x37c   :  { %1014 = vst.msk [vmem:[#allocation4 + $0x50] sm:$0x3f] %vm983_vm13, %v966_v56  ;;  %1022 = vrot.lane.b32.xlu0 %v967_v55, %s3120_s20  ;;  %1016 = vrot.lane.b32.xlu1 %v966_v56, %s3120_s20  ;;  %s3132_s20 = smov 28  }
 0x37f   :  { %v1032_v9 = vld [vmem:[#allocation4 + $0x30] sm:$0xff]  ;;  %v1034_v11 = vld [vmem:[#allocation4 + $0x40] sm:$0xff] }
 0x382   :  { %v1038_v15 = vld [vmem:[#allocation4 + $0x60] sm:$0xff] }
 0x383   :  { %v1036_v13 = vld [vmem:[#allocation4 + $0x50] sm:$0xff] }
 0x3dc   :  { %v987_v57 = vpop.permute.xlu0 %986 }
 0x3dd   :  { %989 = vst.msk [vmem:[#allocation4 + $0x8] sm:$0x3f] %vm983_vm13, %v987_v57 }
 0x3e0   :  { %v993_v60 = vpop.permute.xlu1 %992 }
 0x3e1   :  { %995 = vst.msk [vmem:[#allocation4 + $0x18] sm:$0x3f] %vm983_vm13, %v993_v60 }
 0x3e4   :  { %v1027_v61 = vld [vmem:[#allocation4 + $0x8] sm:$0xff] }
 0x3e5   :  { %2828 = vmatmul.mubr.msk.f32.vlgmr.msra.gmra.mrb[20].mxu0 %vm968_vm9, %v1027_v61 }
 0x3e6   :  { %v999_v63 = vpop.permute.xlu0 %998  ;;  %2830 = vmatprep.mubr.msk.f32.mxu0 %vm968_vm9, %v1028_v62 }
 0x3e7   :  { %1001 = vst.msk [vmem:[#allocation4 + $0x28] sm:$0x3f] %vm983_vm13, %v999_v63 }
 0x3e8   :  { %v1029_v0 = vld [vmem:[#allocation4 + $0x18] sm:$0xff] }
 0x3e9   :  { %2831 = vmatmul.mubr.msk.f32.gmra.mrb[22].mxu0 %vm968_vm9, %v1029_v0 }
 0x3ea   :  { %v1011_v4 = vpop.permute.xlu0 %1010  ;;  %2833 = vmatprep.mubr.msk.f32.mxu0 %vm968_vm9, %v1030_v1  ;;  %v1005_v12 = vpop.permute.xlu1 %1004 }
 0x3eb   :  { %1013 = vst.msk [vmem:[#allocation4 + $0x48] sm:$0x3f] %vm983_vm13, %v1011_v4  ;;  %1007 = vst.msk [vmem:[#allocation4 + $0x38] sm:$0x3f] %vm983_vm13, %v1005_v12 }
 0x3ee   :  { %v1023_v5 = vpop.permute.xlu0 %1022  ;;  %v1017_v6 = vpop.permute.xlu1 %1016  ;;  %v1031_v7 = vld [vmem:[#allocation4 + $0x28] sm:$0xff] }
 0x3ef   :  { %1025 = vst.msk [vmem:[#allocation4 + $0x68] sm:$0x3f] %vm983_vm13, %v1023_v5  ;;  %1019 = vst.msk [vmem:[#allocation4 + $0x58] sm:$0x3f] %vm983_vm13, %v1017_v6  ;;  %2834 = vmatmul.mubr.msk.f32.gmra.mrb[24].mxu0 %vm968_vm9, %v1031_v7  ;;  %vm1267_vm13 = vcmask 915216  }
 0x3f0   :  { %2836 = vmatprep.mubr.msk.f32.mxu0 %vm968_vm9, %v1032_v9 }
 0x3f2   :  { %v1033_v10 = vld [vmem:[#allocation4 + $0x38] sm:$0xff]  ;;  %v1035_v20 = vld [vmem:[#allocation4 + $0x48] sm:$0xff] }
 0x3f3   :  { %2837 = vmatmul.mubr.msk.f32.gmra.mrb[26].mxu0 %vm968_vm9, %v1033_v10 }
 0x3f4   :  { %2839 = vmatprep.mubr.msk.f32.mxu0 %vm968_vm9, %v1034_v11 }
 0x3f6   :  { %v1037_v8 = vld [vmem:[#allocation4 + $0x58] sm:$0xff]  ;;  %v1039_v16 = vld [vmem:[#allocation4 + $0x68] sm:$0xff] }
 0x3f7   :  { %2840 = vmatmul.mubr.msk.f32.gmra.mrb[28].mxu0 %vm968_vm9, %v1035_v20 }
 0x3f8   :  { %2842 = vmatprep.mubr.msk.f32.mxu0 %vm968_vm9, %v1036_v13 }
 0x3fb   :  { %2843 = vmatmul.mubr.msk.f32.gmra.mrb[30].mxu0 %vm968_vm9, %v1037_v8 }
 0x3fc   :  { %2845 = vmatprep.mubr.msk.f32.mxu0 %vm968_vm9, %v1038_v15 }
 0x3ff   :  { %2846 = vmatmul.mubr.msk.f32.gmra.mrb[32].mxu0 %vm968_vm9, %v1039_v16  ;;  %vm1255_vm9 = vcmask 685616  }
 0x4b8   :  { %v2829_v17 = vpop.f32.mrb[20].mxu0 }
 0x4b9   :  { %v1156_v18 = vpop.f32.mrb[21].mxu0  ;;  %1228 = vrot.lane.b32.xlu1 %v2829_v17, %s3130_s5  ;;  %s3156_s5 = smov 44  }
 0x4ba   :  { %1226 = vst.msk [vmem:[#allocation5] sm:$0x3f] %vm1225_vm14, %v1156_v18  ;;  %vm1273_vm14 = vcmask 1030016  }
 0x4bc   :  { %v2832_v19 = vpop.f32.mrb[22].mxu0 }
 0x4bd   :  { %1240 = vrot.lane.b32.xlu1 %v2832_v19, %s3131_s17  ;;  %v1166_v21 = vpop.f32.mrb[23].mxu0  ;;  %v1378_v19 = vld [vmem:[%s4253_s3] sm:$0xff] }
 0x4be   :  { %1234 = vrot.lane.b32.xlu0 %v1166_v21, %s3132_s20 }
 0x4c2   :  { %v2835_v22 = vpop.f32.mrb[24].mxu0 }
 0x4c3   :  { %1252 = vrot.lane.b32.xlu1 %v2835_v22, %s3133_s16  ;;  %v1176_v23 = vpop.f32.mrb[25].mxu0  ;;  %v1379_v22 = vld [vmem:[%s4253_s3 + $0x8] sm:$0xff]  ;;  %s3157_s16 = smov 119  }
 0x4c4   :  { %1246 = vrot.lane.b32.xlu0 %v1176_v23, %s3134_s19  ;;  %v1380_v23 = vld [vmem:[%s4253_s3 + $0x10] sm:$0xff] }
 0x4c6   :  { %v2838_v24 = vpop.f32.mrb[26].mxu0 }
 0x4c7   :  { %1264 = vrot.lane.b32.xlu1 %v2838_v24, %s3135_s21  ;;  %v1186_v25 = vpop.f32.mrb[27].mxu0  ;;  %v1381_v24 = vld [vmem:[%s4253_s3 + $0x18] sm:$0xff] }
 0x4ca   :  { %v2841_v26 = vpop.f32.mrb[28].mxu0 }
 0x4cb   :  { %1258 = vrot.lane.b32.xlu1 %v1186_v25, %s3136_s22  ;;  %1276 = vrot.lane.b32.xlu0 %v2841_v26, %s3128_s26  ;;  %v1196_v27 = vpop.f32.mrb[29].mxu0  ;;  %v1382_v25 = vld [vmem:[%s4253_s3 + $0x20] sm:$0xff]  ;;  %v1383_v26 = vld [vmem:[%s4253_s3 + $0x28] sm:$0xff] }
 0x4ce   :  { %v2844_v28 = vpop.f32.mrb[30].mxu0 }
 0x4cf   :  { %1270 = vrot.lane.b32.xlu1 %v1196_v27, %s3137_s23  ;;  %1290 = vrot.lane.b32.xlu0 %v2844_v28, %s3138_s24  ;;  %v1206_v29 = vpop.f32.mrb[31].mxu0  ;;  %v1384_v27 = vld [vmem:[%s4253_s3 + $0x30] sm:$0xff]  ;;  %v1385_v28 = vld [vmem:[%s4253_s3 + $0x38] sm:$0xff]  ;;  %s3154_s23 = smov 22  }
 0x4d2   :  { %v2847_v30 = vpop.f32.mrb[32].mxu0 }
 0x4d3   :  { %1284 = vrot.lane.b32.xlu0 %v1206_v29, %s3139_s27  ;;  %1302 = vrot.lane.b32.xlu1 %v2847_v30, %s3140_s28  ;;  %v1216_v31 = vpop.f32.mrb[33].mxu0  ;;  %v1386_v29 = vld [vmem:[%s4253_s3 + $0x40] sm:$0xff]  ;;  %v1387_v30 = vld [vmem:[%s4253_s3 + $0x48] sm:$0xff] }
 0x4d7   :  { %1296 = vrot.lane.b32.xlu0 %v1216_v31, %s3141_s29  ;;  %s3150_s29 = smov 50  }
 0x52b   :  { %v1229_v58 = vpop.permute.xlu1 %1228 }
 0x52c   :  { %1232 = vst.msk [vmem:[#allocation5] sm:$0x3f] %vm1231_vm0, %v1229_v58  ;;  %vm1287_vm0 = vcmask 210016  }
 0x52f   :  { %v1241_v59 = vpop.permute.xlu1 %1240 }
 0x530   :  { %v1235_v32 = vpop.permute.xlu0 %1234 }
 0x531   :  { %1238 = vst.msk [vmem:[#allocation5] sm:$0x3f] %vm1237_vm1, %v1235_v32  ;;  %vm1293_vm1 = vcmask 324816  }
 0x532   :  { %1244 = vst.msk [vmem:[#allocation5] sm:$0x3f] %vm1243_vm2, %v1241_v59  ;;  %vm1299_vm2 = vcmask 439616  }
 0x535   :  { %v1253_v33 = vpop.permute.xlu1 %1252 }
 0x536   :  { %v1247_v34 = vpop.permute.xlu0 %1246 }
 0x537   :  { %1250 = vst.msk [vmem:[#allocation5] sm:$0x3f] %vm1249_vm4, %v1247_v34  ;;  %vm1305_vm4 = vcmask 554416  }
 0x538   :  { %1256 = vst.msk [vmem:[#allocation5] sm:$0x3f] %vm1255_vm9, %v1253_v33  ;;  %vm1330_vm9 = vcmask 932864  }
 0x539   :  { %v1265_v35 = vpop.permute.xlu1 %1264 }
 0x53d   :  { %v1277_v36 = vpop.permute.xlu0 %1276  ;;  %v1259_v37 = vpop.permute.xlu1 %1258 }
 0x53e   :  { %1282 = vst.msk [vmem:[#allocation5 + $0x8] sm:$0x3f] %vm1281_vm10, %v1277_v36 }
 0x53f   :  { %1262 = vst.msk [vmem:[#allocation5] sm:$0x3f] %vm1261_vm12, %v1259_v37  ;;  %vm1344_vm12 = vcmask 818176  }
 0x540   :  { %1268 = vst.msk [vmem:[#allocation5] sm:$0x3f] %vm1267_vm13, %v1265_v35  ;;  %vm1358_vm13 = vcmask 703488  }
 0x541   :  { %v1291_v38 = vpop.permute.xlu0 %1290  ;;  %v1271_v39 = vpop.permute.xlu1 %1270 }
 0x542   :  { %1274 = vst.msk [vmem:[#allocation5] sm:$0x3f] %vm1273_vm14, %v1271_v39  ;;  %vm1372_vm14 = vcmask 588800  }
 0x543   :  { %1280 = vst.msk [vmem:[#allocation5] sm:$0x3f] %vm1279_vm15, %v1277_v36  ;;  %vm1398_vm15 = vcmask 326656  }
 0x545   :  { %v1285_v41 = vpop.permute.xlu0 %1284  ;;  %v1303_v44 = vpop.permute.xlu1 %1302 }
 0x546   :  { %1288 = vst.msk [vmem:[#allocation5 + $0x8] sm:$0x3f] %vm1287_vm0, %v1285_v41 }
 0x547   :  { %1294 = vst.msk [vmem:[#allocation5 + $0x8] sm:$0x3f] %vm1293_vm1, %v1291_v38 }
 0x549   :  { %v1297_v42 = vpop.permute.xlu0 %1296 }
 0x54a   :  { %v1318_v43 = vld [vmem:[#allocation5] sm:$0x3f]  ;;  %1300 = vst.msk [vmem:[#allocation5 + $0x8] sm:$0x3f] %vm1299_vm2, %v1297_v42 }
 0x54b   :  { %v1322_v45 = vld [vmem:[#allocation5] sm:$0x3f]  ;;  %1320 = vst [vmem:[#allocation3] sm:$0x3f] %v1318_v43  ;;  %1306 = vst.msk [vmem:[#allocation5 + $0x8] sm:$0x3f] %vm1305_vm4, %v1303_v44 }
 0x54c   :  { %1326 = vrot.lane.b32.xlu0 %v1322_v45, %s3142_s30  ;;  %v1336_v46 = vld [vmem:[#allocation5] sm:$0x3f] }
 0x54d   :  { %v1350_v47 = vld [vmem:[#allocation5] sm:$0x3f] }
 0x54e   :  { %v1364_v49 = vld [vmem:[#allocation5] sm:$0x3f] }
 0x550   :  { %1340 = vrot.lane.b32.xlu0 %v1336_v46, %s3143_s0 }
 0x552   :  { %v1323_v2 = vld [vmem:[#allocation5 + $0x8] sm:$0x3f]  ;;  %v1388_v5 = vld [vmem:[#allocation3] sm:$0xff] }
 0x553   :  { %1328 = vrot.lane.b32.xlu1 %v1323_v2, %s3142_s30  ;;  %v1319_v48 = vld [vmem:[#allocation5 + $0x8] sm:$0x3f] }
 0x554   :  { %1354 = vrot.lane.b32.xlu0 %v1350_v47, %s3144_s2  ;;  %1321 = vst.msk [vmem:[#allocation3 + $0x8] sm:$0x3f] %vm1281_vm10, %v1319_v48  ;;  %v1337_v50 = vld [vmem:[#allocation5 + $0x8] sm:$0x3f] }
 0x555   :  { %v1351_v3 = vld [vmem:[#allocation5 + $0x8] sm:$0x3f] }
 0x556   :  { %v1365_v52 = vld [vmem:[#allocation5 + $0x8] sm:$0x3f] }
 0x557   :  { %1342 = vrot.lane.b32.xlu1 %v1337_v50, %s3143_s0 }
 0x558   :  { %1368 = vrot.lane.b32.xlu0 %v1364_v49, %s3145_s18 }
 0x55b   :  { %1356 = vrot.lane.b32.xlu1 %v1351_v3, %s3144_s2  ;;  %v1389_v0 = vld [vmem:[#allocation3 + $0x8] sm:$0xff] }
 0x55c   :  { %1624 = vperm.xlu0 %3029, %v1620_v51  }
 0x55f   :  { %1370 = vrot.lane.b32.xlu1 %v1365_v52, %s3145_s18 }
 0x563   :  { %1629 = vperm.xlu1 %3030, %v1621_v53  }
 0x5be   :  { %v1327_v54 = vpop.permute.xlu0 %1326 }
 0x5c2   :  { %v1341_v55 = vpop.permute.xlu0 %1340 }
 0x5c5   :  { %v1329_v56 = vpop.permute.xlu1 %1328 }
 0x5c6   :  { %v1331_v57 = vsel %vm1330_vm9, %v1327_v54, %v1329_v56  ;;  %1335 = vst.msk [vmem:[#allocation3 + $0x18] sm:$0x3f] %vm1281_vm10, %v1329_v56  ;;  %v1355_v62 = vpop.permute.xlu0 %1354 }
 0x5c7   :  { %1334 = vst [vmem:[#allocation3 + $0x10] sm:$0x3f] %v1331_v57 }
 0x5c9   :  { %v1343_v60 = vpop.permute.xlu1 %1342 }
 0x5ca   :  { %v1345_v61 = vsel %vm1344_vm12, %v1341_v55, %v1343_v60  ;;  %1349 = vst.msk [vmem:[#allocation3 + $0x28] sm:$0x3f] %vm1281_vm10, %v1343_v60  ;;  %v1369_v9 = vpop.permute.xlu0 %1368 }
 0x5cb   :  { %1348 = vst [vmem:[#allocation3 + $0x20] sm:$0x3f] %v1345_v61 }
 0x5cd   :  { %v1357_v63 = vpop.permute.xlu1 %1356  ;;  %v1391_v1 = vld [vmem:[#allocation3 + $0x18] sm:$0xff] }
 0x5ce   :  { %v1359_v4 = vsel %vm1358_vm13, %v1355_v62, %v1357_v63  ;;  %1363 = vst.msk [vmem:[#allocation3 + $0x38] sm:$0x3f] %vm1281_vm10, %v1357_v63  ;;  %v2944_v12 = vpack.c.bf16 %v1391_v1, %v1389_v0  ;;  %v1390_v6 = vld [vmem:[#allocation3 + $0x10] sm:$0xff] }
 0x5cf   :  { %1362 = vst [vmem:[#allocation3 + $0x30] sm:$0x3f] %v1359_v4  ;;  %v2946_v7 = vpack.c.bf16 %v1390_v6, %v1388_v5 }
 0x5d0   :  { %2945 = vmatprep.subr.bf16.mxu1 %v2944_v12 }
 0x5d1   :  { %v1371_v10 = vpop.permute.xlu1 %1370  ;;  %2947 = vmatpush1.bf16.msra.mxu1 %v2946_v7  ;;  %v1393_v20 = vld [vmem:[#allocation3 + $0x28] sm:$0xff] }
 0x5d2   :  { %v1373_v11 = vsel %vm1372_vm14, %v1369_v9, %v1371_v10  ;;  %1377 = vst.msk [vmem:[#allocation3 + $0x48] sm:$0x3f] %vm1281_vm10, %v1371_v10  ;;  %v1392_v15 = vld [vmem:[#allocation3 + $0x20] sm:$0xff]  ;;  %vm4265_vm10 = vcmask 1041408  }
 0x5d3   :  { %1376 = vst [vmem:[#allocation3 + $0x40] sm:$0x3f] %v1373_v11 }
 0x5d5   :  { %v1395_v13 = vld [vmem:[#allocation3 + $0x38] sm:$0xff] }
 0x5d6   :  { %v2948_v8 = vpack.c.bf16 %v1395_v13, %v1393_v20  ;;  %v1394_v16 = vld [vmem:[#allocation3 + $0x30] sm:$0xff] }
 0x5d7   :  { %v2950_v17 = vpack.c.bf16 %v1394_v16, %v1392_v15 }
 0x5d8   :  { %2949 = vmatprep.subr.bf16.mxu1 %v2948_v8 }
 0x5d9   :  { %2951 = vmatpush1.bf16.msra.mxu1 %v2950_v17  ;;  %v1397_v18 = vld [vmem:[#allocation3 + $0x48] sm:$0xff] }
 0x5da   :  { %1437 = vmatprep.subr.mxu1 %v1397_v18  ;;  %v1396_v21 = vld [vmem:[#allocation3 + $0x40] sm:$0xff] }
 0x5db   :  { %v1625_v49 = vpop.permute.xlu0 %1624 }
 0x5dd   :  { %1438 = vmatpush1.msra.mxu1 %v1396_v21 }
 0x5de   :  { %2655 = vmatmul.mubr.msk.f32.vlgmr.msra.gmra.mrb[20].mxu1 %vm1398_vm15, %v1378_v19 }
 0x5df   :  { %1499 = vmatprep.mubr.f32.mxu1 %v3601_v14 }
 0x5e2   :  { %2656 = vmatmul.mubr.msk.f32.gmra.mrb[22].mxu1 %vm1398_vm15, %v1379_v22  ;;  %v1630_v3 = vpop.permute.xlu1 %1629 }
 0x5e3   :  { %1505 = vmatprep.mubr.f32.mxu1 %v3601_v14 }
 0x5e6   :  { %2657 = vmatmul.mubr.msk.f32.gmra.mrb[24].mxu1 %vm1398_vm15, %v1380_v23 }
 0x5e7   :  { %1511 = vmatprep.mubr.f32.mxu1 %v3601_v14 }
 0x5ea   :  { %2658 = vmatmul.mubr.msk.f32.gmra.mrb[26].mxu1 %vm1398_vm15, %v1381_v24 }
 0x5eb   :  { %1517 = vmatprep.mubr.f32.mxu1 %v3601_v14 }
 0x5ee   :  { %2659 = vmatmul.mubr.msk.f32.gmra.mrb[28].mxu1 %vm1398_vm15, %v1382_v25 }
 0x5ef   :  { %1523 = vmatprep.mubr.f32.mxu1 %v3601_v14 }
 0x5f2   :  { %2660 = vmatmul.mubr.msk.f32.gmra.mrb[30].mxu1 %vm1398_vm15, %v1383_v26 }
 0x5f3   :  { %1529 = vmatprep.mubr.f32.mxu1 %v3601_v14 }
 0x5f6   :  { %2661 = vmatmul.mubr.msk.f32.gmra.mrb[32].mxu1 %vm1398_vm15, %v1384_v27  ;;  %v1706_v27 = vld [vmem:[%s4256_s6] sm:$0xff] }
 0x5f7   :  { %1535 = vmatprep.mubr.f32.mxu1 %v3601_v14 }
 0x5fa   :  { %2662 = vmatmul.mubr.msk.f32.gmra.mrb[34].mxu1 %vm1398_vm15, %v1385_v28  ;;  %v1707_v28 = vld [vmem:[%s4256_s6 + $0x8] sm:$0xff] }
 0x5fb   :  { %1541 = vmatprep.mubr.f32.mxu1 %v3601_v14 }
 0x5fe   :  { %2663 = vmatmul.mubr.msk.f32.gmra.mrb[36].mxu1 %vm1398_vm15, %v1386_v29  ;;  %v1708_v29 = vld [vmem:[%s4256_s6 + $0x10] sm:$0xff] }
 0x5ff   :  { %1547 = vmatprep.mubr.f32.mxu1 %v3601_v14 }
 0x602   :  { %2664 = vmatmul.mubr.msk.f32.gmra.mrb[38].mxu1 %vm1398_vm15, %v1387_v30 }
 0x6b1   :  { %v1495_v31 = vpop.f32.mrb[20].mxu1 }
 0x6b2   :  { %v1497_v58 = vpop.f32.mrb[21].mxu1 }
 0x6b5   :  { %v3759_v32 = vpop.f32.mrb[22].mxu1 }
 0x6b6   :  { %v3761_v59 = vpop.f32.mrb[23].mxu1 }
 0x6b9   :  { %v1507_v33 = vpop.f32.mrb[24].mxu1 }
 0x6ba   :  { %v1509_v34 = vpop.f32.mrb[25].mxu1 }
 0x6bd   :  { %v1513_v35 = vpop.f32.mrb[26].mxu1 }
 0x6be   :  { %v1515_v36 = vpop.f32.mrb[27].mxu1 }
 0x6c1   :  { %v1519_v37 = vpop.f32.mrb[28].mxu1 }
 0x6c2   :  { %v1521_v38 = vpop.f32.mrb[29].mxu1 }
 0x6c5   :  { %v1525_v39 = vpop.f32.mrb[30].mxu1 }
 0x6c6   :  { %v1527_v41 = vpop.f32.mrb[31].mxu1 }
 0x6c9   :  { %v1531_v42 = vpop.f32.mrb[32].mxu1 }
 0x6ca   :  { %1580 = vrot.lane.b32.xlu0 %v1531_v42, %s3126_s1  ;;  %v1533_v43 = vpop.f32.mrb[33].mxu1 }
 0x6cb   :  { %1582 = vrot.lane.b32.xlu1 %v1533_v43, %s3126_s1 }
 0x6cd   :  { %v1537_v44 = vpop.f32.mrb[34].mxu1 }
 0x6ce   :  { %1584 = vrot.lane.b32.xlu0 %v1537_v44, %s3126_s1  ;;  %v1539_v45 = vpop.f32.mrb[35].mxu1 }
 0x6cf   :  { %1586 = vrot.lane.b32.xlu1 %v1539_v45, %s3126_s1 }
 0x6d1   :  { %v1543_v46 = vpop.f32.mrb[36].mxu1 }
 0x6d2   :  { %1558 = vrot.lane.b32.xlu0 %v1507_v33, %s3126_s1  ;;  %v1545_v47 = vpop.f32.mrb[37].mxu1  ;;  %v1632_v50 = vadd.f32 %v1625_v49, %v1543_v46  ;;  %v1712_v46 = vld [vmem:[%s4256_s6 + $0x30] sm:$0xff] }
 0x6d3   :  { %1560 = vrot.lane.b32.xlu1 %v1509_v34, %s3126_s1  ;;  %v1633_v51 = vadd.f32 %v1625_v49, %v1545_v47  ;;  %v1713_v47 = vld [vmem:[%s4256_s6 + $0x38] sm:$0xff]  ;;  %v1714_v49 = vld [vmem:[%s4256_s6 + $0x40] sm:$0xff] }
 0x6d5   :  { %v1549_v2 = vpop.f32.mrb[38].mxu1 }
 0x6d6   :  { %1562 = vrot.lane.b32.xlu0 %v1513_v35, %s3126_s1  ;;  %v1551_v48 = vpop.f32.mrb[39].mxu1  ;;  %v1634_v1 = vadd.f32 %v1630_v3, %v1549_v2 }
 0x6d7   :  { %1564 = vrot.lane.b32.xlu1 %v1515_v36, %s3126_s1  ;;  %v1635_v0 = vadd.f32 %v1630_v3, %v1551_v48  ;;  %v1710_v36 = vld [vmem:[%s4256_s6 + $0x20] sm:$0xff]  ;;  %v2964_v48 = vpack.c.bf16 %v1713_v47, %v1712_v46  ;;  %v1716_v3 = vld [vmem:[%s4256_s6 + $0x50] sm:$0xff]  ;;  %v3059_v46 = vld [vmem:[%s4257_s7 + $0x48] sm:$0xff]  }
 0x6da   :  { %1640 = vrot.lane.b32.xlu0 %v1632_v50, %s3127_s25  ;;  %v1715_v50 = vld [vmem:[%s4256_s6 + $0x48] sm:$0xff] }
 0x6db   :  { %1642 = vrot.lane.b32.xlu1 %v1633_v51, %s3127_s25  ;;  %v2968_v51 = vpack.c.bf16 %v1715_v50, %v1714_v49 }
 0x73c   :  { %v1581_v52 = vpop.permute.xlu0 %1580 }
 0x73d   :  { %v1583_v53 = vpop.permute.xlu1 %1582 }
 0x73e   :  { %v1588_v54 = vsel %vm720_vm6, %v1581_v52, %v1583_v53  ;;  %v1595_v55 = vadd.f32 %v1583_v53, %v1521_v38  ;;  %v1717_v52 = vld [vmem:[%s4256_s6 + $0x58] sm:$0xff] }
 0x73f   :  { %v1594_v56 = vadd.f32 %v1588_v54, %v1519_v37  ;;  %v1711_v37 = vld [vmem:[%s4256_s6 + $0x28] sm:$0xff]  ;;  %v2972_v53 = vpack.c.bf16 %v1717_v52, %v1716_v3  ;;  %v1718_v54 = vld [vmem:[%s4256_s6 + $0x60] sm:$0xff] }
 0x740   :  { %v1585_v57 = vpop.permute.xlu0 %1584  ;;  %1604 = vrot.lane.b32.xlu1 %v1595_v55, %s3128_s26  ;;  %v2960_v43 = vpack.c.bf16 %v1711_v37, %v1710_v36  ;;  %v1719_v55 = vld [vmem:[%s4256_s6 + $0x68] sm:$0xff]  ;;  %v3056_v37 = vld [vmem:[%s4257_s7 + $0x40] sm:$0xff]  }
 0x741   :  { %v1587_v60 = vpop.permute.xlu1 %1586  ;;  %1602 = vrot.lane.b32.xlu0 %v1594_v56, %s3128_s26  ;;  %v2976_v56 = vpack.c.bf16 %v1719_v55, %v1718_v54  ;;  %2760 = vmatprep.subr.bf16.mxu1 %v3056_v37  ;;  %v3064_v54 = vld [vmem:[%s4257_s7 + $0xc8] sm:$0xff]  }
 0x742   :  { %v1589_v61 = vsel %vm720_vm6, %v1585_v57, %v1587_v60  ;;  %v1597_v62 = vadd.f32 %v1587_v60, %v1527_v41  ;;  %v1720_v57 = vld [vmem:[%s4256_s6 + $0x70] sm:$0xff]  ;;  %v1721_v60 = vld [vmem:[%s4256_s6 + $0x78] sm:$0x1] }
 0x743   :  { %v1596_v63 = vadd.f32 %v1589_v61, %v1525_v39  ;;  %v2980_v61 = vpack.c.bf16 %v1721_v60, %v1720_v57 }
 0x744   :  { %1608 = vrot.lane.b32.xlu1 %v1597_v62, %s3128_s26  ;;  %v1559_v12 = vpop.permute.xlu0 %1558 }
 0x745   :  { %1606 = vrot.lane.b32.xlu0 %v1596_v63, %s3128_s26  ;;  %v1561_v4 = vpop.permute.xlu1 %1560  ;;  %s3160_s26 = smov 16  }
 0x746   :  { %v1566_v10 = vsel %vm720_vm6, %v1559_v12, %v1561_v4  ;;  %v1573_v11 = vadd.f32 %v1561_v4, %v1497_v58  ;;  %v1709_v58 = vld [vmem:[%s4256_s6 + $0x18] sm:$0xff] }
 0x747   :  { %v1572_v13 = vadd.f32 %v1566_v10, %v1495_v31  ;;  %v2952_v31 = vpack.c.bf16 %v1707_v28, %v1706_v27  ;;  %v2956_v35 = vpack.c.bf16 %v1709_v58, %v1708_v29  ;;  %v3053_v28 = vld [vmem:[%s4257_s7 + $0xa0] sm:$0xff]  }
 0x748   :  { %1646 = vrot.lane.b32.xlu1 %v1635_v0, %s3127_s25  ;;  %v1563_v6 = vpop.permute.xlu0 %1562 }
 0x749   :  { %1644 = vrot.lane.b32.xlu0 %v1634_v1, %s3127_s25  ;;  %v1565_v5 = vpop.permute.xlu1 %1564  ;;  %2953 = vmatprep.subr.bf16.mxu0 %v2952_v31  ;;  %s3149_s25 = smov 97  }
 0x74a   :  { %v1567_v19 = vsel %vm720_vm6, %v1563_v6, %v1565_v5  ;;  %v1575_v23 = vadd.f32 %v1565_v5, %v3761_v59  ;;  %2955 = vmatpush3.bf16.msra.mxu0 %v2952_v31  ;;  %v3054_v31 = vld [vmem:[%s4257_s7 + $0xa8] sm:$0xff]  }
 0x74b   :  { %v1574_v59 = vadd.f32 %v1567_v19, %v3759_v32  ;;  %2957 = vmatprep.subr.bf16.mxu0 %v2956_v35 }
 0x74c   :  { %v1641_v9 = vpop.permute.xlu0 %1640 }
 0x74d   :  { %v1643_v7 = vpop.permute.xlu1 %1642 }
 0x74e   :  { %v1648_v21 = vsel %vm858_vm8, %v1641_v9, %v1643_v7  ;;  %2959 = vmatpush3.bf16.msra.mxu0 %v2956_v35 }
 0x74f   :  { %2961 = vmatprep.subr.bf16.mxu0 %v2960_v43 }
 0x752   :  { %2963 = vmatpush3.bf16.msra.mxu0 %v2960_v43 }
 0x753   :  { %2965 = vmatprep.subr.bf16.mxu0 %v2964_v48 }
 0x756   :  { %2967 = vmatpush3.bf16.msra.mxu0 %v2964_v48  ;;  %v3061_v48 = vld [vmem:[%s4257_s7 + $0xc0] sm:$0xff]  }
 0x757   :  { %2969 = vmatprep.subr.bf16.mxu0 %v2968_v51 }
 0x75a   :  { %2971 = vmatpush3.bf16.msra.mxu0 %v2968_v51  ;;  %v3062_v51 = vld [vmem:[%s4257_s7 + $0x50] sm:$0xff]  }
 0x75b   :  { %2973 = vmatprep.subr.bf16.mxu0 %v2972_v53 }
 0x75e   :  { %2975 = vmatpush3.bf16.msra.mxu0 %v2972_v53  ;;  %v3063_v53 = vld [vmem:[%s4257_s7 + $0x10] sm:$0xff]  }
 0x75f   :  { %2977 = vmatprep.subr.bf16.mxu0 %v2976_v56 }
 0x762   :  { %2979 = vmatpush3.bf16.msra.mxu0 %v2976_v56  ;;  %v3065_v56 = vld [vmem:[%s4257_s7 + $0x58] sm:$0xff]  }
 0x7b2   :  { %v1605_v20 = vpop.permute.xlu1 %1604 }
 0x7b3   :  { %v1617_v8 = vadd.f32 %v1605_v20, %v1573_v11  ;;  %v1603_v15 = vpop.permute.xlu0 %1602 }
 0x7b4   :  { %v1610_v16 = vsel %vm803_vm7, %v1603_v15, %v1605_v20 }
 0x7b5   :  { %v3783_v17 = vadd.f32 %v1643_v7, %v1617_v8  ;;  %v1616_v18 = vadd.f32 %v1610_v16, %v1572_v13 }
 0x7b6   :  { %v1609_v22 = vpop.permute.xlu1 %1608 }
 0x7b7   :  { %v1659_v24 = vmax.f32 %v3783_v17, 0.0  ;;  %v1654_v25 = vadd.f32 %v1648_v21, %v1616_v18  ;;  %v1607_v26 = vpop.permute.xlu0 %1606  ;;  %v1619_v34 = vadd.f32 %v1609_v22, %v1575_v23  ;;  %v3049_v21 = vld [vmem:[%s4257_s7 + $0x80] sm:$0xff]   ;;  %v3051_v23 = vld [vmem:[%s4257_s7 + $0x90] sm:$0xff]  }
 0x7b8   :  { %v1611_v30 = vsel %vm803_vm7, %v1607_v26, %v1609_v22  ;;  %vm1729_vm7 = vcmask 1040384   ;;  %v3050_v22 = vld [vmem:[%s4257_s7 + $0x88] sm:$0xff]   ;;  %v3146_v26 = vmov 1966171168  }
 0x7b9   :  { %v3803_v33 = vmax.f32 %v1654_v25, 0.0  ;;  %1674 = vrot.lane.b32.xlu1 %v1659_v24, %s3126_s1  ;;  %v1618_v39 = vadd.f32 %v1611_v30, %v1574_v59  ;;  %v1808_v25 = vlaneseq  ;;  %v1815_v27 = vunpack.c.l.s4 %v3146_v26  ;;  %v3055_v59 = vld [vmem:[%s4257_s7 + $0xb0] sm:$0xff]  }
 0x7ba   :  { %v1647_v38 = vpop.permute.xlu1 %1646 }
 0x7bb   :  { %v1657_v41 = vadd.f32 %v1647_v38, %v1619_v34  ;;  %1664 = vrot.lane.b32.xlu0 %v3803_v33, %s3126_s1  ;;  %v1645_v32 = vpop.permute.xlu0 %1644  ;;  %v1816_v29 = vunpack.c.0.s8 %v1815_v27  ;;  %v3879_v30 = vshrl.u32 %v1808_v25, 7  ;;  %vm1839_vm0 = vcmp.ge.s32.totalorder %v1808_v25, 25 }
 0x7bc   :  { %v1649_v42 = vsel %vm858_vm8, %v1645_v32, %v1647_v38  ;;  %vm2981_vm8 = vmpackc.low %vm1729_vm7, %vm3129_vm11  ;;  %vm1722_vm11 = vcmask 990208   ;;  %v3058_v32 = vld [vmem:[%s4257_s7 + $0xb8] sm:$0xff]   ;;  %vm1840_vm1 = vcmp.lt.s32.totalorder %v1808_v25, 50  ;;  %vm1847_vm4 = vcmp.ge.s32.totalorder %v1808_v25, 50 }
 0x7bd   :  { %v1661_v44 = vmax.f32 %v1657_v41, 0.0  ;;  %v1656_v45 = vadd.f32 %v1649_v42, %v1618_v39  ;;  %2982 = vmatprep.subr.msk.bf16.mxu0 %vm2981_vm8, %v2980_v61  ;;  %v3886_v58 = vsub.s32 %v1816_v29, %v3879_v30  ;;  %v3057_v41 = vld [vmem:[%s4257_s7] sm:$0xff]   ;;  %vm1841_vm2 = vmand %vm1839_vm0, %vm1840_vm1  ;;  %vm1855_vm14 = vcmp.ge.s32.totalorder %v1808_v25, 75 }
 0x7be   :  { %2985 = vmatpush3.bf16.msk.msra.mxu0 %vm2981_vm8, %v2980_v61  ;;  %2761 = vmatpush3.bf16.msra.mxu1 %v3057_v41  ;;  %vm3998_vm15 = vcmp.lt.s32.totalorder %v1808_v25, 100  ;;  %vm1877_vm7 = vcmp.ge.s32.totalorder %v1808_v25, 100  ;;  %vm1878_vm8 = vcmp.lt.s32.totalorder %v1808_v25, 125  ;;  %vm4007_vm0 = vcmp.ge.s32.totalorder %v1808_v25, 125 }
 0x7bf   :  { %v1660_v2 = vmax.f32 %v1656_v45, 0.0  ;;  %1676 = vrot.lane.b32.xlu1 %v1661_v44, %s3126_s1  ;;  %2353 = vmatprep.subr.bf16.mxu0 %v3123_v40  ;;  %vm4012_vm1 = vcmp.lt.s32.totalorder %v1808_v25, 150  ;;  %vm4069_vm3 = vcmp.ge.s32.totalorder %v1808_v25, 122  ;;  %vm4111_vm5 = vcmp.ge.s32.totalorder %v1808_v25, 69 }
 0x7c0   :  { %2762 = vmatprep.subr.bf16.mxu1 %v3059_v46  ;;  %v3090_v46 = vld [vmem:[%s4261_s11 + $0x10] sm:$0xff]  }
 0x7c1   :  { %1666 = vrot.lane.b32.xlu0 %v1660_v2, %s3126_s1 }
 0x82b   :  { %v1675_v62 = vpop.permute.xlu1 %1674 }
 0x82c   :  { %v1685_v63 = vmax.f32 %v1659_v24, %v1675_v62  ;;  %v3052_v24 = vld [vmem:[%s4257_s7 + $0x98] sm:$0xff]  }
 0x82d   :  { %v1665_v0 = vpop.permute.xlu0 %1664 }
 0x82e   :  { %v1678_v1 = vsel %vm720_vm6, %v1665_v0, %v1675_v62  ;;  %1694 = vrot.lane.b32.xlu1 %v1685_v63, %s3142_s30  ;;  %v1670_v10 = vmax.f32 %v3803_v33, %v1665_v0  ;;  %v3066_v62 = vld [vmem:[%s4257_s7 + $0x18] sm:$0xff]   ;;  %v3067_v63 = vld [vmem:[%s4257_s7 + $0xd0] sm:$0xff]  }
 0x82f   :  { %v1684_v4 = vmax.f32 %v3803_v33, %v1678_v1  ;;  %v3068_v1 = vld [vmem:[%s4257_s7 + $0x60] sm:$0xff]  }
 0x831   :  { %1692 = vrot.lane.b32.xlu0 %v1684_v4, %s3142_s30  ;;  %v1677_v12 = vpop.permute.xlu1 %1676 }
 0x832   :  { %v1687_v5 = vmax.f32 %v1661_v44, %v1677_v12 }
 0x833   :  { %v1667_v6 = vpop.permute.xlu0 %1666 }
 0x834   :  { %v1679_v7 = vsel %vm720_vm6, %v1667_v6, %v1677_v12  ;;  %1698 = vrot.lane.b32.xlu1 %v1687_v5, %s3142_s30  ;;  %v1671_v15 = vmax.f32 %v1660_v2, %v1667_v6  ;;  %vm1810_vm6 = vcmp.lt.s32.totalorder %v1808_v25, 25  ;;  %v3069_v5 = vld [vmem:[%s4257_s7 + $0x20] sm:$0xff]   ;;  %v3070_v6 = vld [vmem:[%s4257_s7 + $0xd8] sm:$0xff]  }
 0x835   :  { %v1686_v9 = vmax.f32 %v1660_v2, %v1679_v7  ;;  %v3060_v2 = vld [vmem:[%s4257_s7 + $0x8] sm:$0xff]  }
 0x836   :  { %2763 = vmatpush3.bf16.msra.mxu1 %v3060_v2 }
 0x837   :  { %1696 = vrot.lane.b32.xlu0 %v1686_v9, %s3142_s30  ;;  %2764 = vmatprep.subr.bf16.mxu1 %v3062_v51  ;;  %v3071_v9 = vld [vmem:[%s4257_s7 + $0x68] sm:$0xff]  }
 0x83a   :  { %2765 = vmatpush3.bf16.msra.mxu1 %v3063_v53 }
 0x83b   :  { %2766 = vmatprep.subr.bf16.mxu1 %v3065_v56 }
 0x83e   :  { %2767 = vmatpush3.bf16.msra.mxu1 %v3066_v62 }
 0x83f   :  { %2768 = vmatprep.subr.bf16.mxu1 %v3068_v1 }
 0x842   :  { %2769 = vmatpush3.bf16.msra.mxu1 %v3069_v5 }
 0x843   :  { %2770 = vmatprep.subr.bf16.mxu1 %v3071_v9  ;;  %v2051_v9 = vsub.s32 3, %v3879_v30 }
 0x8a0   :  { %v1695_v11 = vpop.permute.xlu1 %1694 }
 0x8a3   :  { %v1693_v20 = vpop.permute.xlu0 %1692 }
 0x8a4   :  { %v1700_v13 = vsel %vm1330_vm9, %v1693_v20, %v1695_v11 }
 0x8a5   :  { %v1704_v8 = vmax.f32 %v1670_v10, %v1700_v13  ;;  %v3072_v10 = vld [vmem:[%s4257_s7 + $0x28] sm:$0xff]   ;;  %v3073_v13 = vld [vmem:[%s4257_s7 + $0xe0] sm:$0xff]  }
 0x8a6   :  { %v1699_v16 = vpop.permute.xlu1 %1698  ;;  %2771 = vmatpush3.bf16.msra.mxu1 %v3072_v10  ;;  %v2039_v10 = vsub.s32 0, %v3879_v30 }
 0x8a7   :  { %2880 = vmatprep.mubr.msk.f32.mxu0 %vm1722_vm11, %v1704_v8  ;;  %v3074_v8 = vld [vmem:[%s4257_s7 + $0x70] sm:$0xff]  }
 0x8a8   :  { %2772 = vmatprep.subr.bf16.mxu1 %v3074_v8 }
 0x8a9   :  { %v1697_v17 = vpop.permute.xlu0 %1696 }
 0x8aa   :  { %v1701_v18 = vsel %vm1330_vm9, %v1697_v17, %v1699_v16  ;;  %v3075_v16 = vld [vmem:[%s4257_s7 + $0x30] sm:$0xff]   ;;  %vm1848_vm9 = vcmp.lt.s32.totalorder %v1808_v25, 75 }
 0x8ab   :  { %v1705_v19 = vmax.f32 %v1671_v15, %v1701_v18  ;;  %v3076_v18 = vld [vmem:[%s4257_s7 + $0xe8] sm:$0xff]   ;;  %2773 = vmatpush3.bf16.msra.mxu1 %v3075_v16  ;;  %vm1849_vm13 = vmand %vm1847_vm4, %vm1848_vm9  ;;  %vm4022_vm4 = vcmp.lt.s32.totalorder %v1808_v25, 47  ;;  %vm1892_vm9 = vcmask 1022976  }
 0x8ad   :  { %2881 = vmatmul.mubr.msk.f32.vlgmr.msra.gmra.mrb[34].mxu0 %vm1722_vm11, %v1705_v19  ;;  %v3077_v19 = vld [vmem:[%s4257_s7 + $0x78] sm:$0xff]   ;;  %vm1857_vm11 = vmand %vm1855_vm14, %vm3998_vm15  ;;  %vm4032_vm14 = vcmp.lt.s32.totalorder %v1808_v25, 72 }
 0x8ae   :  { %2354 = vmatpush1.bf16.msra.mxu0 %v3049_v21  ;;  %v3079_v21 = vld [vmem:[%s4257_s7 + $0xf0] ss:$0 sps:$4 sm:$0x33]   ;;  %2774 = vmatprep.subr.bf16.mxu1 %v3077_v19 }
 0x8af   :  { %2355 = vmatprep.subr.bf16.mxu0 %v3123_v40  ;;  %v2311_v26 = vsel %vm4265_vm10, %v3079_v21, 0  ;;  %vm4055_vm10 = vcmp.ge.s32.totalorder %v1808_v25, 97 }
 0x8b2   :  { %2356 = vmatpush1.bf16.msra.mxu0 %v3050_v22  ;;  %v3078_v22 = vld [vmem:[%s4257_s7 + $0x38] sm:$0xff]  }
 0x8b3   :  { %2357 = vmatprep.subr.bf16.mxu0 %v3123_v40  ;;  %2775 = vmatpush3.bf16.msra.mxu1 %v3078_v22  ;;  %v3080_v22 = vld [vmem:[%s4259_s9] sm:$0xff]  }
 0x8b4   :  { %2883 = vmatprep.subr.bf16.mxu1 %v3601_v14 }
 0x8b6   :  { %2358 = vmatpush1.bf16.msra.mxu0 %v3051_v23 }
 0x8b7   :  { %2359 = vmatprep.subr.bf16.mxu0 %v3123_v40 }
 0x8ba   :  { %2360 = vmatpush1.bf16.msra.mxu0 %v3052_v24  ;;  %v2027_v24 = vld [vmem:[%s4263_s13] sm:$0x1] }
 0x8bb   :  { %2361 = vmatprep.subr.bf16.mxu0 %v3123_v40 }
 0x8be   :  { %2362 = vmatpush1.bf16.msra.mxu0 %v3053_v28 }
 0x8bf   :  { %2363 = vmatprep.subr.bf16.mxu0 %v3123_v40 }
 0x8c2   :  { %2364 = vmatpush1.bf16.msra.mxu0 %v3054_v31 }
 0x8c3   :  { %2365 = vmatprep.subr.bf16.mxu0 %v3123_v40 }
 0x8c6   :  { %2366 = vmatpush1.bf16.msra.mxu0 %v3055_v59 }
 0x8c7   :  { %2367 = vmatprep.subr.bf16.mxu0 %v3123_v40 }
 0x8ca   :  { %2368 = vmatpush1.bf16.msra.mxu0 %v3058_v32 }
 0x8cb   :  { %2369 = vmatprep.subr.bf16.mxu0 %v3123_v40 }
 0x8ce   :  { %2370 = vmatpush1.bf16.msra.mxu0 %v3061_v48  ;;  %v3093_v48 = vld [vmem:[%s4261_s11 + $0x28] ss:$0 sps:$4 sm:$0x33]  }
 0x8cf   :  { %2371 = vmatprep.subr.bf16.mxu0 %v3123_v40 }
 0x8d2   :  { %2372 = vmatpush1.bf16.msra.mxu0 %v3064_v54 }
 0x8d3   :  { %2373 = vmatprep.subr.bf16.mxu0 %v3123_v40 }
 0x8d6   :  { %2374 = vmatpush1.bf16.msra.mxu0 %v3067_v63 }
 0x8d7   :  { %2375 = vmatprep.subr.bf16.mxu0 %v3123_v40 }
 0x8da   :  { %2376 = vmatpush1.bf16.msra.mxu0 %v3070_v6 }
 0x8db   :  { %2377 = vmatprep.subr.bf16.mxu0 %v3123_v40 }
 0x8de   :  { %2378 = vmatpush1.bf16.msra.mxu0 %v3073_v13 }
 0x8df   :  { %2379 = vmatprep.subr.bf16.mxu0 %v3123_v40 }
 0x8e2   :  { %2380 = vmatpush1.bf16.msra.mxu0 %v3076_v18 }
 0x8e3   :  { %2381 = vmatprep.subr.bf16.mxu0 %v3123_v40 }
 0x8e6   :  { %2382 = vmatpush1.bf16.msra.mxu0 %v2311_v26  ;;  %v3084_v26 = vld [vmem:[%s4259_s9 + $0x20] sm:$0xff]  }
 0x980   :  { %v2882_v33 = vpop.f32.mrb[34].mxu0 }
 0x981   :  { %v1922_v34 = vrot.slane %v2882_v33, %v3886_v58  ;;  %v1799_v35 = vpop.f32.mrb[35].mxu0  ;;  %v1971_v3 = vcombine.high %v2882_v33, %v2882_v33 }
 0x982   :  { %1812 = vst.msk [vmem:[#allocation6] sm:$0x1] %vm1810_vm6, %v1799_v35  ;;  %v1820_v36 = vrot.slane %v1799_v35, %v3886_v58  ;;  %v1859_v39 = vcombine.high %v1799_v35, %v1799_v35  ;;  %vm1879_vm6 = vmand %vm1877_vm7, %vm1878_vm8  ;;  %vm4041_vm8 = vcmp.ge.s32.totalorder %v1808_v25, 72 }
 0x983   :  { %v1929_v38 = vrot.slane %v1922_v34, %v3886_v58  ;;  %v1937_v43 = vcombine.high %v1922_v34, %v1922_v34  ;;  %v1978_v57 = vrot.slane %v1971_v3, %v3886_v58  ;;  %vm1897_vm7 = vmand %vm4007_vm0, %vm4012_vm1  ;;  %vm4060_vm0 = vcmp.lt.s32.totalorder %v1808_v25, 122 }
 0x984   :  { %v1821_v42 = vcombine.high %v1820_v36, %v1820_v36  ;;  %v1866_v47 = vrot.slane %v1859_v39, %v3886_v58  ;;  %v1828_v50 = vrot.slane %v1820_v36, %v3886_v58 }
 0x985   :  { %v1952_v44 = vcombine.high %v1929_v38, %v1929_v38  ;;  %1930 = vrot.lane.b32.xlu0 %v1929_v38, %s3145_s18  ;;  %v1944_v49 = vrot.slane %v1937_v43, %v3886_v58  ;;  %s3148_s18 = smov 25   ;;  %v1993_v4 = vcombine.high %v1978_v57, %v1978_v57  ;;  %v1985_v15 = vrot.slane %v1978_v57, %v3886_v58  ;;  %v3088_v43 = vld [vmem:[%s4261_s11] sm:$0xff]  }
 0x986   :  { %v1835_v45 = vrot.slane %v1821_v42, %v3886_v58  ;;  %v1873_v52 = vrot.slane %v1866_v47, %v3886_v58  ;;  %v1843_v55 = vcombine.high %v1828_v50, %v1828_v50  ;;  %v1881_v60 = vcombine.high %v1866_v47, %v1866_v47  ;;  %v3091_v47 = vld [vmem:[%s4261_s11 + $0x18] sm:$0xff]  }
 0x987   :  { %1953 = vrot.lane.b32.xlu1 %v1952_v44, %s3147_s4  ;;  %v1963_v61 = vcombine.high %v1944_v49, %v1944_v49  ;;  %s3152_s4 = smov 75   ;;  %v2000_v11 = vrot.slane %v1993_v4, %v3886_v58  ;;  %v2008_v23 = vcombine.high %v1985_v15, %v1985_v15 }
 0x988   :  { %v1851_v0 = vcombine.high %v1835_v45, %v1835_v45  ;;  %v1888_v12 = vrot.slane %v1881_v60, %v3886_v58  ;;  %v1899_v7 = vcombine.high %v1873_v52, %v1873_v52 }
 0x989   :  { %1836 = vrot.lane.b32.xlu0 %v1835_v45, %s3148_s18  ;;  %s3153_s18 = smov 125   ;;  %v2016_v17 = vcombine.high %v2000_v11, %v2000_v11 }
 0x98a   :  { %v1907_v20 = vcombine.high %v1888_v12, %v1888_v12 }
 0x98b   :  { %1945 = vrot.lane.b32.xlu1 %v1944_v49, %s3149_s25  ;;  %s3159_s25 = smov 94  }
 0x98d   :  { %1874 = vrot.lane.b32.xlu0 %v1873_v52, %s3143_s0  ;;  %s3151_s0 = smov 19  }
 0x98f   :  { %1844 = vrot.lane.b32.xlu1 %v1843_v55, %s3150_s29  ;;  %s3155_s29 = smov 47  }
 0x991   :  { %1964 = vrot.lane.b32.xlu0 %v1963_v61, %s3151_s0 }
 0x993   :  { %1852 = vrot.lane.b32.xlu1 %v1851_v0, %s3152_s4 }
 0x995   :  { %1889 = vrot.lane.b32.xlu0 %v1888_v12, %s3153_s18  ;;  %s3158_s18 = smov 69  }
 0x997   :  { %1900 = vrot.lane.b32.xlu1 %v1899_v7, %s3154_s23  ;;  %v2043_v7 = vsub.s32 1, %v3879_v30 }
 0x999   :  { %1908 = vrot.lane.b32.xlu0 %v1907_v20, %s3155_s29 }
 0x99b   :  { %1986 = vrot.lane.b32.xlu1 %v1985_v15, %s3156_s5 }
 0x99d   :  { %2017 = vrot.lane.b32.xlu0 %v2016_v17, %s3157_s16 }
 0x99f   :  { %2001 = vrot.lane.b32.xlu1 %v2000_v11, %s3158_s18  ;;  %v2047_v11 = vsub.s32 2, %v3879_v30  ;;  %v3081_v30 = vld [vmem:[%s4259_s9 + $0x8] sm:$0xff]  }
 0x9a1   :  { %2009 = vrot.lane.b32.xlu0 %v2008_v23, %s3159_s25  ;;  %v3082_v23 = vld [vmem:[%s4259_s9 + $0x10] sm:$0xff]  }
 0x9a3   :  { %2029 = vrot.lane.b32.xlu1 %v2027_v24, %s3160_s26  ;;  %v3083_v24 = vld [vmem:[%s4259_s9 + $0x18] sm:$0xff]  }
 0x9f7   :  { %v1931_v27 = vpop.permute.xlu0 %1930 }
 0x9f9   :  { %v1954_v28 = vpop.permute.xlu1 %1953 }
 0x9fa   :  { %v1955_v50 = vrot.slane %v1954_v28, 7 }
 0x9fb   :  { %v1837_v29 = vpop.permute.xlu0 %1836 }
 0x9fc   :  { %1842 = vst.msk [vmem:[#allocation6] sm:$0x1] %vm1841_vm2, %v1837_v29  ;;  %vm4017_vm2 = vcmp.ge.s32.totalorder %v1808_v25, 22  ;;  %v3087_v29 = vld [vmem:[%s4259_s9 + $0x38] ss:$0 sps:$4 sm:$0xff]  }
 0x9fd   :  { %v1946_v40 = vpop.permute.xlu1 %1945 }
 0x9ff   :  { %v1875_v31 = vpop.permute.xlu0 %1874 }
 0xa01   :  { %v1845_v59 = vpop.permute.xlu1 %1844 }
 0xa02   :  { %1850 = vst.msk [vmem:[#allocation6] sm:$0x1] %vm1849_vm13, %v1845_v59  ;;  %vm4027_vm13 = vcmp.ge.s32.totalorder %v1808_v25, 47  ;;  %v2122_v59 = vld [vmem:[%s4258_s8] sm:$0x1] }
 0xa03   :  { %v1965_v33 = vpop.permute.xlu0 %1964  ;;  %vm1913_vm1 = vmand %vm4027_vm13, %vm4032_vm14  ;;  %vm4088_vm13 = vcmp.lt.s32.totalorder %v1808_v25, 44  ;;  %vm1956_vm14 = vcmask 998400  }
 0xa04   :  { %v1957_v62 = vsel %vm1956_vm14, %v1955_v50, %v1954_v28  ;;  %vm2032_vm14 = vcmp.ge.s32.totalorder %v1808_v25, 16  ;;  %v3086_v28 = vld [vmem:[%s4259_s9 + $0x30] sm:$0xff]   ;;  %v2410_v50 = vld [vmem:[%s4260_s10] sm:$0x1] }
 0xa05   :  { %v1853_v34 = vpop.permute.xlu1 %1852 }
 0xa06   :  { %1858 = vst.msk [vmem:[#allocation6] sm:$0x1] %vm1857_vm11, %v1853_v34  ;;  %vm4046_vm11 = vcmp.lt.s32.totalorder %v1808_v25, 97 }
 0xa07   :  { %1880 = vst.msk [vmem:[#allocation6] sm:$0x1] %vm1879_vm6, %v1875_v31  ;;  %v1890_v39 = vpop.permute.xlu0 %1889  ;;  %vm1905_vm6 = vmand %vm4017_vm2, %vm4022_vm4  ;;  %vm4074_vm2 = vcmp.lt.s32.totalorder %v1808_v25, 147 }
 0xa08   :  { %v1891_v42 = vrot.slane %v1890_v39, 7  ;;  %vm1935_vm4 = vmand %vm4041_vm8, %vm4046_vm11  ;;  %vm4097_vm8 = vcmp.ge.s32.totalorder %v1808_v25, 44  ;;  %vm4102_vm11 = vcmp.lt.s32.totalorder %v1808_v25, 69 }
 0xa09   :  { %v1901_v45 = vpop.permute.xlu1 %1900 }
 0xa0a   :  { %v1893_v2 = vsel %vm1892_vm9, %v1891_v42, %v1890_v39  ;;  %vm4083_vm9 = vcmp.ge.s32.totalorder %v1808_v25, 19 }
 0xa0b   :  { %1898 = vst.msk [vmem:[#allocation6] sm:$0x3] %vm1897_vm7, %v1893_v2  ;;  %v1909_v51 = vpop.permute.xlu0 %1908  ;;  %vm1950_vm7 = vmand %vm4055_vm10, %vm4060_vm0  ;;  %vm4116_vm10 = vcmp.lt.s32.totalorder %v1808_v25, 94  ;;  %v3092_v2 = vld [vmem:[%s4261_s11 + $0x20] sm:$0xff]  }
 0xa0c   :  { %1906 = vst.msk [vmem:[#allocation6 + $0x1] sm:$0x1] %vm1905_vm6, %v1901_v45  ;;  %vm1961_vm6 = vmand %vm4069_vm3, %vm4074_vm2  ;;  %vm4130_vm3 = vcmp.lt.s32.totalorder %v1808_v25, 119  ;;  %v3089_v45 = vld [vmem:[%s4261_s11 + $0x8] sm:$0xff]   ;;  %s3161_s11 = smov [#allocation7]  }
 0xa0d   :  { %1914 = vst.msk [vmem:[#allocation6 + $0x1] sm:$0x1] %vm1913_vm1, %v1909_v51  ;;  %v1987_v55 = vpop.permute.xlu1 %1986  ;;  %vm1969_vm0 = vmand %vm4083_vm9, %vm4088_vm13  ;;  %vm4125_vm1 = vcmp.ge.s32.totalorder %v1808_v25, 94  ;;  %vm4144_vm9 = vcmp.lt.s32.totalorder %v1808_v25, 144  ;;  %s2605_s29 = sshll.u32 %s3161_s11, 4  ;;  %s2606_s29 = int_to_ptr.vmem [resolvable:$true] %s2605_s29 }
 0xa0e   :  { %1936 = vst.msk [vmem:[#allocation6 + $0x1] sm:$0x1] %vm1935_vm4, %v1931_v27  ;;  %vm1991_vm2 = vmand %vm4097_vm8, %vm4102_vm11  ;;  %vm4139_vm4 = vcmp.ge.s32.totalorder %v1808_v25, 119  ;;  %v3085_v27 = vld [vmem:[%s4259_s9 + $0x28] sm:$0xff]   ;;  %s3095_s10 = scalar_lea.vmem %s2606_s29, 16  ;;  %s3099_s2 = scalar_lea.vmem %s2606_s29, 32 }
 0xa0f   :  { %1951 = vst.msk [vmem:[#allocation6 + $0x1] sm:$0x1] %vm1950_vm7, %v1946_v40  ;;  %v2018_v63 = vpop.permute.xlu0 %2017  ;;  %vm2006_vm13 = vmand %vm4111_vm5, %vm4116_vm10  ;;  %vm2020_vm7 = vcmask 973824   ;;  %vm4317_vm10 = vcmask 1041408   ;;  %p3096_p0 = scmp.ne.s32.totalorder %s2606_s29, %s3095_s10  ;;  %p3100_p1 = scmp.lt.s32.totalorder %s2606_s29, %s2606_s29 }
 0xa10   :  { %1962 = vst.msk [vmem:[#allocation6 + $0x1] sm:$0x3] %vm1961_vm6, %v1957_v62  ;;  %v2019_v4 = vrot.slane %v2018_v63, 7  ;;  %vm2014_vm8 = vmand %vm4125_vm1, %vm4130_vm3  ;;  %vm2456_vm6 = vcmask 982016   ;;  %v2555_v49 = vsel %vm4317_vm10, %v3093_v48, 0  ;;  %vm2597_vm1 = vcmask 8192   ;;  %p3101_p2 = scmp.lt.s32.totalorder %s3099_s2, %s3095_s10 }
 0xa11   :  { %1970 = vst.msk [vmem:[#allocation6 + $0x2] sm:$0x1] %vm1969_vm0, %v1965_v33  ;;  %v2002_v12 = vpop.permute.xlu1 %2001  ;;  %vm2025_vm11 = vmand %vm4139_vm4, %vm4144_vm9  ;;  %vm2550_vm0 = vcmask 687104  }
 0xa12   :  { %1992 = vst.msk [vmem:[#allocation6 + $0x2] sm:$0x1] %vm1991_vm2, %v1987_v55  ;;  %vm2033_vm5 = vmand %vm2032_vm14, %vm3998_vm15  ;;  %v2021_v25 = vsel %vm2020_vm7, %v2019_v4, %v2018_v63  ;;  %vm4315_vm15 = vmmov 0   ;;  %p3102_p3 = por %p3101_p2, %p3100_p1 }
 0xa13   :  { %2007 = vst.msk [vmem:[#allocation6 + $0x2] sm:$0x1] %vm2006_vm13, %v2002_v12  ;;  %v2010_v5 = vpop.permute.xlu0 %2009 }
 0xa14   :  { %2015 = vst.msk [vmem:[#allocation6 + $0x2] sm:$0x1] %vm2014_vm8, %v2010_v5  ;;  %p3103_p4 = pnand %p3102_p3, %p3096_p0 }
 0xa15   :  { %v2030_v6 = vpop.permute.xlu1 %2029  ;;  %2026 = vst.msk [vmem:[#allocation6 + $0x2] sm:$0x3] %vm2025_vm11, %v2021_v25 }
 0xa16   :  { %2034 = vst.msk [vmem:[#allocation6 + $0x3] sm:$0x1] %vm2033_vm5, %v2030_v6 }
 0xa1d   :  { %v2035_v20 = vld [vmem:[#allocation6] sm:$0xf] }
 0xa1e   :  { %v2044_v13 = vrot.slane %v2035_v20, %v2043_v7  ;;  %v2052_v8 = vrot.slane %v2035_v20, %v2051_v9  ;;  %v2040_v15 = vrot.slane %v2035_v20, %v2039_v10  ;;  %v2048_v16 = vrot.slane %v2035_v20, %v2047_v11 }
 0xa20   :  { %v2058_v17 = vpack.c.bf16 %v2044_v13, %v2044_v13  ;;  %v2060_v18 = vpack.c.bf16 %v2052_v8, %v2052_v8  ;;  %v2057_v19 = vpack.c.bf16 %v2040_v15, %v2040_v15  ;;  %v2059_v21 = vpack.c.bf16 %v2048_v16, %v2048_v16 }
 0xa22   :  { %2345 = vmatprep.mubr.bf16.mxu1 %v2058_v17  ;;  %2699 = vmatprep.mubr.msk.bf16.mxu0 %vm1344_vm12, %v2060_v18  ;;  %vm4316_vm12 = vcmask 1043456  }
 0xa23   :  { %2346 = vmatmul.mubr.bf16.vlgmr.msra.gmra.mrb[40].mxu1 %v2057_v19  ;;  %2386 = vmatmul.mubr.bf16.vlgmr.msra.gmra.mrb[36].mxu0 %v2059_v21  ;;  %v2461_v40 = vsel %vm4316_vm12, %v3087_v29, 0 }
 0xa24   :  { %2884 = vmatpush3.bf16.msra.mxu1 %v3080_v22  ;;  %2899 = vmatprep.mubr.msk.bf16.mxu1 %vm4315_vm15, %v3601_v14 }
 0xa25   :  { %2885 = vmatprep.subr.bf16.mxu1 %v3601_v14 }
 0xa28   :  { %2886 = vmatpush3.bf16.msra.mxu1 %v3081_v30 }
 0xa29   :  { %2887 = vmatprep.subr.bf16.mxu1 %v3601_v14 }
 0xa2c   :  { %2888 = vmatpush3.bf16.msra.mxu1 %v3082_v23 }
 0xa2d   :  { %2889 = vmatprep.subr.bf16.mxu1 %v3601_v14 }
 0xa30   :  { %2890 = vmatpush3.bf16.msra.mxu1 %v3083_v24 }
 0xa31   :  { %2891 = vmatprep.subr.bf16.mxu1 %v3601_v14 }
 0xa34   :  { %2892 = vmatpush3.bf16.msra.mxu1 %v3084_v26 }
 0xa35   :  { %2893 = vmatprep.subr.bf16.mxu1 %v3601_v14 }
 0xa38   :  { %2894 = vmatpush3.bf16.msra.mxu1 %v3085_v27 }
 0xa39   :  { %2895 = vmatprep.subr.bf16.mxu1 %v3601_v14 }
 0xa3c   :  { %2896 = vmatpush3.bf16.msra.mxu1 %v3086_v28 }
 0xa3d   :  { %2897 = vmatprep.subr.bf16.mxu1 %v3601_v14 }
 0xa40   :  { %2898 = vmatpush3.bf16.msra.mxu1 %v2461_v40 }
 0xa41   :  { %2903 = vmatprep.subr.bf16.mxu1 %v3601_v14 }
 0xaf6   :  { %v2776_v31 = vpop.f32.mrb[40].mxu1  ;;  %v2387_v58 = vpop.f32.mrb[36].mxu0 }
 0xaf7   :  { %v2777_v33 = vpop.f32.mrb[41].mxu1  ;;  %v2389_v34 = vpop.f32.mrb[37].mxu0 }
 0xaf8   :  { %v2778_v35 = vadd.f32 %v2777_v33, %v2776_v31  ;;  %v2779_v36 = vpop.f32.mrb[42].mxu1  ;;  %v2390_v37 = vpop.f32.mrb[38].mxu0 }
 0xaf9   :  { %v2780_v38 = vpop.f32.mrb[43].mxu1  ;;  %v2391_v39 = vpop.f32.mrb[39].mxu0 }
 0xafa   :  { %v2348_v41 = vadd.f32 %v2778_v35, %v2122_v59 }
 0xafc   :  { %v2388_v32 = vadd.f32 %v2387_v58, %v2348_v41 }
 0xafe   :  { %v2393_v42 = vmax.f32 %v2388_v32, 0.0 }
 0xb00   :  { %v2394_v44 = vpack.c.bf16 %v2393_v42, %v2393_v42 }
 0xb02   :  { %2900 = vmatmul.mubr.msk.bf16.vlgmr.msra.gmra.mrb[44].mxu1 %vm2456_vm6, %v2394_v44 }
 0xb03   :  { %2904 = vmatpush3.bf16.msra.mxu1 %v3088_v43  ;;  %2915 = vmatprep.mubr.msk.bf16.mxu1 %vm4315_vm15, %v3601_v14 }
 0xb04   :  { %2905 = vmatprep.subr.bf16.mxu1 %v3601_v14 }
 0xb07   :  { %2906 = vmatpush3.bf16.msra.mxu1 %v3089_v45 }
 0xb08   :  { %2907 = vmatprep.subr.bf16.mxu1 %v3601_v14 }
 0xb0b   :  { %2908 = vmatpush3.bf16.msra.mxu1 %v3090_v46 }
 0xb0c   :  { %2909 = vmatprep.subr.bf16.mxu1 %v3601_v14 }
 0xb0f   :  { %2910 = vmatpush3.bf16.msra.mxu1 %v3091_v47 }
 0xb10   :  { %2911 = vmatprep.subr.bf16.mxu1 %v3601_v14 }
 0xb13   :  { %2912 = vmatpush3.bf16.msra.mxu1 %v3092_v2 }
 0xb14   :  { %2913 = vmatprep.subr.bf16.mxu1 %v3601_v14  ;;  %v2516_v14 = vld [vmem:[%s4262_s12] sm:$0x1] }
 0xb17   :  { %2914 = vmatpush3.bf16.msra.mxu1 %v2555_v49 }
 0xbd5   :  { %v2497_v51 = vpop.f32.mrb[44].mxu1 }
 0xbd6   :  { %v2498_v3 = vadd.f32 %v2497_v51, %v2410_v50  ;;  %v2901_v52 = vpop.f32.mrb[45].mxu1 }
 0xbd7   :  { %v2500_v53 = vpop.f32.mrb[46].mxu1 }
 0xbd8   :  { %v2503_v54 = vmax.f32 %v2498_v3, 0.0  ;;  %v2902_v55 = vpop.f32.mrb[47].mxu1 }
 0xbda   :  { %v2504_v56 = vpack.c.bf16 %v2503_v54, %v2503_v54 }
 0xbdc   :  { %2916 = vmatmul.mubr.msk.bf16.vlgmr.msra.gmra.mrb[48].mxu1 %vm2550_vm0, %v2504_v56 }
 0xcaf   :  { %v2591_v57 = vpop.f32.mrb[48].mxu1 }
 0xcb0   :  { %v2592_v60 = vadd.f32 %v2591_v57, %v2516_v14  ;;  %v2917_v61 = vpop.f32.mrb[49].mxu1 }
 0xcb1   :  { %v2594_v62 = vpop.f32.mrb[50].mxu1 }
 0xcb2   :  { %v2918_v63 = vpop.f32.mrb[51].mxu1  ;;  %2598 = vst.msk [vmem:[#allocation7] sm:$0x1] %vm2597_vm1, %v2592_v60 }
 0xcb3   :  { %3106 = shalt.err (!%p3103_p4)
}
 0xcb4   :  { %s3107_s5 = scalar_lea.hbm %s4264_s14, 16 }
 0xcb5   :  { %p3108_p5 = scmp.ne.s32.totalorder %s4264_s14, %s3107_s5  ;;  %p3111_p6 = scmp.lt.u32.totalorder %s3107_s5, %s4264_s14 }
 0xcb7   :  { %p3113_p7 = pnand %p3111_p6, %p3108_p5 }
 0xcb9   :  { %3116 = shalt.err (!%p3113_p7)
}
 0xcba   :  { %2608 = dma.vmem_to_hbm [thread:$0]  %s2606_s29, 16, %s4264_s14, [#allocation8]  }
 0xcbb   :  { %3117 = dma.done.wait [#allocation8], 16  }
 0xcbc   :  { %3118 = vsyncadd [#allocation8], 4294967280 }
 0xcbd   :  { %2612 = vsyncpa [#allocation8], 1 }

</bundles_post_ra>
